<compile_context>
chip_gen: v7x
topology: tpu7x:2x2x1
jax: 0.10.0
libtpu: 0.0.40
codegen_flags: <defaults>
</compile_context>

<pallas_src>
import functools
import math

import jax
import jax.numpy as jnp
from jax import lax
from jax.experimental import pallas as pl
from jax.experimental.pallas import tpu as pltpu


# -----------------------------------------------------------------------------
# Kernels
# -----------------------------------------------------------------------------
def _attn_ln_kernel(xq_ref, kv_ref, wq_ref, bq_ref, wkv_ref, bkv_ref,
                    wo_ref, bo_ref, g_ref, b_ref, out_ref, *, n_heads, causal):
    """Multi-head attention + output projection + residual + LayerNorm epilogue.

    Processes one (batch, query-block) grid step. Keys/values cover the full
    kv sequence held in VMEM for this step.
    """
    xq = xq_ref[0]                       # (TQ, D)  f32
    kv = kv_ref[0]                       # (S,  D)  f32
    TQ, D = xq.shape
    S = kv.shape[0]
    H = n_heads
    dh = D // H
    cdt = wq_ref.dtype                   # bf16 compute dtype for MXU operands
    scale = 1.0 / math.sqrt(dh)

    # Fused projections: one wide K|V matmul, one Q matmul; scale folded into q.
    q = (jnp.dot(xq.astype(cdt), wq_ref[...],
                 preferred_element_type=jnp.float32) + bq_ref[...]) * scale
    kvp = jnp.dot(kv.astype(cdt), wkv_ref[...],
                  preferred_element_type=jnp.float32) + bkv_ref[...]
    q = q.astype(cdt)                    # (TQ, D)
    k = kvp[:, :D].astype(cdt)           # (S, D)
    v = kvp[:, D:].astype(cdt)           # (S, D)

    # Causal mask built once (f32 path), outside the per-head loop.
    if causal:
        q0 = pl.program_id(1) * TQ
        row = q0 + lax.broadcasted_iota(jnp.int32, (TQ, S), 0)
        col = lax.broadcasted_iota(jnp.int32, (TQ, S), 1)
        keep = col <= row
    else:
        keep = None

    nt = (((1,), (1,)), ((), ()))        # contract last axes: q @ k^T, no .T op
    ctx_heads = []
    for h in range(H):                   # static unroll; H is small
        qh = q[:, h * dh:(h + 1) * dh]   # (TQ, dh)
        kh = k[:, h * dh:(h + 1) * dh]   # (S,  dh)
        vh = v[:, h * dh:(h + 1) * dh]   # (S,  dh)
        s = lax.dot_general(qh, kh, nt, preferred_element_type=jnp.float32)
        if keep is not None:
            s = jnp.where(keep, s, -1e30)            # applied in f32: exp-safe
        m = jnp.max(s, axis=-1, keepdims=True)
        e = jnp.exp(s - m)
        # TODO(synk): on hardware, pl.reciprocal(denom, approx=True) moves the
        # divide to the idle EUP slot; plain divide kept for portability.
        p = e / jnp.sum(e, axis=-1, keepdims=True)
        ctx_heads.append(
            jnp.dot(p.astype(cdt), vh, preferred_element_type=jnp.float32))

    ctx = jnp.concatenate(ctx_heads, axis=-1).astype(cdt)      # (TQ, D)

    # Single (TQ, D) x (D, D) output projection + residual (dropout = identity).
    y = xq + jnp.dot(ctx, wo_ref[...],
                     preferred_element_type=jnp.float32) + bo_ref[...]

    # Fused LayerNorm epilogue — single pass (mean and E[x^2]), f32 math.
    mu = jnp.mean(y, axis=-1, keepdims=True)
    ms = jnp.mean(y * y, axis=-1, keepdims=True)
    inv = lax.rsqrt(ms - mu * mu + 1e-5)
    out_ref[0] = ((y - mu) * inv * g_ref[...] + b_ref[...]).astype(out_ref.dtype)


def _ffn_ln_kernel(x_ref, w1_ref, b1_ref, w2_ref, b2_ref, g_ref, b_ref, out_ref):
    """conv1(k=1) -> relu -> conv2(k=1) -> residual -> LayerNorm epilogue."""
    x = x_ref[0]                                        # (TL, D) f32
    cdt = w1_ref.dtype                                  # bf16 MXU operands
    h = jnp.dot(x.astype(cdt), w1_ref[...],
                preferred_element_type=jnp.float32) + b1_ref[...]
    h = jnp.maximum(h, 0.0)                             # activation='relu'
    y = x + jnp.dot(h.astype(cdt), w2_ref[...],
                    preferred_element_type=jnp.float32) + b2_ref[...]

    mu = jnp.mean(y, axis=-1, keepdims=True)
    ms = jnp.mean(y * y, axis=-1, keepdims=True)
    inv = lax.rsqrt(ms - mu * mu + 1e-5)
    out_ref[0] = ((y - mu) * inv * g_ref[...] + b_ref[...]).astype(out_ref.dtype)


# -----------------------------------------------------------------------------
# pallas_call wrappers
# -----------------------------------------------------------------------------
def _rep(shape):
    """Replicated (non-tiled) weight/bias spec over a 2-D grid."""
    return pl.BlockSpec(shape, lambda b, i: (0,) * len(shape))


def attn_ln(xq, xkv, p, gamma, beta, *, n_heads, causal, block_q=128):
    B, L, D = xq.shape
    S = xkv.shape[1]
    assert D % n_heads == 0
    tq = L if L <= block_q else block_q
    assert L % tq == 0, "sequence length must be a multiple of the query tile"
    grid = (B, L // tq)

    kern = functools.partial(_attn_ln_kernel, n_heads=n_heads, causal=causal)
    return pl.pallas_call(
        kern,
        out_shape=jax.ShapeDtypeStruct((B, L, D), xq.dtype),
        grid=grid,
        in_specs=[
            pl.BlockSpec((1, tq, D), lambda b, i: (b, i, 0)),   # query tile
            pl.BlockSpec((1, S, D), lambda b, i: (b, 0, 0)),    # full K/V source
            _rep((D, D)), _rep((1, D)),                         # wq, bq
            _rep((D, 2 * D)), _rep((1, 2 * D)),                 # wkv, bkv (fused)
            _rep((D, D)), _rep((1, D)),                         # wo, bo
            _rep((1, D)), _rep((1, D)),                         # LN gamma, beta
        ],
        out_specs=pl.BlockSpec((1, tq, D), lambda b, i: (b, i, 0)),
        compiler_params=pltpu.CompilerParams(
            dimension_semantics=("parallel", "parallel")),
    )(xq, xkv, p["wq"], p["bq"], p["wkv"], p["bkv"], p["wo"], p["bo"],
      gamma, beta)


def ffn_ln(x, w1, b1, w2, b2, gamma, beta, *, block_l=128):
    B, L, D = x.shape
    Dff = w1.shape[1]
    tl = L if L <= block_l else block_l
    assert L % tl == 0
    grid = (B, L // tl)

    return pl.pallas_call(
        _ffn_ln_kernel,
        out_shape=jax.ShapeDtypeStruct((B, L, D), x.dtype),
        grid=grid,
        in_specs=[
            pl.BlockSpec((1, tl, D), lambda b, i: (b, i, 0)),
            _rep((D, Dff)), _rep((1, Dff)),
            _rep((Dff, D)), _rep((1, D)),
            _rep((1, D)), _rep((1, D)),
        ],
        out_specs=pl.BlockSpec((1, tl, D), lambda b, i: (b, i, 0)),
        compiler_params=pltpu.CompilerParams(
            dimension_semantics=("parallel", "parallel")),
    )(x, w1, b1, w2, b2, gamma, beta)


# -----------------------------------------------------------------------------
# DecoderLayer forward
# -----------------------------------------------------------------------------
def decoder_layer(x, cross, params, *, n_heads):
    # x = norm1(x + self_attention(x, x, x, causal))      (dropout = identity)
    x = attn_ln(x, x, params["self"], params["ln1_g"], params["ln1_b"],
                n_heads=n_heads, causal=True)
    # x = norm2(x + cross_attention(x, cross, cross))
    x = attn_ln(x, cross, params["cross"], params["ln2_g"], params["ln2_b"],
                n_heads=n_heads, causal=False)
    # out = norm3(x + conv2(relu(conv1(x))))
    return ffn_ln(x, params["w1"], params["b1"], params["w2"], params["b2"],
                  params["ln3_g"], params["ln3_b"])


# -----------------------------------------------------------------------------
# Deterministic synthetic parameter init (no checkpoint)
# -----------------------------------------------------------------------------
def init_params(key, d_model, d_ff, dtype=jnp.float32, weight_dtype=jnp.bfloat16):
    counter = [0]

    def nk():                                   # never runs out of keys
        counter[0] += 1
        return jax.random.fold_in(key, counter[0])

    def lin(fan_in, shape, dt):
        bound = 1.0 / math.sqrt(fan_in)
        return jax.random.uniform(nk(), shape, jnp.float32, -bound, bound).astype(dt)

    def attn_params():
        return {
            "wq": lin(d_model, (d_model, d_model), weight_dtype),
            "bq": lin(d_model, (1, d_model), dtype),
            # wk | wv pre-concatenated into one (D, 2D) weight (fused KV matmul)
            "wkv": lin(d_model, (d_model, 2 * d_model), weight_dtype),
            "bkv": lin(d_model, (1, 2 * d_model), dtype),
            "wo": lin(d_model, (d_model, d_model), weight_dtype),
            "bo": jnp.zeros((1, d_model), dtype),
        }

    return {
        "self": attn_params(),
        "cross": attn_params(),
        # conv1: [d_ff, d_model, 1]  -> matmul weight [d_model, d_ff]
        "w1": lin(d_model, (d_model, d_ff), weight_dtype),
        "b1": lin(d_model, (1, d_ff), dtype),
        # conv2: [d_model, d_ff, 1]  -> matmul weight [d_ff, d_model]
        "w2": lin(d_ff, (d_ff, d_model), weight_dtype),
        "b2": lin(d_ff, (1, d_model), dtype),
        "ln1_g": jnp.ones((1, d_model), dtype), "ln1_b": jnp.zeros((1, d_model), dtype),
        "ln2_g": jnp.ones((1, d_model), dtype), "ln2_b": jnp.zeros((1, d_model), dtype),
        "ln3_g": jnp.ones((1, d_model), dtype), "ln3_b": jnp.zeros((1, d_model), dtype),
    }


if __name__ == "__main__":
    # batch, decoder seq, encoder seq, d_model (multiple of 128 -> lane-dense
    # stores), heads
    B, L, S, D, H = 2, 16, 32, 128, 4
    d_ff = 4 * D

    key = jax.random.PRNGKey(0)
    kx, kc, kp = jax.random.split(key, 3)
    x = jax.random.normal(kx, (B, L, D), jnp.float32)
    cross = jax.random.normal(kc, (B, S, D), jnp.float32)
    params = init_params(kp, D, d_ff)

    fn = jax.jit(functools.partial(decoder_layer, n_heads=H))
    out = fn(x, cross, params)
    jax.block_until_ready(out)

    assert out.shape == (B, L, D)
    assert bool(jnp.all(jnp.isfinite(out)))
    print("KERNEL_OK")
</pallas_src>

<mosaic_0001>
module attributes {stable_mosaic.version = 11 : i64} {
  func.func @_ffn_ln_kernel(%arg0: i32, %arg1: i32, %arg2: memref<1x16x128xf32, #tpu.memory_space<vmem>>, %arg3: memref<128x512xbf16, #tpu.memory_space<vmem>>, %arg4: memref<1x512xf32, #tpu.memory_space<vmem>>, %arg5: memref<512x128xbf16, #tpu.memory_space<vmem>>, %arg6: memref<1x128xf32, #tpu.memory_space<vmem>>, %arg7: memref<1x128xf32, #tpu.memory_space<vmem>>, %arg8: memref<1x128xf32, #tpu.memory_space<vmem>>, %arg9: memref<1x16x128xf32, #tpu.memory_space<vmem>>) attributes {dimension_semantics = [#tpu.dimension_semantics<parallel>, #tpu.dimension_semantics<parallel>], iteration_bounds = array<i64: 2, 1>, scalar_prefetch = 0 : i64, scratch_operands = 0 : i64, tpu.core_type = #tpu.core_type<tc>, window_params = [{transform_indices = @transform_0, window_bounds = array<i64: 1, 16, 128>}, {pipeline_mode = #tpu.pipeline_mode<synchronous>, transform_indices = @transform_1, window_bounds = array<i64: 128, 512>}, {pipeline_mode = #tpu.pipeline_mode<synchronous>, transform_indices = @transform_2, window_bounds = array<i64: 1, 512>}, {pipeline_mode = #tpu.pipeline_mode<synchronous>, transform_indices = @transform_3, window_bounds = array<i64: 512, 128>}, {pipeline_mode = #tpu.pipeline_mode<synchronous>, transform_indices = @transform_4, window_bounds = array<i64: 1, 128>}, {pipeline_mode = #tpu.pipeline_mode<synchronous>, transform_indices = @transform_5, window_bounds = array<i64: 1, 128>}, {pipeline_mode = #tpu.pipeline_mode<synchronous>, transform_indices = @transform_6, window_bounds = array<i64: 1, 128>}, {transform_indices = @transform_7, window_bounds = array<i64: 1, 16, 128>}]} {
    %c0 = arith.constant 0 : index
    %c0_0 = arith.constant 0 : index
    %c0_1 = arith.constant 0 : index
    %0 = vector.load %arg2[%c0, %c0_0, %c0_1] : memref<1x16x128xf32, #tpu.memory_space<vmem>>, vector<1x16x128xf32>
    %1 = vector.shape_cast %0 : vector<1x16x128xf32> to vector<16x128xf32>
    %2 = arith.truncf %1 : vector<16x128xf32> to vector<16x128xbf16>
    %c0_2 = arith.constant 0 : index
    %c0_3 = arith.constant 0 : index
    %3 = vector.load %arg3[%c0_2, %c0_3] : memref<128x512xbf16, #tpu.memory_space<vmem>>, vector<128x512xbf16>
    %cst = arith.constant dense<0.000000e+00> : vector<16x512xf32>
    %4 = tpu.matmul %2, %3, %cst {dimension_numbers = #tpu.dot_dimension_numbers<[1], [0], [0], [1], [0, 0, 1, 1], [], []>} : vector<16x128xbf16>, vector<128x512xbf16>, vector<16x512xf32> -> vector<16x512xf32>
    %c0_4 = arith.constant 0 : index
    %c0_5 = arith.constant 0 : index
    %5 = vector.load %arg4[%c0_4, %c0_5] : memref<1x512xf32, #tpu.memory_space<vmem>>, vector<1x512xf32>
    %6 = vector.broadcast %5 : vector<1x512xf32> to vector<16x512xf32>
    %7 = arith.addf %4, %6 : vector<16x512xf32>
    %cst_6 = arith.constant 0.000000e+00 : f32
    %8 = vector.broadcast %cst_6 : f32 to vector<16x512xf32>
    %9 = arith.maximumf %7, %8 : vector<16x512xf32>
    %10 = arith.truncf %9 : vector<16x512xf32> to vector<16x512xbf16>
    %c0_7 = arith.constant 0 : index
    %c0_8 = arith.constant 0 : index
    %11 = vector.load %arg5[%c0_7, %c0_8] : memref<512x128xbf16, #tpu.memory_space<vmem>>, vector<512x128xbf16>
    %cst_9 = arith.constant dense<0.000000e+00> : vector<16x128xf32>
    %12 = tpu.matmul %10, %11, %cst_9 {dimension_numbers = #tpu.dot_dimension_numbers<[1], [0], [0], [1], [0, 0, 1, 1], [], []>} : vector<16x512xbf16>, vector<512x128xbf16>, vector<16x128xf32> -> vector<16x128xf32>
    %13 = arith.addf %1, %12 : vector<16x128xf32>
    %c0_10 = arith.constant 0 : index
    %c0_11 = arith.constant 0 : index
    %14 = vector.load %arg6[%c0_10, %c0_11] : memref<1x128xf32, #tpu.memory_space<vmem>>, vector<1x128xf32>
    %15 = vector.broadcast %14 : vector<1x128xf32> to vector<16x128xf32>
    %16 = arith.addf %13, %15 : vector<16x128xf32>
    %cst_12 = arith.constant dense<0.000000e+00> : vector<16xf32>
    %17 = vector.multi_reduction <add>, %16, %cst_12 [1] : vector<16x128xf32> to vector<16xf32>
    %18 = vector.shape_cast %17 : vector<16xf32> to vector<16x1xf32>
    %cst_13 = arith.constant 1.280000e+02 : f32
    %19 = vector.broadcast %cst_13 : f32 to vector<16x1xf32>
    %20 = arith.divf %18, %19 : vector<16x1xf32>
    %21 = arith.mulf %16, %16 : vector<16x128xf32>
    %cst_14 = arith.constant dense<0.000000e+00> : vector<16xf32>
    %22 = vector.multi_reduction <add>, %21, %cst_14 [1] : vector<16x128xf32> to vector<16xf32>
    %23 = vector.shape_cast %22 : vector<16xf32> to vector<16x1xf32>
    %cst_15 = arith.constant 1.280000e+02 : f32
    %24 = vector.broadcast %cst_15 : f32 to vector<16x1xf32>
    %25 = arith.divf %23, %24 : vector<16x1xf32>
    %26 = arith.mulf %20, %20 : vector<16x1xf32>
    %27 = arith.subf %25, %26 : vector<16x1xf32>
    %cst_16 = arith.constant 9.99999974E-6 : f32
    %28 = vector.broadcast %cst_16 : f32 to vector<16x1xf32>
    %29 = arith.addf %27, %28 : vector<16x1xf32>
    %30 = math.rsqrt %29 : vector<16x1xf32>
    %31 = vector.broadcast %20 : vector<16x1xf32> to vector<16x128xf32>
    %32 = arith.subf %16, %31 : vector<16x128xf32>
    %33 = vector.broadcast %30 : vector<16x1xf32> to vector<16x128xf32>
    %34 = arith.mulf %32, %33 : vector<16x128xf32>
    %c0_17 = arith.constant 0 : index
    %c0_18 = arith.constant 0 : index
    %35 = vector.load %arg7[%c0_17, %c0_18] : memref<1x128xf32, #tpu.memory_space<vmem>>, vector<1x128xf32>
    %36 = vector.broadcast %35 : vector<1x128xf32> to vector<16x128xf32>
    %37 = arith.mulf %34, %36 : vector<16x128xf32>
    %c0_19 = arith.constant 0 : index
    %c0_20 = arith.constant 0 : index
    %38 = vector.load %arg8[%c0_19, %c0_20] : memref<1x128xf32, #tpu.memory_space<vmem>>, vector<1x128xf32>
    %39 = vector.broadcast %38 : vector<1x128xf32> to vector<16x128xf32>
    %40 = arith.addf %37, %39 : vector<16x128xf32>
    %c0_21 = arith.constant 0 : index
    %c0_22 = arith.constant 0 : index
    %c0_23 = arith.constant 0 : index
    %41 = vector.load %arg9[%c0_21, %c0_22, %c0_23] : memref<1x16x128xf32, #tpu.memory_space<vmem>>, vector<1x16x128xf32>
    %42 = vector.shape_cast %41 : vector<1x16x128xf32> to vector<16x128xf32>
    %43 = vector.shape_cast %40 : vector<16x128xf32> to vector<1x16x128xf32>
    tpu.vector_store %arg9[%c0_21, %c0_22, %c0_23], %43 {strides = array<i32>} : memref<1x16x128xf32, #tpu.memory_space<vmem>>, vector<1x16x128xf32>,
    return
  }
  func.func @transform_0(%arg0: i32, %arg1: i32) -> (i32, i32, i32) {
    %c0_i32 = arith.constant 0 : i32
    %c0_i32_0 = arith.constant 0 : i32
    return %arg0, %arg1, %c0_i32 : i32, i32, i32
  }
  func.func @transform_1(%arg0: i32, %arg1: i32) -> (i32, i32) {
    %c0_i32 = arith.constant 0 : i32
    %c0_i32_0 = arith.constant 0 : i32
    %c0_i32_1 = arith.constant 0 : i32
    return %c0_i32, %c0_i32_0 : i32, i32
  }
  func.func @transform_2(%arg0: i32, %arg1: i32) -> (i32, i32) {
    %c0_i32 = arith.constant 0 : i32
    %c0_i32_0 = arith.constant 0 : i32
    %c0_i32_1 = arith.constant 0 : i32
    return %c0_i32, %c0_i32_0 : i32, i32
  }
  func.func @transform_3(%arg0: i32, %arg1: i32) -> (i32, i32) {
    %c0_i32 = arith.constant 0 : i32
    %c0_i32_0 = arith.constant 0 : i32
    %c0_i32_1 = arith.constant 0 : i32
    return %c0_i32, %c0_i32_0 : i32, i32
  }
  func.func @transform_4(%arg0: i32, %arg1: i32) -> (i32, i32) {
    %c0_i32 = arith.constant 0 : i32
    %c0_i32_0 = arith.constant 0 : i32
    %c0_i32_1 = arith.constant 0 : i32
    return %c0_i32, %c0_i32_0 : i32, i32
  }
  func.func @transform_5(%arg0: i32, %arg1: i32) -> (i32, i32) {
    %c0_i32 = arith.constant 0 : i32
    %c0_i32_0 = arith.constant 0 : i32
    %c0_i32_1 = arith.constant 0 : i32
    return %c0_i32, %c0_i32_0 : i32, i32
  }
  func.func @transform_6(%arg0: i32, %arg1: i32) -> (i32, i32) {
    %c0_i32 = arith.constant 0 : i32
    %c0_i32_0 = arith.constant 0 : i32
    %c0_i32_1 = arith.constant 0 : i32
    return %c0_i32, %c0_i32_0 : i32, i32
  }
  func.func @transform_7(%arg0: i32, %arg1: i32) -> (i32, i32, i32) {
    %c0_i32 = arith.constant 0 : i32
    %c0_i32_0 = arith.constant 0 : i32
    return %arg0, %arg1, %c0_i32 : i32, i32, i32
  }
}

module attributes {stable_mosaic.version = 11 : i64} {
  func.func @_attn_ln_kernel(%arg0: i32, %arg1: i32, %arg2: memref<1x16x128xf32, #tpu.memory_space<vmem>>, %arg3: memref<1x32x128xf32, #tpu.memory_space<vmem>>, %arg4: memref<128x128xbf16, #tpu.memory_space<vmem>>, %arg5: memref<1x128xf32, #tpu.memory_space<vmem>>, %arg6: memref<128x256xbf16, #tpu.memory_space<vmem>>, %arg7: memref<1x256xf32, #tpu.memory_space<vmem>>, %arg8: memref<128x128xbf16, #tpu.memory_space<vmem>>, %arg9: memref<1x128xf32, #tpu.memory_space<vmem>>, %arg10: memref<1x128xf32, #tpu.memory_space<vmem>>, %arg11: memref<1x128xf32, #tpu.memory_space<vmem>>, %arg12: memref<1x16x128xf32, #tpu.memory_space<vmem>>) attributes {dimension_semantics = [#tpu.dimension_semantics<parallel>, #tpu.dimension_semantics<parallel>], iteration_bounds = array<i64: 2, 1>, scalar_prefetch = 0 : i64, scratch_operands = 0 : i64, tpu.core_type = #tpu.core_type<tc>, window_params = [{transform_indices = @transform_0, window_bounds = array<i64: 1, 16, 128>}, {transform_indices = @transform_1, window_bounds = array<i64: 1, 32, 128>}, {pipeline_mode = #tpu.pipeline_mode<synchronous>, transform_indices = @transform_2, window_bounds = array<i64: 128, 128>}, {pipeline_mode = #tpu.pipeline_mode<synchronous>, transform_indices = @transform_3, window_bounds = array<i64: 1, 128>}, {pipeline_mode = #tpu.pipeline_mode<synchronous>, transform_indices = @transform_4, window_bounds = array<i64: 128, 256>}, {pipeline_mode = #tpu.pipeline_mode<synchronous>, transform_indices = @transform_5, window_bounds = array<i64: 1, 256>}, {pipeline_mode = #tpu.pipeline_mode<synchronous>, transform_indices = @transform_6, window_bounds = array<i64: 128, 128>}, {pipeline_mode = #tpu.pipeline_mode<synchronous>, transform_indices = @transform_7, window_bounds = array<i64: 1, 128>}, {pipeline_mode = #tpu.pipeline_mode<synchronous>, transform_indices = @transform_8, window_bounds = array<i64: 1, 128>}, {pipeline_mode = #tpu.pipeline_mode<synchronous>, transform_indices = @transform_9, window_bounds = array<i64: 1, 128>}, {transform_indices = @transform_10, window_bounds = array<i64: 1, 16, 128>}]} {
    %c0 = arith.constant 0 : index
    %c0_0 = arith.constant 0 : index
    %c0_1 = arith.constant 0 : index
    %0 = vector.load %arg2[%c0, %c0_0, %c0_1] : memref<1x16x128xf32, #tpu.memory_space<vmem>>, vector<1x16x128xf32>
    %1 = vector.shape_cast %0 : vector<1x16x128xf32> to vector<16x128xf32>
    %c0_2 = arith.constant 0 : index
    %c0_3 = arith.constant 0 : index
    %c0_4 = arith.constant 0 : index
    %2 = vector.load %arg3[%c0_2, %c0_3, %c0_4] : memref<1x32x128xf32, #tpu.memory_space<vmem>>, vector<1x32x128xf32>
    %3 = vector.shape_cast %2 : vector<1x32x128xf32> to vector<32x128xf32>
    %4 = arith.truncf %1 : vector<16x128xf32> to vector<16x128xbf16>
    %c0_5 = arith.constant 0 : index
    %c0_6 = arith.constant 0 : index
    %5 = vector.load %arg4[%c0_5, %c0_6] : memref<128x128xbf16, #tpu.memory_space<vmem>>, vector<128x128xbf16>
    %cst = arith.constant dense<0.000000e+00> : vector<16x128xf32>
    %6 = tpu.matmul %4, %5, %cst {dimension_numbers = #tpu.dot_dimension_numbers<[1], [0], [0], [1], [0, 0, 1, 1], [], []>} : vector<16x128xbf16>, vector<128x128xbf16>, vector<16x128xf32> -> vector<16x128xf32>
    %c0_7 = arith.constant 0 : index
    %c0_8 = arith.constant 0 : index
    %7 = vector.load %arg5[%c0_7, %c0_8] : memref<1x128xf32, #tpu.memory_space<vmem>>, vector<1x128xf32>
    %8 = vector.broadcast %7 : vector<1x128xf32> to vector<16x128xf32>
    %9 = arith.addf %6, %8 : vector<16x128xf32>
    %cst_9 = arith.constant 0.176776692 : f32
    %10 = vector.broadcast %cst_9 : f32 to vector<16x128xf32>
    %11 = arith.mulf %9, %10 : vector<16x128xf32>
    %12 = arith.truncf %3 : vector<32x128xf32> to vector<32x128xbf16>
    %c0_10 = arith.constant 0 : index
    %c0_11 = arith.constant 0 : index
    %13 = vector.load %arg6[%c0_10, %c0_11] : memref<128x256xbf16, #tpu.memory_space<vmem>>, vector<128x256xbf16>
    %cst_12 = arith.constant dense<0.000000e+00> : vector<32x256xf32>
    %14 = tpu.matmul %12, %13, %cst_12 {dimension_numbers = #tpu.dot_dimension_numbers<[1], [0], [0], [1], [0, 0, 1, 1], [], []>} : vector<32x128xbf16>, vector<128x256xbf16>, vector<32x256xf32> -> vector<32x256xf32>
    %c0_13 = arith.constant 0 : index
    %c0_14 = arith.constant 0 : index
    %15 = vector.load %arg7[%c0_13, %c0_14] : memref<1x256xf32, #tpu.memory_space<vmem>>, vector<1x256xf32>
    %16 = vector.broadcast %15 : vector<1x256xf32> to vector<32x256xf32>
    %17 = arith.addf %14, %16 : vector<32x256xf32>
    %18 = arith.truncf %11 : vector<16x128xf32> to vector<16x128xbf16>
    %19 = vector.extract_strided_slice %17 {offsets = [0, 0], sizes = [32, 128], strides = [1, 1]} : vector<32x256xf32> to vector<32x128xf32>
    %20 = arith.truncf %19 : vector<32x128xf32> to vector<32x128xbf16>
    %21 = vector.extract_strided_slice %17 {offsets = [0, 128], sizes = [32, 128], strides = [1, 1]} : vector<32x256xf32> to vector<32x128xf32>
    %22 = arith.truncf %21 : vector<32x128xf32> to vector<32x128xbf16>
    %23 = vector.extract_strided_slice %18 {offsets = [0, 0], sizes = [16, 32], strides = [1, 1]} : vector<16x128xbf16> to vector<16x32xbf16>
    %24 = vector.extract_strided_slice %20 {offsets = [0, 0], sizes = [32, 32], strides = [1, 1]} : vector<32x128xbf16> to vector<32x32xbf16>
    %25 = vector.extract_strided_slice %22 {offsets = [0, 0], sizes = [32, 32], strides = [1, 1]} : vector<32x128xbf16> to vector<32x32xbf16>
    %cst_15 = arith.constant dense<0.000000e+00> : vector<16x32xf32>
    %26 = tpu.matmul %23, %24, %cst_15 {dimension_numbers = #tpu.dot_dimension_numbers<[1], [1], [0], [0], [0, 0, 1, 0], [], []>} : vector<16x32xbf16>, vector<32x32xbf16>, vector<16x32xf32> -> vector<16x32xf32>
    %cst_16 = arith.constant dense<0xFF800000> : vector<16xf32>
    %27 = vector.multi_reduction <maximumf>, %26, %cst_16 [1] : vector<16x32xf32> to vector<16xf32>
    %28 = vector.shape_cast %27 : vector<16xf32> to vector<16x1xf32>
    %29 = vector.broadcast %28 : vector<16x1xf32> to vector<16x32xf32>
    %30 = arith.subf %26, %29 : vector<16x32xf32>
    %31 = math.exp %30 : vector<16x32xf32>
    %cst_17 = arith.constant dense<0.000000e+00> : vector<16xf32>
    %32 = vector.multi_reduction <add>, %31, %cst_17 [1] : vector<16x32xf32> to vector<16xf32>
    %33 = vector.shape_cast %32 : vector<16xf32> to vector<16x1xf32>
    %34 = vector.broadcast %33 : vector<16x1xf32> to vector<16x32xf32>
    %35 = arith.divf %31, %34 : vector<16x32xf32>
    %36 = arith.truncf %35 : vector<16x32xf32> to vector<16x32xbf16>
    %cst_18 = arith.constant dense<0.000000e+00> : vector<16x32xf32>
    %37 = tpu.matmul %36, %25, %cst_18 {dimension_numbers = #tpu.dot_dimension_numbers<[1], [0], [0], [1], [0, 0, 1, 1], [], []>} : vector<16x32xbf16>, vector<32x32xbf16>, vector<16x32xf32> -> vector<16x32xf32>
    %38 = vector.extract_strided_slice %18 {offsets = [0, 32], sizes = [16, 32], strides = [1, 1]} : vector<16x128xbf16> to vector<16x32xbf16>
    %39 = vector.extract_strided_slice %20 {offsets = [0, 32], sizes = [32, 32], strides = [1, 1]} : vector<32x128xbf16> to vector<32x32xbf16>
    %40 = vector.extract_strided_slice %22 {offsets = [0, 32], sizes = [32, 32], strides = [1, 1]} : vector<32x128xbf16> to vector<32x32xbf16>
    %cst_19 = arith.constant dense<0.000000e+00> : vector<16x32xf32>
    %41 = tpu.matmul %38, %39, %cst_19 {dimension_numbers = #tpu.dot_dimension_numbers<[1], [1], [0], [0], [0, 0, 1, 0], [], []>} : vector<16x32xbf16>, vector<32x32xbf16>, vector<16x32xf32> -> vector<16x32xf32>
    %cst_20 = arith.constant dense<0xFF800000> : vector<16xf32>
    %42 = vector.multi_reduction <maximumf>, %41, %cst_20 [1] : vector<16x32xf32> to vector<16xf32>
    %43 = vector.shape_cast %42 : vector<16xf32> to vector<16x1xf32>
    %44 = vector.broadcast %43 : vector<16x1xf32> to vector<16x32xf32>
    %45 = arith.subf %41, %44 : vector<16x32xf32>
    %46 = math.exp %45 : vector<16x32xf32>
    %cst_21 = arith.constant dense<0.000000e+00> : vector<16xf32>
    %47 = vector.multi_reduction <add>, %46, %cst_21 [1] : vector<16x32xf32> to vector<16xf32>
    %48 = vector.shape_cast %47 : vector<16xf32> to vector<16x1xf32>
    %49 = vector.broadcast %48 : vector<16x1xf32> to vector<16x32xf32>
    %50 = arith.divf %46, %49 : vector<16x32xf32>
    %51 = arith.truncf %50 : vector<16x32xf32> to vector<16x32xbf16>
    %cst_22 = arith.constant dense<0.000000e+00> : vector<16x32xf32>
    %52 = tpu.matmul %51, %40, %cst_22 {dimension_numbers = #tpu.dot_dimension_numbers<[1], [0], [0], [1], [0, 0, 1, 1], [], []>} : vector<16x32xbf16>, vector<32x32xbf16>, vector<16x32xf32> -> vector<16x32xf32>
    %53 = vector.extract_strided_slice %18 {offsets = [0, 64], sizes = [16, 32], strides = [1, 1]} : vector<16x128xbf16> to vector<16x32xbf16>
    %54 = vector.extract_strided_slice %20 {offsets = [0, 64], sizes = [32, 32], strides = [1, 1]} : vector<32x128xbf16> to vector<32x32xbf16>
    %55 = vector.extract_strided_slice %22 {offsets = [0, 64], sizes = [32, 32], strides = [1, 1]} : vector<32x128xbf16> to vector<32x32xbf16>
    %cst_23 = arith.constant dense<0.000000e+00> : vector<16x32xf32>
    %56 = tpu.matmul %53, %54, %cst_23 {dimension_numbers = #tpu.dot_dimension_numbers<[1], [1], [0], [0], [0, 0, 1, 0], [], []>} : vector<16x32xbf16>, vector<32x32xbf16>, vector<16x32xf32> -> vector<16x32xf32>
    %cst_24 = arith.constant dense<0xFF800000> : vector<16xf32>
    %57 = vector.multi_reduction <maximumf>, %56, %cst_24 [1] : vector<16x32xf32> to vector<16xf32>
    %58 = vector.shape_cast %57 : vector<16xf32> to vector<16x1xf32>
    %59 = vector.broadcast %58 : vector<16x1xf32> to vector<16x32xf32>
    %60 = arith.subf %56, %59 : vector<16x32xf32>
    %61 = math.exp %60 : vector<16x32xf32>
    %cst_25 = arith.constant dense<0.000000e+00> : vector<16xf32>
    %62 = vector.multi_reduction <add>, %61, %cst_25 [1] : vector<16x32xf32> to vector<16xf32>
    %63 = vector.shape_cast %62 : vector<16xf32> to vector<16x1xf32>
    %64 = vector.broadcast %63 : vector<16x1xf32> to vector<16x32xf32>
    %65 = arith.divf %61, %64 : vector<16x32xf32>
    %66 = arith.truncf %65 : vector<16x32xf32> to vector<16x32xbf16>
    %cst_26 = arith.constant dense<0.000000e+00> : vector<16x32xf32>
    %67 = tpu.matmul %66, %55, %cst_26 {dimension_numbers = #tpu.dot_dimension_numbers<[1], [0], [0], [1], [0, 0, 1, 1], [], []>} : vector<16x32xbf16>, vector<32x32xbf16>, vector<16x32xf32> -> vector<16x32xf32>
    %68 = vector.extract_strided_slice %18 {offsets = [0, 96], sizes = [16, 32], strides = [1, 1]} : vector<16x128xbf16> to vector<16x32xbf16>
    %69 = vector.extract_strided_slice %20 {offsets = [0, 96], sizes = [32, 32], strides = [1, 1]} : vector<32x128xbf16> to vector<32x32xbf16>
    %70 = vector.extract_strided_slice %22 {offsets = [0, 96], sizes = [32, 32], strides = [1, 1]} : vector<32x128xbf16> to vector<32x32xbf16>
    %cst_27 = arith.constant dense<0.000000e+00> : vector<16x32xf32>
    %71 = tpu.matmul %68, %69, %cst_27 {dimension_numbers = #tpu.dot_dimension_numbers<[1], [1], [0], [0], [0, 0, 1, 0], [], []>} : vector<16x32xbf16>, vector<32x32xbf16>, vector<16x32xf32> -> vector<16x32xf32>
    %cst_28 = arith.constant dense<0xFF800000> : vector<16xf32>
    %72 = vector.multi_reduction <maximumf>, %71, %cst_28 [1] : vector<16x32xf32> to vector<16xf32>
    %73 = vector.shape_cast %72 : vector<16xf32> to vector<16x1xf32>
    %74 = vector.broadcast %73 : vector<16x1xf32> to vector<16x32xf32>
    %75 = arith.subf %71, %74 : vector<16x32xf32>
    %76 = math.exp %75 : vector<16x32xf32>
    %cst_29 = arith.constant dense<0.000000e+00> : vector<16xf32>
    %77 = vector.multi_reduction <add>, %76, %cst_29 [1] : vector<16x32xf32> to vector<16xf32>
    %78 = vector.shape_cast %77 : vector<16xf32> to vector<16x1xf32>
    %79 = vector.broadcast %78 : vector<16x1xf32> to vector<16x32xf32>
    %80 = arith.divf %76, %79 : vector<16x32xf32>
    %81 = arith.truncf %80 : vector<16x32xf32> to vector<16x32xbf16>
    %cst_30 = arith.constant dense<0.000000e+00> : vector<16x32xf32>
    %82 = tpu.matmul %81, %70, %cst_30 {dimension_numbers = #tpu.dot_dimension_numbers<[1], [0], [0], [1], [0, 0, 1, 1], [], []>} : vector<16x32xbf16>, vector<32x32xbf16>, vector<16x32xf32> -> vector<16x32xf32>
    %83 = tpu.concatenate %37, %52, %67, %82 in 1 : vector<16x32xf32>, vector<16x32xf32>, vector<16x32xf32>, vector<16x32xf32> -> vector<16x128xf32>
    %84 = arith.truncf %83 : vector<16x128xf32> to vector<16x128xbf16>
    %c0_31 = arith.constant 0 : index
    %c0_32 = arith.constant 0 : index
    %85 = vector.load %arg8[%c0_31, %c0_32] : memref<128x128xbf16, #tpu.memory_space<vmem>>, vector<128x128xbf16>
    %cst_33 = arith.constant dense<0.000000e+00> : vector<16x128xf32>
    %86 = tpu.matmul %84, %85, %cst_33 {dimension_numbers = #tpu.dot_dimension_numbers<[1], [0], [0], [1], [0, 0, 1, 1], [], []>} : vector<16x128xbf16>, vector<128x128xbf16>, vector<16x128xf32> -> vector<16x128xf32>
    %87 = arith.addf %1, %86 : vector<16x128xf32>
    %c0_34 = arith.constant 0 : index
    %c0_35 = arith.constant 0 : index
    %88 = vector.load %arg9[%c0_34, %c0_35] : memref<1x128xf32, #tpu.memory_space<vmem>>, vector<1x128xf32>
    %89 = vector.broadcast %88 : vector<1x128xf32> to vector<16x128xf32>
    %90 = arith.addf %87, %89 : vector<16x128xf32>
    %cst_36 = arith.constant dense<0.000000e+00> : vector<16xf32>
    %91 = vector.multi_reduction <add>, %90, %cst_36 [1] : vector<16x128xf32> to vector<16xf32>
    %92 = vector.shape_cast %91 : vector<16xf32> to vector<16x1xf32>
    %cst_37 = arith.constant 1.280000e+02 : f32
    %93 = vector.broadcast %cst_37 : f32 to vector<16x1xf32>
    %94 = arith.divf %92, %93 : vector<16x1xf32>
    %95 = arith.mulf %90, %90 : vector<16x128xf32>
    %cst_38 = arith.constant dense<0.000000e+00> : vector<16xf32>
    %96 = vector.multi_reduction <add>, %95, %cst_38 [1] : vector<16x128xf32> to vector<16xf32>
    %97 = vector.shape_cast %96 : vector<16xf32> to vector<16x1xf32>
    %cst_39 = arith.constant 1.280000e+02 : f32
    %98 = vector.broadcast %cst_39 : f32 to vector<16x1xf32>
    %99 = arith.divf %97, %98 : vector<16x1xf32>
    %100 = arith.mulf %94, %94 : vector<16x1xf32>
    %101 = arith.subf %99, %100 : vector<16x1xf32>
    %cst_40 = arith.constant 9.99999974E-6 : f32
    %102 = vector.broadcast %cst_40 : f32 to vector<16x1xf32>
    %103 = arith.addf %101, %102 : vector<16x1xf32>
    %104 = math.rsqrt %103 : vector<16x1xf32>
    %105 = vector.broadcast %94 : vector<16x1xf32> to vector<16x128xf32>
    %106 = arith.subf %90, %105 : vector<16x128xf32>
    %107 = vector.broadcast %104 : vector<16x1xf32> to vector<16x128xf32>
    %108 = arith.mulf %106, %107 : vector<16x128xf32>
    %c0_41 = arith.constant 0 : index
    %c0_42 = arith.constant 0 : index
    %109 = vector.load %arg10[%c0_41, %c0_42] : memref<1x128xf32, #tpu.memory_space<vmem>>, vector<1x128xf32>
    %110 = vector.broadcast %109 : vector<1x128xf32> to vector<16x128xf32>
    %111 = arith.mulf %108, %110 : vector<16x128xf32>
    %c0_43 = arith.constant 0 : index
    %c0_44 = arith.constant 0 : index
    %112 = vector.load %arg11[%c0_43, %c0_44] : memref<1x128xf32, #tpu.memory_space<vmem>>, vector<1x128xf32>
    %113 = vector.broadcast %112 : vector<1x128xf32> to vector<16x128xf32>
    %114 = arith.addf %111, %113 : vector<16x128xf32>
    %c0_45 = arith.constant 0 : index
    %c0_46 = arith.constant 0 : index
    %c0_47 = arith.constant 0 : index
    %115 = vector.load %arg12[%c0_45, %c0_46, %c0_47] : memref<1x16x128xf32, #tpu.memory_space<vmem>>, vector<1x16x128xf32>
    %116 = vector.shape_cast %115 : vector<1x16x128xf32> to vector<16x128xf32>
    %117 = vector.shape_cast %114 : vector<16x128xf32> to vector<1x16x128xf32>
    tpu.vector_store %arg12[%c0_45, %c0_46, %c0_47], %117 {strides = array<i32>} : memref<1x16x128xf32, #tpu.memory_space<vmem>>, vector<1x16x128xf32>,
    return
  }
  func.func @transform_0(%arg0: i32, %arg1: i32) -> (i32, i32, i32) {
    %c0_i32 = arith.constant 0 : i32
    %c0_i32_0 = arith.constant 0 : i32
    return %arg0, %arg1, %c0_i32 : i32, i32, i32
  }
  func.func @transform_1(%arg0: i32, %arg1: i32) -> (i32, i32, i32) {
    %c0_i32 = arith.constant 0 : i32
    %c0_i32_0 = arith.constant 0 : i32
    %c0_i32_1 = arith.constant 0 : i32
    return %arg0, %c0_i32, %c0_i32_0 : i32, i32, i32
  }
  func.func @transform_2(%arg0: i32, %arg1: i32) -> (i32, i32) {
    %c0_i32 = arith.constant 0 : i32
    %c0_i32_0 = arith.constant 0 : i32
    %c0_i32_1 = arith.constant 0 : i32
    return %c0_i32, %c0_i32_0 : i32, i32
  }
  func.func @transform_3(%arg0: i32, %arg1: i32) -> (i32, i32) {
    %c0_i32 = arith.constant 0 : i32
    %c0_i32_0 = arith.constant 0 : i32
    %c0_i32_1 = arith.constant 0 : i32
    return %c0_i32, %c0_i32_0 : i32, i32
  }
  func.func @transform_4(%arg0: i32, %arg1: i32) -> (i32, i32) {
    %c0_i32 = arith.constant 0 : i32
    %c0_i32_0 = arith.constant 0 : i32
    %c0_i32_1 = arith.constant 0 : i32
    return %c0_i32, %c0_i32_0 : i32, i32
  }
  func.func @transform_5(%arg0: i32, %arg1: i32) -> (i32, i32) {
    %c0_i32 = arith.constant 0 : i32
    %c0_i32_0 = arith.constant 0 : i32
    %c0_i32_1 = arith.constant 0 : i32
    return %c0_i32, %c0_i32_0 : i32, i32
  }
  func.func @transform_6(%arg0: i32, %arg1: i32) -> (i32, i32) {
    %c0_i32 = arith.constant 0 : i32
    %c0_i32_0 = arith.constant 0 : i32
    %c0_i32_1 = arith.constant 0 : i32
    return %c0_i32, %c0_i32_0 : i32, i32
  }
  func.func @transform_7(%arg0: i32, %arg1: i32) -> (i32, i32) {
    %c0_i32 = arith.constant 0 : i32
    %c0_i32_0 = arith.constant 0 : i32
    %c0_i32_1 = arith.constant 0 : i32
    return %c0_i32, %c0_i32_0 : i32, i32
  }
  func.func @transform_8(%arg0: i32, %arg1: i32) -> (i32, i32) {
    %c0_i32 = arith.constant 0 : i32
    %c0_i32_0 = arith.constant 0 : i32
    %c0_i32_1 = arith.constant 0 : i32
    return %c0_i32, %c0_i32_0 : i32, i32
  }
  func.func @transform_9(%arg0: i32, %arg1: i32) -> (i32, i32) {
    %c0_i32 = arith.constant 0 : i32
    %c0_i32_0 = arith.constant 0 : i32
    %c0_i32_1 = arith.constant 0 : i32
    return %c0_i32, %c0_i32_0 : i32, i32
  }
  func.func @transform_10(%arg0: i32, %arg1: i32) -> (i32, i32, i32) {
    %c0_i32 = arith.constant 0 : i32
    %c0_i32_0 = arith.constant 0 : i32
    return %arg0, %arg1, %c0_i32 : i32, i32, i32
  }
}

module attributes {stable_mosaic.version = 11 : i64} {
  func.func @_attn_ln_kernel(%arg0: i32, %arg1: i32, %arg2: memref<1x16x128xf32, #tpu.memory_space<vmem>>, %arg3: memref<1x16x128xf32, #tpu.memory_space<vmem>>, %arg4: memref<128x128xbf16, #tpu.memory_space<vmem>>, %arg5: memref<1x128xf32, #tpu.memory_space<vmem>>, %arg6: memref<128x256xbf16, #tpu.memory_space<vmem>>, %arg7: memref<1x256xf32, #tpu.memory_space<vmem>>, %arg8: memref<128x128xbf16, #tpu.memory_space<vmem>>, %arg9: memref<1x128xf32, #tpu.memory_space<vmem>>, %arg10: memref<1x128xf32, #tpu.memory_space<vmem>>, %arg11: memref<1x128xf32, #tpu.memory_space<vmem>>, %arg12: memref<1x16x128xf32, #tpu.memory_space<vmem>>) attributes {dimension_semantics = [#tpu.dimension_semantics<parallel>, #tpu.dimension_semantics<parallel>], iteration_bounds = array<i64: 2, 1>, scalar_prefetch = 0 : i64, scratch_operands = 0 : i64, tpu.core_type = #tpu.core_type<tc>, window_params = [{transform_indices = @transform_0, window_bounds = array<i64: 1, 16, 128>}, {transform_indices = @transform_1, window_bounds = array<i64: 1, 16, 128>}, {pipeline_mode = #tpu.pipeline_mode<synchronous>, transform_indices = @transform_2, window_bounds = array<i64: 128, 128>}, {pipeline_mode = #tpu.pipeline_mode<synchronous>, transform_indices = @transform_3, window_bounds = array<i64: 1, 128>}, {pipeline_mode = #tpu.pipeline_mode<synchronous>, transform_indices = @transform_4, window_bounds = array<i64: 128, 256>}, {pipeline_mode = #tpu.pipeline_mode<synchronous>, transform_indices = @transform_5, window_bounds = array<i64: 1, 256>}, {pipeline_mode = #tpu.pipeline_mode<synchronous>, transform_indices = @transform_6, window_bounds = array<i64: 128, 128>}, {pipeline_mode = #tpu.pipeline_mode<synchronous>, transform_indices = @transform_7, window_bounds = array<i64: 1, 128>}, {pipeline_mode = #tpu.pipeline_mode<synchronous>, transform_indices = @transform_8, window_bounds = array<i64: 1, 128>}, {pipeline_mode = #tpu.pipeline_mode<synchronous>, transform_indices = @transform_9, window_bounds = array<i64: 1, 128>}, {transform_indices = @transform_10, window_bounds = array<i64: 1, 16, 128>}]} {
    %c0 = arith.constant 0 : index
    %c0_0 = arith.constant 0 : index
    %c0_1 = arith.constant 0 : index
    %0 = vector.load %arg2[%c0, %c0_0, %c0_1] : memref<1x16x128xf32, #tpu.memory_space<vmem>>, vector<1x16x128xf32>
    %1 = vector.shape_cast %0 : vector<1x16x128xf32> to vector<16x128xf32>
    %c0_2 = arith.constant 0 : index
    %c0_3 = arith.constant 0 : index
    %c0_4 = arith.constant 0 : index
    %2 = vector.load %arg3[%c0_2, %c0_3, %c0_4] : memref<1x16x128xf32, #tpu.memory_space<vmem>>, vector<1x16x128xf32>
    %3 = vector.shape_cast %2 : vector<1x16x128xf32> to vector<16x128xf32>
    %4 = arith.truncf %1 : vector<16x128xf32> to vector<16x128xbf16>
    %c0_5 = arith.constant 0 : index
    %c0_6 = arith.constant 0 : index
    %5 = vector.load %arg4[%c0_5, %c0_6] : memref<128x128xbf16, #tpu.memory_space<vmem>>, vector<128x128xbf16>
    %cst = arith.constant dense<0.000000e+00> : vector<16x128xf32>
    %6 = tpu.matmul %4, %5, %cst {dimension_numbers = #tpu.dot_dimension_numbers<[1], [0], [0], [1], [0, 0, 1, 1], [], []>} : vector<16x128xbf16>, vector<128x128xbf16>, vector<16x128xf32> -> vector<16x128xf32>
    %c0_7 = arith.constant 0 : index
    %c0_8 = arith.constant 0 : index
    %7 = vector.load %arg5[%c0_7, %c0_8] : memref<1x128xf32, #tpu.memory_space<vmem>>, vector<1x128xf32>
    %8 = vector.broadcast %7 : vector<1x128xf32> to vector<16x128xf32>
    %9 = arith.addf %6, %8 : vector<16x128xf32>
    %cst_9 = arith.constant 0.176776692 : f32
    %10 = vector.broadcast %cst_9 : f32 to vector<16x128xf32>
    %11 = arith.mulf %9, %10 : vector<16x128xf32>
    %12 = arith.truncf %3 : vector<16x128xf32> to vector<16x128xbf16>
    %c0_10 = arith.constant 0 : index
    %c0_11 = arith.constant 0 : index
    %13 = vector.load %arg6[%c0_10, %c0_11] : memref<128x256xbf16, #tpu.memory_space<vmem>>, vector<128x256xbf16>
    %cst_12 = arith.constant dense<0.000000e+00> : vector<16x256xf32>
    %14 = tpu.matmul %12, %13, %cst_12 {dimension_numbers = #tpu.dot_dimension_numbers<[1], [0], [0], [1], [0, 0, 1, 1], [], []>} : vector<16x128xbf16>, vector<128x256xbf16>, vector<16x256xf32> -> vector<16x256xf32>
    %c0_13 = arith.constant 0 : index
    %c0_14 = arith.constant 0 : index
    %15 = vector.load %arg7[%c0_13, %c0_14] : memref<1x256xf32, #tpu.memory_space<vmem>>, vector<1x256xf32>
    %16 = vector.broadcast %15 : vector<1x256xf32> to vector<16x256xf32>
    %17 = arith.addf %14, %16 : vector<16x256xf32>
    %18 = arith.truncf %11 : vector<16x128xf32> to vector<16x128xbf16>
    %19 = vector.extract_strided_slice %17 {offsets = [0, 0], sizes = [16, 128], strides = [1, 1]} : vector<16x256xf32> to vector<16x128xf32>
    %20 = arith.truncf %19 : vector<16x128xf32> to vector<16x128xbf16>
    %21 = vector.extract_strided_slice %17 {offsets = [0, 128], sizes = [16, 128], strides = [1, 1]} : vector<16x256xf32> to vector<16x128xf32>
    %22 = arith.truncf %21 : vector<16x128xf32> to vector<16x128xbf16>
    %c16_i32 = arith.constant 16 : i32
    %23 = arith.muli %arg1, %c16_i32 : i32
    %24 = tpu.iota {dimensions = array<i32: 0>} : vector<16x16xi32>
    %25 = vector.broadcast %23 : i32 to vector<16x16xi32>
    %26 = arith.addi %25, %24 : vector<16x16xi32>
    %27 = tpu.iota {dimensions = array<i32: 1>} : vector<16x16xi32>
    %28 = arith.cmpi sle, %27, %26 : vector<16x16xi32>
    %29 = vector.extract_strided_slice %18 {offsets = [0, 0], sizes = [16, 32], strides = [1, 1]} : vector<16x128xbf16> to vector<16x32xbf16>
    %30 = vector.extract_strided_slice %20 {offsets = [0, 0], sizes = [16, 32], strides = [1, 1]} : vector<16x128xbf16> to vector<16x32xbf16>
    %31 = vector.extract_strided_slice %22 {offsets = [0, 0], sizes = [16, 32], strides = [1, 1]} : vector<16x128xbf16> to vector<16x32xbf16>
    %cst_15 = arith.constant dense<0.000000e+00> : vector<16x16xf32>
    %32 = tpu.matmul %29, %30, %cst_15 {dimension_numbers = #tpu.dot_dimension_numbers<[1], [1], [0], [0], [0, 0, 1, 0], [], []>} : vector<16x32xbf16>, vector<16x32xbf16>, vector<16x16xf32> -> vector<16x16xf32>
    %cst_16 = arith.constant -1.000000e+30 : f32
    %33 = vector.broadcast %cst_16 : f32 to vector<16x16xf32>
    %34 = arith.select %28, %32, %33 : vector<16x16xi1>, vector<16x16xf32>
    %cst_17 = arith.constant dense<0xFF800000> : vector<16xf32>
    %35 = vector.multi_reduction <maximumf>, %34, %cst_17 [1] : vector<16x16xf32> to vector<16xf32>
    %36 = vector.shape_cast %35 : vector<16xf32> to vector<16x1xf32>
    %37 = vector.broadcast %36 : vector<16x1xf32> to vector<16x16xf32>
    %38 = arith.subf %34, %37 : vector<16x16xf32>
    %39 = math.exp %38 : vector<16x16xf32>
    %cst_18 = arith.constant dense<0.000000e+00> : vector<16xf32>
    %40 = vector.multi_reduction <add>, %39, %cst_18 [1] : vector<16x16xf32> to vector<16xf32>
    %41 = vector.shape_cast %40 : vector<16xf32> to vector<16x1xf32>
    %42 = vector.broadcast %41 : vector<16x1xf32> to vector<16x16xf32>
    %43 = arith.divf %39, %42 : vector<16x16xf32>
    %44 = arith.truncf %43 : vector<16x16xf32> to vector<16x16xbf16>
    %cst_19 = arith.constant dense<0.000000e+00> : vector<16x32xf32>
    %45 = tpu.matmul %44, %31, %cst_19 {dimension_numbers = #tpu.dot_dimension_numbers<[1], [0], [0], [1], [0, 0, 1, 1], [], []>} : vector<16x16xbf16>, vector<16x32xbf16>, vector<16x32xf32> -> vector<16x32xf32>
    %46 = vector.extract_strided_slice %18 {offsets = [0, 32], sizes = [16, 32], strides = [1, 1]} : vector<16x128xbf16> to vector<16x32xbf16>
    %47 = vector.extract_strided_slice %20 {offsets = [0, 32], sizes = [16, 32], strides = [1, 1]} : vector<16x128xbf16> to vector<16x32xbf16>
    %48 = vector.extract_strided_slice %22 {offsets = [0, 32], sizes = [16, 32], strides = [1, 1]} : vector<16x128xbf16> to vector<16x32xbf16>
    %cst_20 = arith.constant dense<0.000000e+00> : vector<16x16xf32>
    %49 = tpu.matmul %46, %47, %cst_20 {dimension_numbers = #tpu.dot_dimension_numbers<[1], [1], [0], [0], [0, 0, 1, 0], [], []>} : vector<16x32xbf16>, vector<16x32xbf16>, vector<16x16xf32> -> vector<16x16xf32>
    %cst_21 = arith.constant -1.000000e+30 : f32
    %50 = vector.broadcast %cst_21 : f32 to vector<16x16xf32>
    %51 = arith.select %28, %49, %50 : vector<16x16xi1>, vector<16x16xf32>
    %cst_22 = arith.constant dense<0xFF800000> : vector<16xf32>
    %52 = vector.multi_reduction <maximumf>, %51, %cst_22 [1] : vector<16x16xf32> to vector<16xf32>
    %53 = vector.shape_cast %52 : vector<16xf32> to vector<16x1xf32>
    %54 = vector.broadcast %53 : vector<16x1xf32> to vector<16x16xf32>
    %55 = arith.subf %51, %54 : vector<16x16xf32>
    %56 = math.exp %55 : vector<16x16xf32>
    %cst_23 = arith.constant dense<0.000000e+00> : vector<16xf32>
    %57 = vector.multi_reduction <add>, %56, %cst_23 [1] : vector<16x16xf32> to vector<16xf32>
    %58 = vector.shape_cast %57 : vector<16xf32> to vector<16x1xf32>
    %59 = vector.broadcast %58 : vector<16x1xf32> to vector<16x16xf32>
    %60 = arith.divf %56, %59 : vector<16x16xf32>
    %61 = arith.truncf %60 : vector<16x16xf32> to vector<16x16xbf16>
    %cst_24 = arith.constant dense<0.000000e+00> : vector<16x32xf32>
    %62 = tpu.matmul %61, %48, %cst_24 {dimension_numbers = #tpu.dot_dimension_numbers<[1], [0], [0], [1], [0, 0, 1, 1], [], []>} : vector<16x16xbf16>, vector<16x32xbf16>, vector<16x32xf32> -> vector<16x32xf32>
    %63 = vector.extract_strided_slice %18 {offsets = [0, 64], sizes = [16, 32], strides = [1, 1]} : vector<16x128xbf16> to vector<16x32xbf16>
    %64 = vector.extract_strided_slice %20 {offsets = [0, 64], sizes = [16, 32], strides = [1, 1]} : vector<16x128xbf16> to vector<16x32xbf16>
    %65 = vector.extract_strided_slice %22 {offsets = [0, 64], sizes = [16, 32], strides = [1, 1]} : vector<16x128xbf16> to vector<16x32xbf16>
    %cst_25 = arith.constant dense<0.000000e+00> : vector<16x16xf32>
    %66 = tpu.matmul %63, %64, %cst_25 {dimension_numbers = #tpu.dot_dimension_numbers<[1], [1], [0], [0], [0, 0, 1, 0], [], []>} : vector<16x32xbf16>, vector<16x32xbf16>, vector<16x16xf32> -> vector<16x16xf32>
    %cst_26 = arith.constant -1.000000e+30 : f32
    %67 = vector.broadcast %cst_26 : f32 to vector<16x16xf32>
    %68 = arith.select %28, %66, %67 : vector<16x16xi1>, vector<16x16xf32>
    %cst_27 = arith.constant dense<0xFF800000> : vector<16xf32>
    %69 = vector.multi_reduction <maximumf>, %68, %cst_27 [1] : vector<16x16xf32> to vector<16xf32>
    %70 = vector.shape_cast %69 : vector<16xf32> to vector<16x1xf32>
    %71 = vector.broadcast %70 : vector<16x1xf32> to vector<16x16xf32>
    %72 = arith.subf %68, %71 : vector<16x16xf32>
    %73 = math.exp %72 : vector<16x16xf32>
    %cst_28 = arith.constant dense<0.000000e+00> : vector<16xf32>
    %74 = vector.multi_reduction <add>, %73, %cst_28 [1] : vector<16x16xf32> to vector<16xf32>
    %75 = vector.shape_cast %74 : vector<16xf32> to vector<16x1xf32>
    %76 = vector.broadcast %75 : vector<16x1xf32> to vector<16x16xf32>
    %77 = arith.divf %73, %76 : vector<16x16xf32>
    %78 = arith.truncf %77 : vector<16x16xf32> to vector<16x16xbf16>
    %cst_29 = arith.constant dense<0.000000e+00> : vector<16x32xf32>
    %79 = tpu.matmul %78, %65, %cst_29 {dimension_numbers = #tpu.dot_dimension_numbers<[1], [0], [0], [1], [0, 0, 1, 1], [], []>} : vector<16x16xbf16>, vector<16x32xbf16>, vector<16x32xf32> -> vector<16x32xf32>
    %80 = vector.extract_strided_slice %18 {offsets = [0, 96], sizes = [16, 32], strides = [1, 1]} : vector<16x128xbf16> to vector<16x32xbf16>
    %81 = vector.extract_strided_slice %20 {offsets = [0, 96], sizes = [16, 32], strides = [1, 1]} : vector<16x128xbf16> to vector<16x32xbf16>
    %82 = vector.extract_strided_slice %22 {offsets = [0, 96], sizes = [16, 32], strides = [1, 1]} : vector<16x128xbf16> to vector<16x32xbf16>
    %cst_30 = arith.constant dense<0.000000e+00> : vector<16x16xf32>
    %83 = tpu.matmul %80, %81, %cst_30 {dimension_numbers = #tpu.dot_dimension_numbers<[1], [1], [0], [0], [0, 0, 1, 0], [], []>} : vector<16x32xbf16>, vector<16x32xbf16>, vector<16x16xf32> -> vector<16x16xf32>
    %cst_31 = arith.constant -1.000000e+30 : f32
    %84 = vector.broadcast %cst_31 : f32 to vector<16x16xf32>
    %85 = arith.select %28, %83, %84 : vector<16x16xi1>, vector<16x16xf32>
    %cst_32 = arith.constant dense<0xFF800000> : vector<16xf32>
    %86 = vector.multi_reduction <maximumf>, %85, %cst_32 [1] : vector<16x16xf32> to vector<16xf32>
    %87 = vector.shape_cast %86 : vector<16xf32> to vector<16x1xf32>
    %88 = vector.broadcast %87 : vector<16x1xf32> to vector<16x16xf32>
    %89 = arith.subf %85, %88 : vector<16x16xf32>
    %90 = math.exp %89 : vector<16x16xf32>
    %cst_33 = arith.constant dense<0.000000e+00> : vector<16xf32>
    %91 = vector.multi_reduction <add>, %90, %cst_33 [1] : vector<16x16xf32> to vector<16xf32>
    %92 = vector.shape_cast %91 : vector<16xf32> to vector<16x1xf32>
    %93 = vector.broadcast %92 : vector<16x1xf32> to vector<16x16xf32>
    %94 = arith.divf %90, %93 : vector<16x16xf32>
    %95 = arith.truncf %94 : vector<16x16xf32> to vector<16x16xbf16>
    %cst_34 = arith.constant dense<0.000000e+00> : vector<16x32xf32>
    %96 = tpu.matmul %95, %82, %cst_34 {dimension_numbers = #tpu.dot_dimension_numbers<[1], [0], [0], [1], [0, 0, 1, 1], [], []>} : vector<16x16xbf16>, vector<16x32xbf16>, vector<16x32xf32> -> vector<16x32xf32>
    %97 = tpu.concatenate %45, %62, %79, %96 in 1 : vector<16x32xf32>, vector<16x32xf32>, vector<16x32xf32>, vector<16x32xf32> -> vector<16x128xf32>
    %98 = arith.truncf %97 : vector<16x128xf32> to vector<16x128xbf16>
    %c0_35 = arith.constant 0 : index
    %c0_36 = arith.constant 0 : index
    %99 = vector.load %arg8[%c0_35, %c0_36] : memref<128x128xbf16, #tpu.memory_space<vmem>>, vector<128x128xbf16>
    %cst_37 = arith.constant dense<0.000000e+00> : vector<16x128xf32>
    %100 = tpu.matmul %98, %99, %cst_37 {dimension_numbers = #tpu.dot_dimension_numbers<[1], [0], [0], [1], [0, 0, 1, 1], [], []>} : vector<16x128xbf16>, vector<128x128xbf16>, vector<16x128xf32> -> vector<16x128xf32>
    %101 = arith.addf %1, %100 : vector<16x128xf32>
    %c0_38 = arith.constant 0 : index
    %c0_39 = arith.constant 0 : index
    %102 = vector.load %arg9[%c0_38, %c0_39] : memref<1x128xf32, #tpu.memory_space<vmem>>, vector<1x128xf32>
    %103 = vector.broadcast %102 : vector<1x128xf32> to vector<16x128xf32>
    %104 = arith.addf %101, %103 : vector<16x128xf32>
    %cst_40 = arith.constant dense<0.000000e+00> : vector<16xf32>
    %105 = vector.multi_reduction <add>, %104, %cst_40 [1] : vector<16x128xf32> to vector<16xf32>
    %106 = vector.shape_cast %105 : vector<16xf32> to vector<16x1xf32>
    %cst_41 = arith.constant 1.280000e+02 : f32
    %107 = vector.broadcast %cst_41 : f32 to vector<16x1xf32>
    %108 = arith.divf %106, %107 : vector<16x1xf32>
    %109 = arith.mulf %104, %104 : vector<16x128xf32>
    %cst_42 = arith.constant dense<0.000000e+00> : vector<16xf32>
    %110 = vector.multi_reduction <add>, %109, %cst_42 [1] : vector<16x128xf32> to vector<16xf32>
    %111 = vector.shape_cast %110 : vector<16xf32> to vector<16x1xf32>
    %cst_43 = arith.constant 1.280000e+02 : f32
    %112 = vector.broadcast %cst_43 : f32 to vector<16x1xf32>
    %113 = arith.divf %111, %112 : vector<16x1xf32>
    %114 = arith.mulf %108, %108 : vector<16x1xf32>
    %115 = arith.subf %113, %114 : vector<16x1xf32>
    %cst_44 = arith.constant 9.99999974E-6 : f32
    %116 = vector.broadcast %cst_44 : f32 to vector<16x1xf32>
    %117 = arith.addf %115, %116 : vector<16x1xf32>
    %118 = math.rsqrt %117 : vector<16x1xf32>
    %119 = vector.broadcast %108 : vector<16x1xf32> to vector<16x128xf32>
    %120 = arith.subf %104, %119 : vector<16x128xf32>
    %121 = vector.broadcast %118 : vector<16x1xf32> to vector<16x128xf32>
    %122 = arith.mulf %120, %121 : vector<16x128xf32>
    %c0_45 = arith.constant 0 : index
    %c0_46 = arith.constant 0 : index
    %123 = vector.load %arg10[%c0_45, %c0_46] : memref<1x128xf32, #tpu.memory_space<vmem>>, vector<1x128xf32>
    %124 = vector.broadcast %123 : vector<1x128xf32> to vector<16x128xf32>
    %125 = arith.mulf %122, %124 : vector<16x128xf32>
    %c0_47 = arith.constant 0 : index
    %c0_48 = arith.constant 0 : index
    %126 = vector.load %arg11[%c0_47, %c0_48] : memref<1x128xf32, #tpu.memory_space<vmem>>, vector<1x128xf32>
    %127 = vector.broadcast %126 : vector<1x128xf32> to vector<16x128xf32>
    %128 = arith.addf %125, %127 : vector<16x128xf32>
    %c0_49 = arith.constant 0 : index
    %c0_50 = arith.constant 0 : index
    %c0_51 = arith.constant 0 : index
    %129 = vector.load %arg12[%c0_49, %c0_50, %c0_51] : memref<1x16x128xf32, #tpu.memory_space<vmem>>, vector<1x16x128xf32>
    %130 = vector.shape_cast %129 : vector<1x16x128xf32> to vector<16x128xf32>
    %131 = vector.shape_cast %128 : vector<16x128xf32> to vector<1x16x128xf32>
    tpu.vector_store %arg12[%c0_49, %c0_50, %c0_51], %131 {strides = array<i32>} : memref<1x16x128xf32, #tpu.memory_space<vmem>>, vector<1x16x128xf32>,
    return
  }
  func.func @transform_0(%arg0: i32, %arg1: i32) -> (i32, i32, i32) {
    %c0_i32 = arith.constant 0 : i32
    %c0_i32_0 = arith.constant 0 : i32
    return %arg0, %arg1, %c0_i32 : i32, i32, i32
  }
  func.func @transform_1(%arg0: i32, %arg1: i32) -> (i32, i32, i32) {
    %c0_i32 = arith.constant 0 : i32
    %c0_i32_0 = arith.constant 0 : i32
    %c0_i32_1 = arith.constant 0 : i32
    return %arg0, %c0_i32, %c0_i32_0 : i32, i32, i32
  }
  func.func @transform_2(%arg0: i32, %arg1: i32) -> (i32, i32) {
    %c0_i32 = arith.constant 0 : i32
    %c0_i32_0 = arith.constant 0 : i32
    %c0_i32_1 = arith.constant 0 : i32
    return %c0_i32, %c0_i32_0 : i32, i32
  }
  func.func @transform_3(%arg0: i32, %arg1: i32) -> (i32, i32) {
    %c0_i32 = arith.constant 0 : i32
    %c0_i32_0 = arith.constant 0 : i32
    %c0_i32_1 = arith.constant 0 : i32
    return %c0_i32, %c0_i32_0 : i32, i32
  }
  func.func @transform_4(%arg0: i32, %arg1: i32) -> (i32, i32) {
    %c0_i32 = arith.constant 0 : i32
    %c0_i32_0 = arith.constant 0 : i32
    %c0_i32_1 = arith.constant 0 : i32
    return %c0_i32, %c0_i32_0 : i32, i32
  }
  func.func @transform_5(%arg0: i32, %arg1: i32) -> (i32, i32) {
    %c0_i32 = arith.constant 0 : i32
    %c0_i32_0 = arith.constant 0 : i32
    %c0_i32_1 = arith.constant 0 : i32
    return %c0_i32, %c0_i32_0 : i32, i32
  }
  func.func @transform_6(%arg0: i32, %arg1: i32) -> (i32, i32) {
    %c0_i32 = arith.constant 0 : i32
    %c0_i32_0 = arith.constant 0 : i32
    %c0_i32_1 = arith.constant 0 : i32
    return %c0_i32, %c0_i32_0 : i32, i32
  }
  func.func @transform_7(%arg0: i32, %arg1: i32) -> (i32, i32) {
    %c0_i32 = arith.constant 0 : i32
    %c0_i32_0 = arith.constant 0 : i32
    %c0_i32_1 = arith.constant 0 : i32
    return %c0_i32, %c0_i32_0 : i32, i32
  }
  func.func @transform_8(%arg0: i32, %arg1: i32) -> (i32, i32) {
    %c0_i32 = arith.constant 0 : i32
    %c0_i32_0 = arith.constant 0 : i32
    %c0_i32_1 = arith.constant 0 : i32
    return %c0_i32, %c0_i32_0 : i32, i32
  }
  func.func @transform_9(%arg0: i32, %arg1: i32) -> (i32, i32) {
    %c0_i32 = arith.constant 0 : i32
    %c0_i32_0 = arith.constant 0 : i32
    %c0_i32_1 = arith.constant 0 : i32
    return %c0_i32, %c0_i32_0 : i32, i32
  }
  func.func @transform_10(%arg0: i32, %arg1: i32) -> (i32, i32, i32) {
    %c0_i32 = arith.constant 0 : i32
    %c0_i32_0 = arith.constant 0 : i32
    return %arg0, %arg1, %c0_i32 : i32, i32, i32
  }
}

</mosaic_0001>

<bundles_post_ra>
// kernel: decoder_layer.4
= control target key start
LH: loop header
LB: loop body
LE: loop exit
PB: predicated region body
PF: predicated region fallthrough
CT: control target
= control target key end

     0   :  { %15 = vsyncpa [#allocation3], 0  ;;  %s2521_s0 = inlined_call_operand.vmem [shape: f32[2,16,128], index: 0, kind: input, shape index: {}]   ;;  %s2522_s1 = inlined_call_operand.vmem [shape: f32[2,32,128], index: 1, kind: input, shape index: {}]   ;;  %s2523_s2 = inlined_call_operand.vmem [shape: bf16[128,128], index: 2, kind: input, shape index: {}]   ;;  %s2524_s3 = inlined_call_operand.hbm [shape: f32[1,128], index: 3, kind: input, shape index: {}]   ;;  %s2525_s4 = inlined_call_operand.vmem [shape: bf16[128,256], index: 4, kind: input, shape index: {}]   ;;  %s2526_s5 = inlined_call_operand.vmem [shape: f32[1,256], index: 5, kind: input, shape index: {}]   ;;  %s2527_s6 = inlined_call_operand.hbm [shape: bf16[128,128], index: 6, kind: input, shape index: {}]   ;;  %s2528_s7 = inlined_call_operand.hbm [shape: f32[1,128], index: 7, kind: input, shape index: {}]   ;;  %s2529_s8 = inlined_call_operand.vmem [shape: f32[1,128], index: 8, kind: input, shape index: {}]   ;;  %s2530_s9 = inlined_call_operand.vmem [shape: f32[1,128], index: 9, kind: input, shape index: {}]   ;;  %s2531_s10 = inlined_call_operand.vmem [shape: f32[2,16,128], index: 10, kind: output, shape index: {}]  }
   0x1   :  { %16 = vsyncpa [#allocation5], 0  ;;  %s2133_s13 = smov 0   ;;  %s2135_s14 = smov 0  }
   0x2   :  { %s2137_s15 = smov 0  }
   0x3 LB: > { %2537 = sst [smem:[#allocation9_spill]] %s2061_s14  ;;  %s2067_s16 = smov [#allocation4]   ;;  %s2065_s15 = sphi %s2137_s15, %s22_s15   ;;  %s2061_s14 = sphi %s2135_s14, %s2548_s14   ;;  %s2057_s13 = sphi %s2133_s13, %s2547_s13  }
   0x4   : > { %2538 = sst [smem:[#allocation10_spill]] %s2065_s15  ;;  %s321_s17 = sshll.u32 %s2067_s16, 4  ;;  %s2155_s17 = int_to_ptr.vmem [resolvable:$true] %s321_s17 }
   0x5   : > { %s1585_s18 = sadd.s32 4294967295, %s2065_s15   ;;  %p1587_p0 = scmp.ge.s32.totalorder %s2065_s15, 1 }
   0x6   : > { %p289_p1 = scmp.lt.s32.totalorder %s2065_s15, 3  ;;  %p2151_p2 = scmp.eq.s32.totalorder %s1585_s18, 0 }
   0x7   : > { %s34_s22 = sadd.s32 1, %s2061_s14  ;;  %s2068_s24 = smov [#allocation2]  }
   0x8   : > { %s2539_s19 = scalar_select %p2151_p2, 1, 0 }
   0x9   : > { %p2157_p3 = pnand %p1587_p0, %p289_p1  ;;  %p2170_p6 = scmp.ge.s32.totalorder %s34_s22, 2 }
   0xa   : > { %s305_s25 = sshll.u32 %s2068_s24, 4  ;;  %s1951_s28 = scalar_lea.hbm %s2527_s6, 1024  ;;  %s306_s25 = int_to_ptr.vmem [resolvable:$true] %s305_s25 }
   0xb   : > { %s2540_s20 = scalar_select %p2157_p3, 1, 0 }
   0xc   : > { %p1809_p4 = pneg %p2157_p3  ;;  %p1952_p7 = scmp.ne.s32.totalorder %s2527_s6, %s1951_s28 }
   0xd   : > { %p1958_p11 = scmp.lt.u32.totalorder %s1951_s28, %s2527_s6 }
   0xe   : > { %p2165_p5 = pnand %p2151_p2, %p1809_p4 }
  0x10   : > { %p2182_p8 = pneg %p2165_p5 }
  0x12   : > { %p1954_p9 = pnand %p2182_p8, %p1952_p7 }
  0x14   : > { %p1955_p10 = pneg %p1954_p9 }
  0x16   : > { %p1960_p12 = pnand %p1958_p11, %p1955_p10 }
  0x18   : > { %1963 = shalt.err (!%p1960_p12)
}
  0x19   : > { %s1964_s18 = scalar_lea.vmem %s2155_s17, 1024  ;;  %p1972_p4 = scmp.lt.s32.totalorder %s2155_s17, %s2155_s17 }
  0x1a   : > { %p1965_p13 = scmp.ne.s32.totalorder %s2155_s17, %s1964_s18  ;;  %p1973_p2 = scmp.lt.s32.totalorder %s1964_s18, %s1964_s18 }
  0x1c   : > { %p1967_p0 = pnand %p1965_p13, %p2182_p8  ;;  %p1974_p7 = por %p1973_p2, %p1972_p4 }
  0x1e   : > { %p1968_p1 = pneg %p1967_p0 }
  0x20   : > { %p1975_p9 = pnand %p1974_p7, %p1968_p1 }
  0x22   : > { %1978 = shalt.err (!%p1975_p9)
}
  0x23   : > { %s2069_s24 = smov 64   ;;  %s2070_s26 = smov 4  }
  0x24   : > { %1815 = dma.hbm_to_vmem [thread:$0]  (!%p2165_p5), %s2527_s6, 1024, %s2155_s17, [#allocation5], %s2069_s24, %s2069_s24, %s2070_s26  }
  0x25   : > { %s2550_s22 = smov (%p2170_p6, %s34_s22), 0  ;;  %s1979_s12 = scalar_lea.hbm %s2524_s3, 16 }
  0x26   : > { %p1980_p2 = scmp.ne.s32.totalorder %s2524_s3, %s1979_s12  ;;  %p1986_p12 = scmp.lt.u32.totalorder %s1979_s12, %s2524_s3 }
  0x28   : > { %p1982_p10 = pnand %p1980_p2, %p2182_p8 }
  0x2a   : > { %p1983_p11 = pneg %p1982_p10 }
  0x2c   : > { %p1988_p13 = pnand %p1986_p12, %p1983_p11 }
  0x2e   : > { %1991 = shalt.err (!%p1988_p13)
}
  0x2f   : > { %s1992_s17 = scalar_lea.vmem %s306_s25, 16  ;;  %s1999_s23 = scalar_lea.vmem %s306_s25, 32 }
  0x30   : > { %p1993_p6 = scmp.ne.s32.totalorder %s306_s25, %s1992_s17  ;;  %p2000_p4 = scmp.lt.s32.totalorder %s306_s25, %s306_s25 }
  0x31   : > { %p2001_p7 = scmp.lt.s32.totalorder %s1999_s23, %s1992_s17 }
  0x32   : > { %p1995_p0 = pnand %p1993_p6, %p2182_p8 }
  0x33   : > { %p2002_p9 = por %p2001_p7, %p2000_p4 }
  0x34   : > { %p1996_p1 = pneg %p1995_p0 }
  0x36   : > { %p2003_p3 = pnand %p2002_p9, %p1996_p1 }
  0x38   : > { %2006 = shalt.err (!%p2003_p3)
}
  0x39   : > { %1812 = dma.hbm_to_vmem [thread:$0]  (!%p2165_p5), %s2524_s3, 16, %s306_s25, [#allocation3]  }
  0x3a   : > { %s2071_s14 = smov [#allocation6]   ;;  %s2007_s29 = scalar_lea.hbm %s2528_s7, 16 }
  0x3b   : > { %s335_s15 = sshll.u32 %s2071_s14, 4  ;;  %p2008_p2 = scmp.ne.s32.totalorder %s2528_s7, %s2007_s29  ;;  %s336_s15 = int_to_ptr.vmem [resolvable:$true] %s335_s15 }
  0x3c   : > { %p2014_p11 = scmp.lt.u32.totalorder %s2007_s29, %s2528_s7 }
  0x3d   : > { %p2010_p3 = pnand %p2008_p2, %p2182_p8 }
  0x3f   : > { %p2011_p10 = pneg %p2010_p3 }
  0x41   : > { %p2016_p12 = pnand %p2014_p11, %p2011_p10 }
  0x43   : > { %2019 = shalt.err (!%p2016_p12)
}
  0x44   : > { %s2020_s25 = scalar_lea.vmem %s336_s15, 16  ;;  %s2027_s17 = scalar_lea.vmem %s336_s15, 32 }
  0x45   : > { %p2021_p13 = scmp.ne.s32.totalorder %s336_s15, %s2020_s25  ;;  %p2028_p1 = scmp.lt.s32.totalorder %s336_s15, %s336_s15 }
  0x46   : > { %p2029_p4 = scmp.lt.s32.totalorder %s2027_s17, %s2020_s25 }
  0x47   : > { %p2023_p6 = pnand %p2021_p13, %p2182_p8 }
  0x48   : > { %p2030_p7 = por %p2029_p4, %p2028_p1 }
  0x49   : > { %p2024_p0 = pneg %p2023_p6 }
  0x4b   : > { %p2031_p9 = pnand %p2030_p7, %p2024_p0 }
  0x4d   : > { %2034 = shalt.err (!%p2031_p9)
}
  0x4e   : > { %1818 = dma.hbm_to_vmem [thread:$0]  (!%p2165_p5), %s2528_s7, 16, %s336_s15, [#allocation5]  }
  0x4f   : > { %p2544_p2 = scmp.ne.s32.totalorder %s2540_s20, 0 }
  0x50   : > { %p2545_p3 = scmp.ne.s32.totalorder (!%p2544_p2), %s2539_s19, 0 }
  0x51   : > { %375 = sbr.rel (%p2544_p2) target bundleno = 3262 (0xcbe), region = 60 }
  0x58   : > { %2048 = dma.done.wait (%p2545_p3), [#allocation3], 16  }
  0x59   : > { %2050 = vsyncadd (%p2545_p3), [#allocation3], 4294967280 }
  0x5a   : > { %2052 = dma.done.wait (%p2545_p3), [#allocation5], 1040  }
  0x5b   : > { %2054 = vsyncadd (%p2545_p3), [#allocation5], 4294966256  ;;  %v2072_v0 = vmov 0.0   ;;  %v2073_v1 = vmov 0   ;;  %vm2074_vm0 = vmmov 0   ;;  %v1884_v7 = vld [vmem:[%s2523_s2] sm:$0xff]   ;;  %v601_v35 = vlaneseq }
  0x5c   : > { %1693 = vmatprep.subr.bf16.mxu0 %v2072_v0  ;;  %723 = vmatprep.mubr.bf16.mxu1 %v2073_v1  ;;  %v1875_v2 = vld [vmem:[%s2525_s4 + $0x4] ss:$8 sps:$4 sm:$0xff]   ;;  %v1877_v3 = vld [vmem:[%s2525_s4] ss:$8 sps:$4 sm:$0xff]   ;;  %v1878_v4 = vld [vmem:[%s2525_s4 + $0x14] ss:$8 sps:$4 sm:$0xff]  }
  0x5d   : > { %1709 = vmatprep.mubr.msk.bf16.mxu0 %vm2074_vm0, %v2072_v0  ;;  %691 = vmatprep.subr.bf16.mxu1 %v1875_v2  ;;  %v1880_v5 = vld [vmem:[%s2525_s4 + $0x10] ss:$8 sps:$4 sm:$0xff]   ;;  %v1881_v6 = vld [vmem:[%s2525_s4 + $0x24] ss:$8 sps:$4 sm:$0xff]   ;;  %v1883_v8 = vld [vmem:[%s2525_s4 + $0x20] ss:$8 sps:$4 sm:$0xff]  }
  0x5e   : > { %692 = vmatpush1.bf16.msra.mxu1 %v1877_v3  ;;  %1694 = vmatpush3.bf16.msra.mxu0 %v1884_v7  ;;  %v1888_v9 = vld [vmem:[%s2523_s2 + $0x8] sm:$0xff]   ;;  %v1885_v10 = vld [vmem:[%s2525_s4 + $0x34] ss:$8 sps:$4 sm:$0xff]   ;;  %v1887_v12 = vld [vmem:[%s2525_s4 + $0x30] ss:$8 sps:$4 sm:$0xff]   ;;  %p435_p5 = scmp.lt.s32.totalorder %s2057_s13, 1 }
  0x5f   : > { %693 = vmatprep.subr.bf16.mxu1 %v1878_v4  ;;  %1695 = vmatprep.subr.bf16.mxu0 %v2072_v0  ;;  %v1892_v11 = vld [vmem:[%s2523_s2 + $0x10] sm:$0xff]   ;;  %v1889_v13 = vld [vmem:[%s2525_s4 + $0x44] ss:$8 sps:$4 sm:$0xff]   ;;  %v1896_v14 = vld [vmem:[%s2523_s2 + $0x18] sm:$0xff]   ;;  %v602_v36 = vshrl.u32 %v601_v35, 7  ;;  %vm749_vm1 = vcmask 261120  }
  0x60   : > { %v1891_v15 = vld [vmem:[%s2525_s4 + $0x40] ss:$8 sps:$4 sm:$0xff]   ;;  %v1893_v16 = vld [vmem:[%s2525_s4 + $0x54] ss:$8 sps:$4 sm:$0xff]   ;;  %s2552_s13 = smov (!%p435_p5, %s2057_s13), 1  ;;  %s2075_s14 = smov 96  }
  0x61   : > { %v1900_v17 = vld [vmem:[%s2523_s2 + $0x20] sm:$0xff]   ;;  %v1895_v18 = vld [vmem:[%s2525_s4 + $0x50] ss:$8 sps:$4 sm:$0xff]   ;;  %v1904_v20 = vld [vmem:[%s2523_s2 + $0x28] sm:$0xff]   ;;  %s1649_s11 = sshll.u32 %s2552_s13, 5  ;;  %s1648_s26 = sshll.u32 %s2552_s13, 4 }
  0x62   : > { %694 = vmatpush1.bf16.msra.mxu1 %v1880_v5  ;;  %1696 = vmatpush3.bf16.msra.mxu0 %v1888_v9  ;;  %v1897_v19 = vld [vmem:[%s2525_s4 + $0x64] ss:$8 sps:$4 sm:$0xff]   ;;  %v1899_v21 = vld [vmem:[%s2525_s4 + $0x60] ss:$8 sps:$4 sm:$0xff]   ;;  %v1901_v22 = vld [vmem:[%s2525_s4 + $0x74] ss:$8 sps:$4 sm:$0xff]   ;;  %s448_s30 = scalar_lea.vmem %s2522_s1, %s1649_s11  ;;  %s442_s24 = scalar_lea.vmem %s2521_s0, %s1648_s26 }
  0x63   : > { %695 = vmatprep.subr.bf16.mxu1 %v1881_v6  ;;  %1697 = vmatprep.subr.bf16.mxu0 %v2072_v0  ;;  %v1905_v23 = vld [vmem:[%s2523_s2 + $0x30] sm:$0xff]   ;;  %v462_v25 = vld [vmem:[%s448_s30] sm:$0xff]  ;;  %v463_v26 = vld [vmem:[%s448_s30 + $0x8] sm:$0xff]  ;;  %v603_v37 = vsub.s32 0, %v602_v36  ;;  %v607_v39 = vsub.s32 1, %v602_v36  ;;  %s2076_s15 = smov 64   ;;  %s457_s25 = scalar_lea.vmem %s2531_s10, %s1648_s26 }
  0x64   : > { %v1903_v24 = vld [vmem:[%s2525_s4 + $0x70] ss:$8 sps:$4 sm:$0xff]   ;;  %v581_v27 = vpack.c.bf16 %v463_v26, %v462_v25  ;;  %v2349_v29 = vld [vmem:[%s442_s24] sm:$0xff]  ;;  %v2351_v30 = vld [vmem:[%s442_s24 + $0x8] sm:$0xff]  ;;  %s2077_s27 = smov 32   ;;  %vm1285_vm2 = vcmask 523264  }
  0x65   : > { %v1906_v28 = vld [vmem:[%s2523_s2 + $0x38] sm:$0xff]   ;;  %v466_v31 = vpack.c.bf16 %v2351_v30, %v2349_v29  ;;  %v464_v32 = vld [vmem:[%s448_s30 + $0x10] sm:$0xff]  ;;  %v599_v38 = vld [vmem:[%s2526_s5] sm:$0x3]  ;;  %vm1288_vm3 = vcmask 785408  }
  0x66   : > { %696 = vmatpush1.bf16.msra.mxu1 %v1883_v8  ;;  %1698 = vmatpush3.bf16.msra.mxu0 %v1892_v11  ;;  %v465_v33 = vld [vmem:[%s448_s30 + $0x18] sm:$0xff]  ;;  %v604_v40 = vrot.slane %v599_v38, %v603_v37  ;;  %v608_v42 = vrot.slane %v599_v38, %v607_v39  ;;  %v1602_v44 = vld [vmem:[#allocation2] ss:$0 sm:$0xff] }
  0x67   : > { %697 = vmatprep.subr.bf16.mxu1 %v1885_v10  ;;  %1699 = vmatprep.subr.bf16.mxu0 %v2072_v0  ;;  %v582_v34 = vpack.c.bf16 %v465_v33, %v464_v32 }
  0x6a   : > { %698 = vmatpush1.bf16.msra.mxu1 %v1887_v12  ;;  %1700 = vmatpush3.bf16.msra.mxu0 %v1896_v14 }
  0x6b   : > { %699 = vmatprep.subr.bf16.mxu1 %v1889_v13  ;;  %1701 = vmatprep.subr.bf16.mxu0 %v2072_v0 }
  0x6e   : > { %700 = vmatpush1.bf16.msra.mxu1 %v1891_v15  ;;  %1702 = vmatpush3.bf16.msra.mxu0 %v1900_v17 }
  0x6f   : > { %701 = vmatprep.subr.bf16.mxu1 %v1893_v16  ;;  %1703 = vmatprep.subr.bf16.mxu0 %v2072_v0 }
  0x72   : > { %702 = vmatpush1.bf16.msra.mxu1 %v1895_v18  ;;  %1704 = vmatpush3.bf16.msra.mxu0 %v1904_v20 }
  0x73   : > { %703 = vmatprep.subr.bf16.mxu1 %v1897_v19  ;;  %1705 = vmatprep.subr.bf16.mxu0 %v2072_v0 }
  0x76   : > { %704 = vmatpush1.bf16.msra.mxu1 %v1899_v21  ;;  %1706 = vmatpush3.bf16.msra.mxu0 %v1905_v23 }
  0x77   : > { %705 = vmatprep.subr.bf16.mxu1 %v1901_v22  ;;  %1707 = vmatprep.subr.bf16.mxu0 %v2072_v0 }
  0x7a   : > { %706 = vmatpush1.bf16.msra.mxu1 %v1903_v24  ;;  %1708 = vmatpush3.bf16.msra.mxu0 %v1906_v28 }
  0x7b   : > { %1737 = vmatprep.subr.bf16.mxu1 %v2072_v0  ;;  %1713 = vmatprep.subr.bf16.mxu0 %v2072_v0 }
  0x7d   : > { %724 = vmatmul.mubr.bf16.vlgmr.msra.gmra.mrb[0].mxu1 %v581_v27  ;;  %1710 = vmatmul.mubr.bf16.vlgmr.msra.gmra.mrb[0].mxu0 %v466_v31 }
  0x7e   : > { %733 = vmatprep.mubr.bf16.mxu1 %v2073_v1  ;;  %1717 = vmatprep.mubr.msk.bf16.mxu0 %vm2074_vm0, %v2072_v0 }
  0x85   : > { %734 = vmatmul.mubr.bf16.gmra.mrb[4].mxu1 %v582_v34 }
  0x86   : > { %1741 = vmatprep.mubr.msk.bf16.mxu1 %vm2074_vm0, %v2072_v0 }
 0x150   : > { %v725_v41 = vpop.f32.mrb[0].mxu1  ;;  %v572_v49 = vpop.f32.mrb[0].mxu0 }
 0x151   : > { %v727_v43 = vpop.f32.mrb[1].mxu1  ;;  %v726_v46 = vadd.f32 %v725_v41, %v604_v40  ;;  %v573_v52 = vadd.f32 %v1602_v44, %v572_v49  ;;  %v1711_v53 = vpop.f32.mrb[1].mxu0 }
 0x152   : > { %v729_v45 = vpop.f32.mrb[2].mxu1  ;;  %v728_v50 = vadd.f32 %v727_v43, %v608_v42  ;;  %v575_v55 = vpop.f32.mrb[2].mxu0 }
 0x153   : > { %v730_v47 = vadd.f32 %v729_v45, %v604_v40  ;;  %v731_v48 = vpop.f32.mrb[3].mxu1  ;;  %v579_v57 = vmul.f32 0.17677669, %v573_v52  ;;  %v576_v58 = vadd.f32 %v1602_v44, %v575_v55  ;;  %v1712_v59 = vpop.f32.mrb[3].mxu0 }
 0x154   : > { %v732_v51 = vadd.f32 %v731_v48, %v608_v42 }
 0x155   : > { %v2366_v54 = vpack.c.bf16 %v730_v47, %v726_v46  ;;  %v580_v62 = vmul.f32 0.17677669, %v576_v58 }
 0x156   : > { %v2368_v56 = vpack.c.bf16 %v732_v51, %v728_v50 }
 0x157   : > { %v754_v60 = vsel %vm749_vm1, %v2366_v54, 0  ;;  %v2373_v2 = vpack.c.bf16 %v580_v62, %v579_v57 }
 0x158   : > { %v735_v61 = vpop.f32.mrb[4].mxu1  ;;  %1714 = vmatpush3.bf16.xpose.msra.mxu0 %v754_v60 }
 0x159   : > { %v737_v63 = vpop.f32.mrb[5].mxu1  ;;  %1715 = vmatprep.subr.bf16.mxu0 %v2072_v0  ;;  %v736_v3 = vadd.f32 %v735_v61, %v604_v40 }
 0x15a   : > { %v739_v1 = vpop.f32.mrb[6].mxu1  ;;  %v738_v6 = vadd.f32 %v737_v63, %v608_v42 }
 0x15b   : > { %v740_v4 = vadd.f32 %v739_v1, %v604_v40  ;;  %v741_v5 = vpop.f32.mrb[7].mxu1 }
 0x15c   : > { %v742_v7 = vadd.f32 %v741_v5, %v608_v42 }
 0x15d   : > { %v2375_v8 = vpack.c.bf16 %v740_v4, %v736_v3 }
 0x15e   : > { %v2377_v9 = vpack.c.bf16 %v742_v7, %v738_v6 }
 0x15f   : > { %v757_v10 = vsel %vm749_vm1, %v2375_v8, 0 }
 0x160   : > { %1716 = vmatpush3.bf16.xpose.msra.mxu0 %v757_v10 }
 0x161   : > { %1721 = vmatprep.subr.bf16.mxu0 %v2072_v0 }
 0x167   : > { %1718 = vmatmul.mubr.msk.bf16.vlgmr.msra.gmra.mrb[4].mxu0 %vm749_vm1, %v2373_v2 }
 0x168   : > { %1722 = vmatpush3.bf16.msra.mxu0 %v2368_v56  ;;  %1725 = vmatprep.mubr.msk.bf16.mxu0 %vm2074_vm0, %v2072_v0 }
 0x169   : > { %1723 = vmatprep.subr.bf16.mxu0 %v2072_v0 }
 0x16c   : > { %1724 = vmatpush3.bf16.msra.mxu0 %v2377_v9 }
 0x16d   : > { %1729 = vmatprep.subr.bf16.mxu0 %v2072_v0 }
 0x23a   : > { %v793_v11 = vpop.f32.mrb[4].mxu0 }
 0x23b   : > { %v1719_v12 = vpop.f32.mrb[5].mxu0  ;;  %v800_v13 = vsel %vm749_vm1, %v793_v11, -inf }
 0x23c   : > { %801 = vmax.xlane.f32.xlu0 %v800_v13  ;;  %v796_v14 = vpop.f32.mrb[6].mxu0 }
 0x23d   : > { %v1720_v15 = vpop.f32.mrb[7].mxu0  ;;  %v803_v16 = vsel %vm749_vm1, %v796_v14, -inf }
 0x240   : > { %804 = vmax.xlane.f32.xlu0 %v803_v16 }
 0x256   : > { %872 = vrot.lane.b32.xlu0 %v2366_v54, %s2075_s14 }
 0x2c9   : > { %v802_v17 = vpop.xlane.xlu0 %801 }
 0x2ca   : > { %v806_v18 = vsub.f32 %v793_v11, %v802_v17 }
 0x2cc   : > { %v808_v19 = vmul.f32 1.442695, %v806_v18 }
 0x2cd   : > { %v805_v20 = vpop.xlane.xlu0 %804 }
 0x2ce   : > { %1915 = vpow2.f32 %v808_v19  ;;  %v807_v21 = vsub.f32 %v796_v14, %v805_v20 }
 0x2d0   : > { %v810_v22 = vmul.f32 1.442695, %v807_v21 }
 0x2d1   : > { %v873_v35 = vpop.permute.xlu0 %872 }
 0x2d2   : > { %1917 = vpow2.f32 %v810_v22  ;;  %v880_v37 = vsel %vm749_vm1, %v873_v35, 0 }
 0x2d8   : > { %v1916_v23 = vpop.eup %1915 }
 0x2d9   : > { %v812_v24 = vsel %vm749_vm1, %v1916_v23, 0.0 }
 0x2da   : > { %813 = vadd.xlane.f32.xlu1 %v812_v24 }
 0x2dc   : > { %v1918_v25 = vpop.eup %1917 }
 0x2dd   : > { %v815_v26 = vsel %vm749_vm1, %v1918_v25, 0.0 }
 0x2de   : > { %816 = vadd.xlane.f32.xlu1 %v815_v26 }
 0x2ef   : > { %874 = vrot.lane.b32.xlu1 %v2375_v8, %s2075_s14 }
 0x2f3   : > { %868 = vrot.lane.b32.xlu1 %v2373_v2, %s2075_s14 }
 0x367   : > { %v814_v27 = vpop.xlane.xlu1 %813 }
 0x368   : > { %1919 = vrcp.f32 %v814_v27 }
 0x36b   : > { %v817_v28 = vpop.xlane.xlu1 %816 }
 0x36c   : > { %1921 = vrcp.f32 %v817_v28 }
 0x36f   : > { %v875_v38 = vpop.permute.xlu1 %874 }
 0x370   : > { %v883_v39 = vsel %vm749_vm1, %v875_v38, 0 }
 0x372   : > { %v1920_v31 = vpop.eup %1919 }
 0x373   : > { %v819_v33 = vmul.f32 %v1920_v31, %v1916_v23  ;;  %v869_v40 = vpop.permute.xlu1 %868 }
 0x376   : > { %v1922_v32 = vpop.eup %1921 }
 0x377   : > { %v821_v34 = vmul.f32 %v1922_v32, %v1918_v25 }
 0x379   : > { %v822_v36 = vpack.c.bf16 %v821_v34, %v819_v33 }
 0x37b   : > { %1726 = vmatmul.mubr.msk.bf16.vlgmr.msra.gmra.mrb[8].mxu0 %vm749_vm1, %v822_v36 }
 0x37c   : > { %1730 = vmatpush3.bf16.xpose.msra.mxu0 %v880_v37  ;;  %1733 = vmatprep.mubr.msk.bf16.mxu0 %vm2074_vm0, %v2072_v0 }
 0x37d   : > { %1731 = vmatprep.subr.bf16.mxu0 %v2072_v0 }
 0x384   : > { %1732 = vmatpush3.bf16.xpose.msra.mxu0 %v883_v39 }
 0x385   : > { %1753 = vmatprep.subr.bf16.mxu0 %v2072_v0 }
 0x38b   : > { %1734 = vmatmul.mubr.msk.bf16.vlgmr.msra.gmra.mrb[12].mxu0 %vm749_vm1, %v869_v40 }
 0x38c   : > { %1757 = vmatprep.mubr.msk.bf16.mxu0 %vm2074_vm0, %v2072_v0 }
 0x44e   : > { %v2410_v41 = vpop.f32.mrb[8].mxu0 }
 0x44f   : > { %v1727_v42 = vpop.f32.mrb[9].mxu0 }
 0x450   : > { %v2412_v43 = vpop.f32.mrb[10].mxu0 }
 0x451   : > { %v1728_v44 = vpop.f32.mrb[11].mxu0 }
 0x45e   : > { %v919_v45 = vpop.f32.mrb[12].mxu0 }
 0x45f   : > { %v1735_v46 = vpop.f32.mrb[13].mxu0  ;;  %v926_v47 = vsel %vm749_vm1, %v919_v45, -inf }
 0x460   : > { %927 = vmax.xlane.f32.xlu1 %v926_v47  ;;  %v922_v48 = vpop.f32.mrb[14].mxu0 }
 0x461   : > { %v1736_v49 = vpop.f32.mrb[15].mxu0  ;;  %v929_v50 = vsel %vm749_vm1, %v922_v48, -inf }
 0x462   : > { %930 = vmax.xlane.f32.xlu0 %v929_v50 }
 0x471   : > { %951 = vrot.lane.b32.xlu1 %v2368_v56, %s2075_s14 }
 0x475   : > { %1003 = vrot.lane.b32.xlu1 %v2366_v54, %s2076_s15 }
 0x479   : > { %1005 = vrot.lane.b32.xlu1 %v2375_v8, %s2076_s15 }
 0x47d   : > { %1001 = vrot.lane.b32.xlu1 %v2373_v2, %s2076_s15 }
 0x4ed   : > { %v928_v51 = vpop.xlane.xlu1 %927 }
 0x4ee   : > { %v932_v52 = vsub.f32 %v919_v45, %v928_v51 }
 0x4ef   : > { %v931_v53 = vpop.xlane.xlu0 %930 }
 0x4f0   : > { %v934_v55 = vmul.f32 1.442695, %v932_v52  ;;  %v933_v57 = vsub.f32 %v922_v48, %v931_v53 }
 0x4f1   : > { %v952_v58 = vpop.permute.xlu1 %951 }
 0x4f2   : > { %1923 = vpow2.f32 %v934_v55  ;;  %v936_v59 = vmul.f32 1.442695, %v933_v57  ;;  %1738 = vmatpush3.bf16.msra.mxu1 %v952_v58 }
 0x4f3   : > { %1739 = vmatprep.subr.bf16.mxu1 %v2072_v0 }
 0x4f4   : > { %1925 = vpow2.f32 %v936_v59 }
 0x4f5   : > { %v1004_v11 = vpop.permute.xlu1 %1003 }
 0x4f6   : > { %v1011_v13 = vsel %vm749_vm1, %v1004_v11, 0 }
 0x4f9   : > { %v1006_v14 = vpop.permute.xlu1 %1005 }
 0x4fa   : > { %v1014_v15 = vsel %vm749_vm1, %v1006_v14, 0 }
 0x4fc   : > { %v1924_v60 = vpop.eup %1923 }
 0x4fd   : > { %v938_v61 = vsel %vm749_vm1, %v1924_v60, 0.0  ;;  %v1002_v16 = vpop.permute.xlu1 %1001 }
 0x4fe   : > { %v1926_v62 = vpop.eup %1925  ;;  %939 = vadd.xlane.f32.xlu0 %v938_v61 }
 0x4ff   : > { %v941_v63 = vsel %vm749_vm1, %v1926_v62, 0.0 }
 0x502   : > { %942 = vadd.xlane.f32.xlu0 %v941_v63 }
 0x518   : > { %953 = vrot.lane.b32.xlu0 %v2377_v9, %s2075_s14 }
 0x58b   : > { %v940_v1 = vpop.xlane.xlu0 %939 }
 0x58c   : > { %1927 = vrcp.f32 %v940_v1 }
 0x58f   : > { %v943_v3 = vpop.xlane.xlu0 %942 }
 0x590   : > { %1929 = vrcp.f32 %v943_v3 }
 0x593   : > { %v954_v4 = vpop.permute.xlu0 %953 }
 0x594   : > { %1740 = vmatpush3.bf16.msra.mxu1 %v954_v4 }
 0x595   : > { %1745 = vmatprep.subr.bf16.mxu1 %v2072_v0 }
 0x596   : > { %v1928_v5 = vpop.eup %1927 }
 0x597   : > { %v945_v7 = vmul.f32 %v1928_v5, %v1924_v60 }
 0x59a   : > { %v1930_v6 = vpop.eup %1929 }
 0x59b   : > { %v947_v10 = vmul.f32 %v1930_v6, %v1926_v62 }
 0x59d   : > { %v948_v12 = vpack.c.bf16 %v947_v10, %v945_v7 }
 0x59f   : > { %1742 = vmatmul.mubr.msk.bf16.vlgmr.msra.gmra.mrb[8].mxu1 %vm749_vm1, %v948_v12 }
 0x5a0   : > { %1746 = vmatpush3.bf16.xpose.msra.mxu1 %v1011_v13  ;;  %1749 = vmatprep.mubr.msk.bf16.mxu1 %vm2074_vm0, %v2072_v0 }
 0x5a1   : > { %1747 = vmatprep.subr.bf16.mxu1 %v2072_v0 }
 0x5a8   : > { %1748 = vmatpush3.bf16.xpose.msra.mxu1 %v1014_v15 }
 0x5a9   : > { %1769 = vmatprep.subr.bf16.mxu1 %v2072_v0 }
 0x5af   : > { %1750 = vmatmul.mubr.msk.bf16.vlgmr.msra.gmra.mrb[12].mxu1 %vm749_vm1, %v1002_v16 }
 0x5b0   : > { %1773 = vmatprep.mubr.msk.bf16.mxu1 %vm2074_vm0, %v2072_v0 }
 0x672   : > { %v2440_v17 = vpop.f32.mrb[8].mxu1 }
 0x673   : > { %v1743_v18 = vpop.f32.mrb[9].mxu1 }
 0x674   : > { %v2442_v19 = vpop.f32.mrb[10].mxu1 }
 0x675   : > { %v1860_v20 = vpack.i.bf16 %v2442_v19, %v2440_v17  ;;  %v1744_v21 = vpop.f32.mrb[11].mxu1 }
 0x682   : > { %v1050_v22 = vpop.f32.mrb[12].mxu1 }
 0x683   : > { %v1751_v23 = vpop.f32.mrb[13].mxu1  ;;  %v1057_v24 = vsel %vm749_vm1, %v1050_v22, -inf }
 0x684   : > { %1058 = vmax.xlane.f32.xlu0 %v1057_v24  ;;  %v1053_v25 = vpop.f32.mrb[14].mxu1  ;;  %v1907_v24 = vld [vmem:[#allocation4] sm:$0xff]  }
 0x685   : > { %v1752_v26 = vpop.f32.mrb[15].mxu1  ;;  %v1060_v27 = vsel %vm749_vm1, %v1053_v25, -inf }
 0x686   : > { %1061 = vmax.xlane.f32.xlu1 %v1060_v27  ;;  %v1910_v26 = vld [vmem:[#allocation4 + $0x18] sm:$0xff]   ;;  %v1911_v27 = vld [vmem:[#allocation4 + $0x20] sm:$0xff]  }
 0x697   : > { %1082 = vrot.lane.b32.xlu1 %v2377_v9, %s2076_s15 }
 0x69b   : > { %1132 = vrot.lane.b32.xlu1 %v2366_v54, %s2077_s27 }
 0x69f   : > { %1134 = vrot.lane.b32.xlu1 %v2375_v8, %s2077_s27 }
 0x711   : > { %v1059_v28 = vpop.xlane.xlu0 %1058 }
 0x712   : > { %v1063_v31 = vsub.f32 %v1050_v22, %v1059_v28  ;;  %v1912_v28 = vld [vmem:[#allocation4 + $0x28] sm:$0xff]  }
 0x713   : > { %v1062_v32 = vpop.xlane.xlu1 %1061 }
 0x714   : > { %v1065_v33 = vmul.f32 1.442695, %v1063_v31  ;;  %v1064_v34 = vsub.f32 %v1053_v25, %v1062_v32  ;;  %v1909_v25 = vld [vmem:[#allocation4 + $0x10] sm:$0xff]   ;;  %v1914_v32 = vld [vmem:[#allocation4 + $0x38] sm:$0xff]  }
 0x715   : > { %v1913_v31 = vld [vmem:[#allocation4 + $0x30] sm:$0xff]  }
 0x716   : > { %1931 = vpow2.f32 %v1065_v33  ;;  %v1067_v35 = vmul.f32 1.442695, %v1064_v34 }
 0x717   : > { %v1083_v42 = vpop.permute.xlu1 %1082 }
 0x718   : > { %1933 = vpow2.f32 %v1067_v35 }
 0x71b   : > { %v1133_v48 = vpop.permute.xlu1 %1132 }
 0x71f   : > { %v1135_v50 = vpop.permute.xlu1 %1134 }
 0x720   : > { %v1932_v36 = vpop.eup %1931  ;;  %v1143_v51 = vsel %vm749_vm1, %v1135_v50, 0 }
 0x721   : > { %v1069_v37 = vsel %vm749_vm1, %v1932_v36, 0.0 }
 0x722   : > { %v1934_v38 = vpop.eup %1933  ;;  %1070 = vadd.xlane.f32.xlu0 %v1069_v37 }
 0x723   : > { %v1072_v39 = vsel %vm749_vm1, %v1934_v38, 0.0 }
 0x726   : > { %1073 = vadd.xlane.f32.xlu0 %v1072_v39 }
 0x73c   : > { %1080 = vrot.lane.b32.xlu0 %v2368_v56, %s2076_s15 }
 0x740   : > { %1130 = vrot.lane.b32.xlu0 %v2373_v2, %s2077_s27  ;;  %v1140_v2 = vsel %vm749_vm1, %v1133_v48, 0 }
 0x7af   : > { %v1071_v54 = vpop.xlane.xlu0 %1070 }
 0x7b0   : > { %1935 = vrcp.f32 %v1071_v54 }
 0x7b3   : > { %v1074_v8 = vpop.xlane.xlu0 %1073 }
 0x7b4   : > { %1937 = vrcp.f32 %v1074_v8 }
 0x7b7   : > { %v1081_v40 = vpop.permute.xlu0 %1080 }
 0x7b8   : > { %1754 = vmatpush3.bf16.msra.mxu0 %v1081_v40 }
 0x7b9   : > { %1755 = vmatprep.subr.bf16.mxu0 %v2072_v0 }
 0x7ba   : > { %v1936_v44 = vpop.eup %1935 }
 0x7bb   : > { %v1076_v46 = vmul.f32 %v1936_v44, %v1932_v36  ;;  %v1131_v52 = vpop.permute.xlu0 %1130 }
 0x7bc   : > { %1756 = vmatpush3.bf16.msra.mxu0 %v1083_v42 }
 0x7bd   : > { %1761 = vmatprep.subr.bf16.mxu0 %v2072_v0 }
 0x7be   : > { %v1938_v45 = vpop.eup %1937 }
 0x7bf   : > { %v1078_v47 = vmul.f32 %v1938_v45, %v1934_v38 }
 0x7c1   : > { %v1079_v49 = vpack.c.bf16 %v1078_v47, %v1076_v46 }
 0x7c3   : > { %1758 = vmatmul.mubr.msk.bf16.vlgmr.msra.gmra.mrb[16].mxu0 %vm749_vm1, %v1079_v49 }
 0x7c4   : > { %1765 = vmatprep.mubr.msk.bf16.mxu0 %vm2074_vm0, %v2072_v0 }
 0x7c5   : > { %1762 = vmatpush3.bf16.xpose.msra.mxu0 %v1140_v2 }
 0x7c6   : > { %1763 = vmatprep.subr.bf16.mxu0 %v2072_v0 }
 0x7cd   : > { %1764 = vmatpush3.bf16.xpose.msra.mxu0 %v1143_v51 }
 0x7d4   : > { %1766 = vmatmul.mubr.msk.bf16.vlgmr.msra.gmra.mrb[20].mxu0 %vm749_vm1, %v1131_v52 }
 0x896   : > { %v1123_v53 = vpop.f32.mrb[16].mxu0 }
 0x897   : > { %v1759_v55 = vpop.f32.mrb[17].mxu0 }
 0x898   : > { %v1126_v57 = vpop.f32.mrb[18].mxu0 }
 0x899   : > { %v1865_v58 = vpack.i.bf16 %v1126_v57, %v1123_v53  ;;  %v1760_v59 = vpop.f32.mrb[19].mxu0  ;;  %v1643_v53 = vld [vmem:[#allocation6] ss:$0 sm:$0xff] }
 0x8a7   : > { %v1179_v60 = vpop.f32.mrb[20].mxu0 }
 0x8a8   : > { %v1767_v61 = vpop.f32.mrb[21].mxu0  ;;  %v1186_v62 = vsel %vm749_vm1, %v1179_v60, -inf }
 0x8a9   : > { %1187 = vmax.xlane.f32.xlu1 %v1186_v62  ;;  %v1182_v63 = vpop.f32.mrb[22].mxu0 }
 0x8aa   : > { %v1768_v1 = vpop.f32.mrb[23].mxu0  ;;  %v1189_v3 = vsel %vm749_vm1, %v1182_v63, -inf }
 0x8ab   : > { %1190 = vmax.xlane.f32.xlu0 %v1189_v3 }
 0x8ba   : > { %1209 = vrot.lane.b32.xlu1 %v2368_v56, %s2077_s27 }
 0x8be   : > { %1861 = vrot.lane.b32.xlu1 %v1860_v20, %s2077_s27 }
 0x8c2   : > { %1866 = vrot.lane.b32.xlu1 %v1865_v58, %s2076_s15 }
 0x936   : > { %v1188_v4 = vpop.xlane.xlu1 %1187 }
 0x937   : > { %v1192_v5 = vsub.f32 %v1179_v60, %v1188_v4 }
 0x938   : > { %v1191_v6 = vpop.xlane.xlu0 %1190 }
 0x939   : > { %v1194_v7 = vmul.f32 1.442695, %v1192_v5  ;;  %v1193_v10 = vsub.f32 %v1182_v63, %v1191_v6 }
 0x93a   : > { %v1210_v11 = vpop.permute.xlu1 %1209 }
 0x93b   : > { %1939 = vpow2.f32 %v1194_v7  ;;  %v1196_v12 = vmul.f32 1.442695, %v1193_v10  ;;  %1770 = vmatpush3.bf16.msra.mxu1 %v1210_v11 }
 0x93c   : > { %1771 = vmatprep.subr.bf16.mxu1 %v2072_v0 }
 0x93d   : > { %1941 = vpow2.f32 %v1196_v12 }
 0x93e   : > { %v1862_v38 = vpop.permute.xlu1 %1861 }
 0x93f   : > { %v1864_v54 = vunpack.i.h.bf16 %v1862_v38  ;;  %v1863_v8 = vunpack.i.l.bf16 %v1862_v38 }
 0x941   : > { %v1283_v45 = vsel %vm749_vm1, %v2410_v41, %v1863_v8 }
 0x942   : > { %v1867_v39 = vpop.permute.xlu1 %1866 }
 0x943   : > { %v1869_v40 = vunpack.i.h.bf16 %v1867_v39  ;;  %v1868_v42 = vunpack.i.l.bf16 %v1867_v39 }
 0x945   : > { %v1940_v56 = vpop.eup %1939  ;;  %v1286_v48 = vsel %vm1285_vm2, %v1283_v45, %v1868_v42 }
 0x946   : > { %v1198_v13 = vsel %vm749_vm1, %v1940_v56, 0.0 }
 0x947   : > { %v1942_v14 = vpop.eup %1941  ;;  %1199 = vadd.xlane.f32.xlu0 %v1198_v13 }
 0x948   : > { %v1201_v15 = vsel %vm749_vm1, %v1942_v14, 0.0 }
 0x94b   : > { %1202 = vadd.xlane.f32.xlu0 %v1201_v15 }
 0x961   : > { %1211 = vrot.lane.b32.xlu0 %v2377_v9, %s2077_s27  ;;  %v1908_v9 = vld [vmem:[#allocation4 + $0x8] sm:$0xff]  }
 0x9d4   : > { %v1200_v16 = vpop.xlane.xlu0 %1199 }
 0x9d5   : > { %1943 = vrcp.f32 %v1200_v16  ;;  %v1644_v16 = vld [vmem:[%s2529_s8] ss:$0 sm:$0xff] }
 0x9d8   : > { %v1203_v17 = vpop.xlane.xlu0 %1202 }
 0x9d9   : > { %1945 = vrcp.f32 %v1203_v17 }
 0x9dc   : > { %v1212_v18 = vpop.permute.xlu0 %1211 }
 0x9dd   : > { %1772 = vmatpush3.bf16.msra.mxu1 %v1212_v18  ;;  %v1645_v18 = vld [vmem:[%s2530_s9] ss:$0 sm:$0xff] }
 0x9de   : > { %1777 = vmatprep.subr.bf16.mxu1 %v2072_v0 }
 0x9df   : > { %v1944_v19 = vpop.eup %1943 }
 0x9e0   : > { %v1205_v21 = vmul.f32 %v1944_v19, %v1940_v56 }
 0x9e3   : > { %v1946_v20 = vpop.eup %1945 }
 0x9e4   : > { %v1207_v22 = vmul.f32 %v1946_v20, %v1942_v14 }
 0x9e6   : > { %v1208_v23 = vpack.c.bf16 %v1207_v22, %v1205_v21 }
 0x9e8   : > { %1774 = vmatmul.mubr.msk.bf16.vlgmr.msra.gmra.mrb[16].mxu1 %vm749_vm1, %v1208_v23 }
 0x9e9   : > { %1793 = vmatprep.mubr.msk.bf16.mxu1 %vm2074_vm0, %v2072_v0  ;;  %1778 = vmatpush3.bf16.msra.mxu1 %v1907_v24 }
 0x9ea   : > { %1779 = vmatprep.subr.bf16.mxu1 %v2072_v0 }
 0x9ed   : > { %1780 = vmatpush3.bf16.msra.mxu1 %v1908_v9 }
 0x9ee   : > { %1781 = vmatprep.subr.bf16.mxu1 %v2072_v0 }
 0x9f1   : > { %1782 = vmatpush3.bf16.msra.mxu1 %v1909_v25 }
 0x9f2   : > { %1783 = vmatprep.subr.bf16.mxu1 %v2072_v0 }
 0x9f5   : > { %1784 = vmatpush3.bf16.msra.mxu1 %v1910_v26 }
 0x9f6   : > { %1785 = vmatprep.subr.bf16.mxu1 %v2072_v0 }
 0x9f9   : > { %1786 = vmatpush3.bf16.msra.mxu1 %v1911_v27 }
 0x9fa   : > { %1787 = vmatprep.subr.bf16.mxu1 %v2072_v0 }
 0x9fd   : > { %1788 = vmatpush3.bf16.msra.mxu1 %v1912_v28 }
 0x9fe   : > { %1789 = vmatprep.subr.bf16.mxu1 %v2072_v0 }
 0xa01   : > { %1790 = vmatpush3.bf16.msra.mxu1 %v1913_v31 }
 0xa02   : > { %1791 = vmatprep.subr.bf16.mxu1 %v2072_v0  ;;  %v1284_v0 = vsel %vm749_vm1, %v2412_v43, %v1864_v54 }
 0xa03   : > { %v1287_v49 = vsel %vm1285_vm2, %v1284_v0, %v1869_v40 }
 0xa05   : > { %1792 = vmatpush3.bf16.msra.mxu1 %v1914_v32 }
 0xabb   : > { %v1252_v33 = vpop.f32.mrb[16].mxu1 }
 0xabc   : > { %v1775_v34 = vpop.f32.mrb[17].mxu1 }
 0xabd   : > { %v1255_v35 = vpop.f32.mrb[18].mxu1 }
 0xabe   : > { %v1870_v36 = vpack.i.bf16 %v1255_v35, %v1252_v33  ;;  %v1776_v37 = vpop.f32.mrb[19].mxu1 }
 0xac0   : > { %1871 = vrot.lane.b32.xlu1 %v1870_v36, %s2075_s14 }
 0xb32   : > { %v1872_v44 = vpop.permute.xlu1 %1871 }
 0xb33   : > { %v1874_v46 = vunpack.i.h.bf16 %v1872_v44  ;;  %v1873_v47 = vunpack.i.l.bf16 %v1872_v44 }
 0xb35   : > { %v1290_v2 = vsel %vm1288_vm3, %v1287_v49, %v1874_v46  ;;  %v1289_v50 = vsel %vm1288_vm3, %v1286_v48, %v1873_v47 }
 0xb36   : > { %v1291_v51 = vpack.c.bf16 %v1290_v2, %v1289_v50 }
 0xb38   : > { %1794 = vmatmul.mubr.bf16.vlgmr.msra.gmra.mrb[20].mxu1 %v1291_v51 }
 0xc0b   : > { %v1390_v52 = vpop.f32.mrb[20].mxu1 }
 0xc0c   : > { %v1397_v55 = vadd.f32 %v1390_v52, %v2349_v29  ;;  %v1795_v57 = vpop.f32.mrb[21].mxu1 }
 0xc0d   : > { %v1393_v58 = vpop.f32.mrb[22].mxu1 }
 0xc0e   : > { %v1406_v59 = vadd.f32 %v1643_v53, %v1397_v55  ;;  %v1398_v43 = vadd.f32 %v1393_v58, %v2351_v30  ;;  %v1796_v60 = vpop.f32.mrb[23].mxu1 }
 0xc10   : > { %v1407_v61 = vadd.f32 %v1643_v53, %v1398_v43  ;;  %1408 = vadd.xlane.f32.xlu0 %v1406_v59  ;;  %v1415_v41 = vmul.f32 %v1406_v59, %v1406_v59 }
 0xc12   : > { %1410 = vadd.xlane.f32.xlu1 %v1407_v61  ;;  %v1416_v62 = vmul.f32 %v1407_v61, %v1407_v61 }
 0xc14   : > { %1417 = vadd.xlane.f32.xlu0 %v1415_v41 }
 0xc18   : > { %1419 = vadd.xlane.f32.xlu0 %v1416_v62 }
 0xc9d   : > { %v1409_v63 = vpop.xlane.xlu0 %1408 }
 0xc9e   : > { %v1413_v1 = vmul.f32 0.0078125, %v1409_v63 }
 0xc9f   : > { %v1411_v3 = vpop.xlane.xlu1 %1410 }
 0xca0   : > { %v1423_v5 = vmul.f32 %v1413_v1, %v1413_v1  ;;  %v1414_v6 = vmul.f32 0.0078125, %v1411_v3  ;;  %v1431_v14 = vsub.f32 %v1406_v59, %v1413_v1 }
 0xca1   : > { %v1418_v4 = vpop.xlane.xlu0 %1417 }
 0xca2   : > { %v1421_v29 = vmul.f32 0.0078125, %v1418_v4  ;;  %v1424_v11 = vmul.f32 %v1414_v6, %v1414_v6  ;;  %v1432_v19 = vsub.f32 %v1407_v61, %v1414_v6 }
 0xca4   : > { %v1425_v7 = vsub.f32 %v1421_v29, %v1423_v5 }
 0xca5   : > { %v1420_v10 = vpop.xlane.xlu0 %1419 }
 0xca6   : > { %v1427_v30 = vadd.f32 1e-05, %v1425_v7  ;;  %v1422_v12 = vmul.f32 0.0078125, %v1420_v10 }
 0xca8   : > { %1947 = vrsqrt.f32 %v1427_v30  ;;  %v1426_v56 = vsub.f32 %v1422_v12, %v1424_v11 }
 0xcaa   : > { %v1428_v13 = vadd.f32 1e-05, %v1426_v56 }
 0xcac   : > { %1949 = vrsqrt.f32 %v1428_v13 }
 0xcb2   : > { %v1948_v15 = vpop.eup %1947 }
 0xcb3   : > { %v1433_v17 = vmul.f32 %v1948_v15, %v1431_v14 }
 0xcb5   : > { %v1442_v20 = vmul.f32 %v1644_v16, %v1433_v17 }
 0xcb6   : > { %v1950_v21 = vpop.eup %1949 }
 0xcb7   : > { %v1451_v22 = vadd.f32 %v1645_v18, %v1442_v20  ;;  %v1434_v23 = vmul.f32 %v1950_v21, %v1432_v19 }
 0xcb9   : > { %1453 = vst [vmem:[%s457_s25] sm:$0xff] %v1451_v22  ;;  %v1443_v24 = vmul.f32 %v1644_v16, %v1434_v23 }
 0xcbb   : > { %v1452_v9 = vadd.f32 %v1645_v18, %v1443_v24 }
 0xcbd   : > { %1454 = vst [vmem:[%s457_s25 + $0x8] sm:$0xff] %v1452_v9 }
 0xcbe PF: > { %s2546_s17 = sld [smem:[#allocation10_spill]]  ;;  %s2547_s13 = sld [smem:[#allocation9_spill]] }
 0xcbf   : > { %s2548_s14 = smov %s2550_s22 }
 0xcc4   : > { %s22_s15 = sadd.s32 1, %s2546_s17  }
 0xcc5   : > { %p19_p8 = scmp.ge.s32.totalorder %s22_s15, 4  }
 0xcc7   :  { %21 = sbr.rel (!%p19_p8) target bundleno = 3 (0x3), region = 106 }
 0xcce   :  { %1485 = vsyncpa [#allocation3], 1 }
 0xccf   :  { %1487 = vsyncpa [#allocation3 + $0x1], 1 }
 0xcd0   :  { %1488 = vsyncpa [#allocation5], 1 }

// kernel: decoder_layer.5
= control target key start
LH: loop header
LB: loop body
LE: loop exit
PB: predicated region body
PF: predicated region fallthrough
CT: control target
= control target key end

     0   :  { %12 = vsyncpa [#allocation3], 0  ;;  %s2043_s0 = inlined_call_operand.vmem [shape: f32[2,16,128], index: 0, kind: input, shape index: {}]   ;;  %s2044_s1 = inlined_call_operand.vmem [shape: bf16[128,512], index: 1, kind: input, shape index: {}]   ;;  %s2045_s2 = inlined_call_operand.hbm [shape: f32[1,512], index: 2, kind: input, shape index: {}]   ;;  %s2046_s3 = inlined_call_operand.vmem [shape: bf16[512,128], index: 3, kind: input, shape index: {}]   ;;  %s2047_s4 = inlined_call_operand.hbm [shape: f32[1,128], index: 4, kind: input, shape index: {}]   ;;  %s2048_s5 = inlined_call_operand.vmem [shape: f32[1,128], index: 5, kind: input, shape index: {}]   ;;  %s2049_s6 = inlined_call_operand.vmem [shape: f32[1,128], index: 6, kind: input, shape index: {}]   ;;  %s2050_s7 = inlined_call_operand.hbm [shape: f32[2,16,128], index: 7, kind: output, shape index: {}]  }
   0x1   :  { %13 = vsyncpa [#allocation6], 0 }
   0x2   :  { %14 = vsyncpa [#allocation4], 0 }
   0x3   :  { %16 = vsyncpa [#allocation4 + $0x1], 0  ;;  %s1646_s24 = smov 0   ;;  %s1648_s25 = smov 0  }
   0x4   :  { %s1650_s26 = smov 0   ;;  %s1652_s27 = smov 0  }
   0x5   :  { %s1654_s28 = smov 0   ;;  %s1656_s29 = smov 0  }
   0x6 LB: > { %s1163_s30 = sadd.s32 4294967295, %s1598_s29   ;;  %s1164_s8 = sadd.s32 4294967294, %s1598_s29   ;;  %s1598_s29 = sphi %s1656_s29, %s22_s29   ;;  %s1594_s28 = sphi %s1654_s28, %s2071_s28   ;;  %s1590_s27 = sphi %s1652_s27, %s2070_s27   ;;  %s1586_s26 = sphi %s1650_s26, %s2069_s26   ;;  %s1582_s25 = sphi %s1648_s25, %s2068_s25   ;;  %s1578_s24 = sphi %s1646_s24, %s2067_s24  }
   0x7   : > { %s34_s9 = sadd.s32 1, %s1594_s28  ;;  %s197_s10 = sadd.s32 1, %s1586_s26 }
   0x8   : > { %p36_p0 = scmp.ge.s32.totalorder %s34_s9, 2  ;;  %p207_p1 = scmp.ne.s32.totalorder %s1586_s26, %s1582_s25 }
   0x9   : > { %p208_p2 = scmp.eq.s32.totalorder %s1163_s30, 1  ;;  %p213_p3 = scmp.ne.s32.totalorder %s1582_s25, %s1578_s24 }
   0xa   : > { %s2073_s9 = smov (%p36_p0, %s34_s9), 0  ;;  %p214_p5 = scmp.eq.s32.totalorder %s1164_s8, 1 }
   0xb   : > { %2056 = sst [smem:[#allocation11_spill]] %s2073_s9  ;;  %p1686_p4 = por %p208_p2, %p207_p1 }
   0xc   : > { %s192_s12 = ssub.s32 %s1594_s28, %s2073_s9  ;;  %p1165_p6 = scmp.ge.s32.totalorder %s1598_s29, 1 }
   0xd   : > { %s2057_s11 = scalar_select %p1686_p4, 1, 0 }
   0xe   : > { %p195_p7 = scmp.eq.s32.totalorder %s192_s12, 0  ;;  %p1693_p8 = por %p214_p5, %p213_p3 }
   0xf   : > { %p221_p9 = scmp.lt.s32.totalorder %s1598_s29, 3  ;;  %p1705_p11 = scmp.eq.s32.totalorder %s1163_s30, 0 }
  0x10   : > { %s2058_s13 = scalar_select %p1693_p8, 1, 0 }
  0x11   : > { %s1699_s14 = scalar_select %p195_p7, %s1586_s26, %s197_s10  }
  0x12   : > { %p1701_p10 = pnand %p1165_p6, %p221_p9  ;;  %s1600_s17 = smov [#allocation2]  }
  0x13   : > { %s2060_s16 = scalar_select %p1705_p11, 1, 0 }
  0x14   : > { %s2059_s15 = scalar_select %p1701_p10, 1, 0 }
  0x15   : > { %p1303_p12 = pneg %p1701_p10  ;;  %s237_s18 = sshll.u32 %s1600_s17, 4  ;;  %s238_s18 = int_to_ptr.vmem [resolvable:$true] %s237_s18 }
  0x16   : > { %s1601_s19 = smov [#allocation5]   ;;  %s1456_s30 = scalar_lea.hbm %s2045_s2, 64 }
  0x17   : > { %s251_s20 = sshll.u32 %s1601_s19, 4  ;;  %p1713_p13 = pnand %p1705_p11, %p1303_p12  ;;  %s1717_s20 = int_to_ptr.vmem [resolvable:$true] %s251_s20 }
  0x18   : > { %p1457_p0 = scmp.ne.s32.totalorder %s2045_s2, %s1456_s30  ;;  %p1463_p5 = scmp.lt.u32.totalorder %s1456_s30, %s2045_s2 }
  0x19   : > { %p1458_p1 = pneg %p1713_p13 }
  0x1b   : > { %p1459_p2 = pnand %p1458_p1, %p1457_p0 }
  0x1d   : > { %p1460_p3 = pneg %p1459_p2 }
  0x1f   : > { %p1465_p6 = pnand %p1463_p5, %p1460_p3 }
  0x21   : > { %1468 = shalt.err (!%p1465_p6)
}
  0x22   : > { %s1469_s19 = scalar_lea.vmem %s238_s18, 64  ;;  %p1477_p8 = scmp.lt.s32.totalorder %s238_s18, %s238_s18 }
  0x23   : > { %p1470_p7 = scmp.ne.s32.totalorder %s238_s18, %s1469_s19  ;;  %p1478_p4 = scmp.lt.s32.totalorder %s1469_s19, %s1469_s19 }
  0x25   : > { %p1472_p9 = pnand %p1470_p7, %p1458_p1  ;;  %p1479_p11 = por %p1478_p4, %p1477_p8 }
  0x27   : > { %p1473_p12 = pneg %p1472_p9 }
  0x29   : > { %p1480_p10 = pnand %p1479_p11, %p1473_p12 }
  0x2b   : > { %1483 = shalt.err (!%p1480_p10)
}
  0x2c   : > { %1306 = dma.hbm_to_vmem [thread:$0]  (!%p1713_p13), %s2045_s2, 64, %s238_s18, [#allocation3]  }
  0x2d   : > { %s1484_s10 = scalar_lea.hbm %s2047_s4, 16 }
  0x2e   : > { %p1485_p0 = scmp.ne.s32.totalorder %s2047_s4, %s1484_s10  ;;  %p1491_p10 = scmp.lt.u32.totalorder %s1484_s10, %s2047_s4 }
  0x30   : > { %p1487_p4 = pnand %p1485_p0, %p1458_p1 }
  0x32   : > { %p1488_p8 = pneg %p1487_p4 }
  0x34   : > { %p1493_p11 = pnand %p1491_p10, %p1488_p8 }
  0x36   : > { %1496 = shalt.err (!%p1493_p11)
}
  0x37   : > { %s1497_s18 = scalar_lea.vmem %s1717_s20, 16  ;;  %s1504_s22 = scalar_lea.vmem %s1717_s20, 32 }
  0x38   : > { %p1498_p2 = scmp.ne.s32.totalorder %s1717_s20, %s1497_s18  ;;  %p1505_p6 = scmp.lt.s32.totalorder %s1717_s20, %s1717_s20 }
  0x39   : > { %p1506_p7 = scmp.lt.s32.totalorder %s1504_s22, %s1497_s18 }
  0x3a   : > { %p1500_p3 = pnand %p1498_p2, %p1458_p1 }
  0x3b   : > { %p1507_p9 = por %p1506_p7, %p1505_p6 }
  0x3c   : > { %p1501_p5 = pneg %p1500_p3 }
  0x3e   : > { %p1508_p12 = pnand %p1507_p9, %p1501_p5 }
  0x40   : > { %1511 = shalt.err (!%p1508_p12)
}
  0x41   : > { %1309 = dma.hbm_to_vmem [thread:$0]  (!%p1713_p13), %s2047_s4, 16, %s1717_s20, [#allocation6]  }
  0x42   : > { %p2062_p0 = scmp.ne.s32.totalorder %s2059_s15, 0 }
  0x43   : > { %p2063_p1 = scmp.ne.s32.totalorder (!%p2062_p0), %s2060_s16, 0 }
  0x44   : > { %283 = sbr.rel (%p2062_p0) target bundleno = 741 (0x2e5), region = 48 }
  0x4b   : > { %1565 = dma.done.wait (%p2063_p1), [#allocation3], 64  }
  0x4c   : > { %1567 = vsyncadd (%p2063_p1), [#allocation3], 4294967232 }
  0x4d   : > { %1569 = dma.done.wait (%p2063_p1), [#allocation6], 16  }
  0x4e   : > { %1571 = vsyncadd (%p2063_p1), [#allocation6], 4294967280  ;;  %v1602_v0 = vmov 0   ;;  %v1372_v1 = vld [vmem:[%s2044_s1 + $0x4] ss:$16 sps:$4 sm:$0xff]   ;;  %p324_p13 = scmp.lt.s32.totalorder %s1590_s27, 1 }
  0x4f   : > { %584 = vmatprep.mubr.bf16.mxu0 %v1602_v0  ;;  %627 = vmatprep.mubr.bf16.mxu1 %v1602_v0  ;;  %v1374_v2 = vld [vmem:[%s2044_s1 + $0xc] ss:$16 sps:$4 sm:$0xff]   ;;  %v1376_v3 = vld [vmem:[%s2044_s1] ss:$16 sps:$4 sm:$0xff]   ;;  %v1377_v4 = vld [vmem:[%s2044_s1 + $0x8] ss:$16 sps:$4 sm:$0xff]  }
  0x50   : > { %552 = vmatprep.subr.bf16.mxu0 %v1372_v1  ;;  %595 = vmatprep.subr.bf16.mxu1 %v1374_v2  ;;  %v1378_v5 = vld [vmem:[%s2044_s1 + $0x24] ss:$16 sps:$4 sm:$0xff]   ;;  %v1380_v6 = vld [vmem:[%s2044_s1 + $0x2c] ss:$16 sps:$4 sm:$0xff]   ;;  %v1382_v7 = vld [vmem:[%s2044_s1 + $0x20] ss:$16 sps:$4 sm:$0xff]  }
  0x51   : > { %553 = vmatpush1.bf16.msra.mxu0 %v1376_v3  ;;  %596 = vmatpush1.bf16.msra.mxu1 %v1377_v4  ;;  %v1383_v8 = vld [vmem:[%s2044_s1 + $0x28] ss:$16 sps:$4 sm:$0xff]   ;;  %v1384_v9 = vld [vmem:[%s2044_s1 + $0x44] ss:$16 sps:$4 sm:$0xff]   ;;  %v1386_v10 = vld [vmem:[%s2044_s1 + $0x4c] ss:$16 sps:$4 sm:$0xff]   ;;  %v372_v4 = vlaneseq }
  0x52   : > { %554 = vmatprep.subr.bf16.mxu0 %v1378_v5  ;;  %597 = vmatprep.subr.bf16.mxu1 %v1380_v6  ;;  %v1388_v11 = vld [vmem:[%s2044_s1 + $0x40] ss:$16 sps:$4 sm:$0xff]   ;;  %v1389_v12 = vld [vmem:[%s2044_s1 + $0x48] ss:$16 sps:$4 sm:$0xff]   ;;  %v1390_v13 = vld [vmem:[%s2044_s1 + $0x64] ss:$16 sps:$4 sm:$0xff]  }
  0x53   : > { %v1392_v14 = vld [vmem:[%s2044_s1 + $0x6c] ss:$16 sps:$4 sm:$0xff]   ;;  %v1394_v15 = vld [vmem:[%s2044_s1 + $0x60] ss:$16 sps:$4 sm:$0xff]   ;;  %v1395_v16 = vld [vmem:[%s2044_s1 + $0x68] ss:$16 sps:$4 sm:$0xff]  }
  0x54   : > { %v1396_v17 = vld [vmem:[%s2044_s1 + $0x84] ss:$16 sps:$4 sm:$0xff]   ;;  %v1398_v18 = vld [vmem:[%s2044_s1 + $0x8c] ss:$16 sps:$4 sm:$0xff]   ;;  %v1400_v19 = vld [vmem:[%s2044_s1 + $0x80] ss:$16 sps:$4 sm:$0xff]  }
  0x55   : > { %555 = vmatpush1.bf16.msra.mxu0 %v1382_v7  ;;  %598 = vmatpush1.bf16.msra.mxu1 %v1383_v8  ;;  %v1401_v20 = vld [vmem:[%s2044_s1 + $0x88] ss:$16 sps:$4 sm:$0xff]   ;;  %v1402_v21 = vld [vmem:[%s2044_s1 + $0xa4] ss:$16 sps:$4 sm:$0xff]   ;;  %s325_s21 = scalar_select %p324_p13, %s1590_s27, 1  ;;  %v373_v5 = vshrl.u32 %v372_v4, 7 }
  0x56   : > { %556 = vmatprep.subr.bf16.mxu0 %v1384_v9  ;;  %599 = vmatprep.subr.bf16.mxu1 %v1386_v10  ;;  %v1404_v22 = vld [vmem:[%s2044_s1 + $0xac] ss:$16 sps:$4 sm:$0xff]   ;;  %v1406_v23 = vld [vmem:[%s2044_s1 + $0xa0] ss:$16 sps:$4 sm:$0xff]   ;;  %v1407_v24 = vld [vmem:[%s2044_s1 + $0xa8] ss:$16 sps:$4 sm:$0xff]  }
  0x57   : > { %s1247_s17 = sshll.u32 %s325_s21, 4  ;;  %v1408_v25 = vld [vmem:[%s2044_s1 + $0xc4] ss:$16 sps:$4 sm:$0xff]   ;;  %v1410_v26 = vld [vmem:[%s2044_s1 + $0xcc] ss:$16 sps:$4 sm:$0xff]   ;;  %v374_v6 = vsub.s32 0, %v373_v5 }
  0x58   : > { %v1412_v27 = vld [vmem:[%s2044_s1 + $0xc0] ss:$16 sps:$4 sm:$0xff]   ;;  %v1413_v28 = vld [vmem:[%s2044_s1 + $0xc8] ss:$16 sps:$4 sm:$0xff]   ;;  %s331_s8 = scalar_lea.vmem %s2043_s0, %s1247_s17  ;;  %v1414_v29 = vld [vmem:[%s2044_s1 + $0xe4] ss:$16 sps:$4 sm:$0xff]  }
  0x59   : > { %557 = vmatpush1.bf16.msra.mxu0 %v1388_v11  ;;  %600 = vmatpush1.bf16.msra.mxu1 %v1389_v12  ;;  %v1416_v30 = vld [vmem:[%s2044_s1 + $0xec] ss:$16 sps:$4 sm:$0xff]   ;;  %v1418_v31 = vld [vmem:[%s2044_s1 + $0xe0] ss:$16 sps:$4 sm:$0xff]   ;;  %v1419_v32 = vld [vmem:[%s2044_s1 + $0xe8] ss:$16 sps:$4 sm:$0xff]  }
  0x5a   : > { %558 = vmatprep.subr.bf16.mxu0 %v1390_v13  ;;  %601 = vmatprep.subr.bf16.mxu1 %v1392_v14  ;;  %v1878_v33 = vld [vmem:[%s331_s8] sm:$0xff]  ;;  %v1880_v34 = vld [vmem:[%s331_s8 + $0x8] sm:$0xff]  ;;  %v1428_v44 = vld [vmem:[%s2046_s3 + $0x50] sm:$0xff]   ;;  %v382_v7 = vsub.s32 2, %v373_v5  ;;  %v378_v9 = vsub.s32 1, %v373_v5  ;;  %v386_v10 = vsub.s32 3, %v373_v5 }
  0x5b   : > { %v1420_v35 = vld [vmem:[%s2046_s3 + $0x40] sm:$0xff]   ;;  %v337_v38 = vpack.c.bf16 %v1880_v34, %v1878_v33  ;;  %v1424_v40 = vld [vmem:[%s2046_s3 + $0x48] sm:$0xff]   ;;  %v1429_v45 = vld [vmem:[%s2046_s3 + $0xd0] sm:$0xff]   ;;  %s320_s16 = sand.u32 1, %s1582_s25   ;;  %s1248_s17 = sshll.u32 %s1590_s27, 8 }
  0x5c   : > { %v1421_v36 = vld [vmem:[%s2046_s3 + $0xc0] sm:$0xff]   ;;  %v1425_v41 = vld [vmem:[%s2046_s3 + $0xc8] sm:$0xff]   ;;  %v1430_v46 = vld [vmem:[%s2046_s3 + $0x10] sm:$0xff]   ;;  %s1172_s22 = sshll.u32 %s320_s16, 4  ;;  %s1993_s10 = scalar_lea.hbm %s2050_s7, %s1248_s17 }
  0x5d   : > { %559 = vmatpush1.bf16.msra.mxu0 %v1394_v15  ;;  %602 = vmatpush1.bf16.msra.mxu1 %v1395_v16  ;;  %v1422_v37 = vld [vmem:[%s2046_s3] sm:$0xff]   ;;  %v1426_v42 = vld [vmem:[%s2046_s3 + $0x8] sm:$0xff]   ;;  %v1431_v47 = vld [vmem:[%s2046_s3 + $0x90] sm:$0xff]   ;;  %s322_s20 = scalar_lea.vmem [#allocation7], %s1172_s22  ;;  %s1997_s8 = scalar_lea.sflag [#allocation4], %s320_s16 }
  0x5e   : > { %560 = vmatprep.subr.bf16.mxu0 %v1396_v17  ;;  %603 = vmatprep.subr.bf16.mxu1 %v1398_v18  ;;  %v1423_v39 = vld [vmem:[%s2046_s3 + $0x80] sm:$0xff]   ;;  %v1427_v43 = vld [vmem:[%s2046_s3 + $0x88] sm:$0xff]   ;;  %v1432_v48 = vld [vmem:[%s2046_s3 + $0x58] sm:$0xff]   ;;  %s1062_s15 = sshll.u32 %s322_s20, 4  ;;  %p2064_p8 = scmp.ne.s32.totalorder %s2057_s11, 0  ;;  %s1995_s15 = int_to_ptr.vmem [resolvable:$true] %s1062_s15 }
  0x5f   : > { %v1433_v49 = vld [vmem:[%s2046_s3 + $0xd8] sm:$0xff]   ;;  %v1436_v52 = vld [vmem:[%s2046_s3 + $0x60] sm:$0xff]   ;;  %v1440_v56 = vld [vmem:[%s2046_s3 + $0x68] sm:$0xff]   ;;  %s1512_s12 = scalar_lea.vmem %s1995_s15, 256  ;;  %s1603_s27 = smov [#allocation7]  }
  0x60   : > { %v1434_v50 = vld [vmem:[%s2046_s3 + $0x18] sm:$0xff]   ;;  %v1437_v53 = vld [vmem:[%s2046_s3 + $0xe0] sm:$0xff]   ;;  %v1441_v57 = vld [vmem:[%s2046_s3 + $0xe8] sm:$0xff]   ;;  %p1513_p4 = scmp.ne.s32.totalorder %s1995_s15, %s1512_s12  ;;  %s1516_s19 = sshll.u32 %s1603_s27, 4  ;;  %s1517_s19 = int_to_ptr.vmem [resolvable:$false] %s1516_s19 }
  0x61   : > { %561 = vmatpush1.bf16.msra.mxu0 %v1400_v19  ;;  %604 = vmatpush1.bf16.msra.mxu1 %v1401_v20  ;;  %v1435_v51 = vld [vmem:[%s2046_s3 + $0x98] sm:$0xff]   ;;  %v1438_v54 = vld [vmem:[%s2046_s3 + $0x20] sm:$0xff]   ;;  %v1442_v58 = vld [vmem:[%s2046_s3 + $0x28] sm:$0xff]   ;;  %s1518_s18 = scalar_lea.vmem %s1517_s19, 512  ;;  %p1519_p2 = scmp.lt.s32.totalorder %s1995_s15, %s1517_s19 }
  0x62   : > { %562 = vmatprep.subr.bf16.mxu0 %v1402_v21  ;;  %605 = vmatprep.subr.bf16.mxu1 %v1404_v22  ;;  %v1439_v55 = vld [vmem:[%s2046_s3 + $0xa0] sm:$0xff]   ;;  %v1443_v59 = vld [vmem:[%s2046_s3 + $0xa8] sm:$0xff]   ;;  %v1444_v60 = vld [vmem:[%s2046_s3 + $0x70] sm:$0xff]   ;;  %p1514_p10 = pnand %p1513_p4, %p2064_p8  ;;  %p1520_p3 = scmp.lt.s32.totalorder %s1518_s18, %s1512_s12 }
  0x63   : > { %v1445_v61 = vld [vmem:[%s2046_s3 + $0xf0] sm:$0xff]   ;;  %v1448_v0 = vld [vmem:[%s2046_s3 + $0x78] sm:$0xff]   ;;  %v370_v8 = vld [vmem:[#allocation2] sm:$0xf] }
  0x64   : > { %v1446_v62 = vld [vmem:[%s2046_s3 + $0x30] sm:$0xff]   ;;  %v1449_v1 = vld [vmem:[%s2046_s3 + $0xf8] sm:$0xff]   ;;  %v375_v11 = vrot.slane %v370_v8, %v374_v6  ;;  %v383_v12 = vrot.slane %v370_v8, %v382_v7  ;;  %v379_v13 = vrot.slane %v370_v8, %v378_v9  ;;  %v387_v14 = vrot.slane %v370_v8, %v386_v10  ;;  %p1515_p11 = pneg %p1514_p10  ;;  %p1521_p5 = por %p1520_p3, %p1519_p2 }
  0x65   : > { %563 = vmatpush1.bf16.msra.mxu0 %v1406_v23  ;;  %606 = vmatpush1.bf16.msra.mxu1 %v1407_v24  ;;  %v1447_v63 = vld [vmem:[%s2046_s3 + $0xb0] sm:$0xff]   ;;  %v1450_v2 = vld [vmem:[%s2046_s3 + $0x38] sm:$0xff]  }
  0x66   : > { %564 = vmatprep.subr.bf16.mxu0 %v1408_v25  ;;  %607 = vmatprep.subr.bf16.mxu1 %v1410_v26  ;;  %v1451_v3 = vld [vmem:[%s2046_s3 + $0xb8] sm:$0xff]   ;;  %p1522_p6 = pnand %p1521_p5, %p1515_p11 }
  0x69   : > { %565 = vmatpush1.bf16.msra.mxu0 %v1412_v27  ;;  %608 = vmatpush1.bf16.msra.mxu1 %v1413_v28 }
  0x6a   : > { %566 = vmatprep.subr.bf16.mxu0 %v1414_v29  ;;  %609 = vmatprep.subr.bf16.mxu1 %v1416_v30 }
  0x6d   : > { %567 = vmatpush1.bf16.msra.mxu0 %v1418_v31  ;;  %610 = vmatpush1.bf16.msra.mxu1 %v1419_v32 }
  0x6e   : > { %1249 = vmatprep.subr.bf16.mxu0 %v1420_v35  ;;  %1271 = vmatprep.subr.bf16.mxu1 %v1421_v36 }
  0x70   : > { %585 = vmatmul.mubr.bf16.vlgmr.msra.gmra.mrb[0].mxu0 %v337_v38  ;;  %628 = vmatmul.mubr.bf16.vlgmr.msra.gmra.mrb[0].mxu1 %v337_v38 }
  0x71   : > { %1250 = vmatpush3.bf16.msra.mxu0 %v1422_v37  ;;  %1272 = vmatpush3.bf16.msra.mxu1 %v1423_v39 }
  0x72   : > { %1251 = vmatprep.subr.bf16.mxu0 %v1424_v40  ;;  %1273 = vmatprep.subr.bf16.mxu1 %v1425_v41 }
  0x75   : > { %1252 = vmatpush3.bf16.msra.mxu0 %v1426_v42  ;;  %1274 = vmatpush3.bf16.msra.mxu1 %v1427_v43 }
  0x76   : > { %1253 = vmatprep.subr.bf16.mxu0 %v1428_v44  ;;  %1275 = vmatprep.subr.bf16.mxu1 %v1429_v45 }
  0x79   : > { %1254 = vmatpush3.bf16.msra.mxu0 %v1430_v46  ;;  %1276 = vmatpush3.bf16.msra.mxu1 %v1431_v47 }
  0x7a   : > { %1255 = vmatprep.subr.bf16.mxu0 %v1432_v48  ;;  %1277 = vmatprep.subr.bf16.mxu1 %v1433_v49 }
  0x7d   : > { %1256 = vmatpush3.bf16.msra.mxu0 %v1434_v50  ;;  %1278 = vmatpush3.bf16.msra.mxu1 %v1435_v51 }
  0x7e   : > { %1257 = vmatprep.subr.bf16.mxu0 %v1436_v52  ;;  %1279 = vmatprep.subr.bf16.mxu1 %v1437_v53 }
  0x81   : > { %1258 = vmatpush3.bf16.msra.mxu0 %v1438_v54  ;;  %1280 = vmatpush3.bf16.msra.mxu1 %v1439_v55 }
  0x82   : > { %1259 = vmatprep.subr.bf16.mxu0 %v1440_v56  ;;  %1281 = vmatprep.subr.bf16.mxu1 %v1441_v57 }
  0x85   : > { %1260 = vmatpush3.bf16.msra.mxu0 %v1442_v58  ;;  %1282 = vmatpush3.bf16.msra.mxu1 %v1443_v59  ;;  %v1239_v58 = vld [vmem:[#allocation5] ss:$0 sm:$0xff] }
  0x86   : > { %1261 = vmatprep.subr.bf16.mxu0 %v1444_v60  ;;  %1283 = vmatprep.subr.bf16.mxu1 %v1445_v61 }
  0x89   : > { %1262 = vmatpush3.bf16.msra.mxu0 %v1446_v62  ;;  %1284 = vmatpush3.bf16.msra.mxu1 %v1447_v63 }
  0x8a   : > { %1263 = vmatprep.subr.bf16.mxu0 %v1448_v0  ;;  %1285 = vmatprep.subr.bf16.mxu1 %v1449_v1 }
  0x8d   : > { %1264 = vmatpush3.bf16.msra.mxu0 %v1450_v2  ;;  %1286 = vmatpush3.bf16.msra.mxu1 %v1451_v3 }
 0x143   : > { %v586_v15 = vpop.f32.mrb[0].mxu0  ;;  %v629_v16 = vpop.f32.mrb[0].mxu1 }
 0x144   : > { %v587_v17 = vadd.f32 %v586_v15, %v375_v11  ;;  %v630_v18 = vadd.f32 %v629_v16, %v383_v12  ;;  %v588_v19 = vpop.f32.mrb[1].mxu0  ;;  %v631_v20 = vpop.f32.mrb[1].mxu1  ;;  %v1240_v16 = vld [vmem:[%s2048_s5] ss:$0 sm:$0xff] }
 0x145   : > { %v589_v21 = vadd.f32 %v588_v19, %v379_v13  ;;  %v632_v22 = vadd.f32 %v631_v20, %v387_v14  ;;  %v590_v23 = vpop.f32.mrb[2].mxu0  ;;  %v633_v24 = vpop.f32.mrb[2].mxu1 }
 0x146   : > { %v591_v25 = vadd.f32 %v590_v23, %v375_v11  ;;  %v634_v26 = vadd.f32 %v633_v24, %v383_v12  ;;  %v592_v27 = vpop.f32.mrb[3].mxu0  ;;  %v635_v28 = vpop.f32.mrb[3].mxu1  ;;  %v638_v31 = vmax.f32 %v587_v17, 0.0  ;;  %v640_v32 = vmax.f32 %v630_v18, 0.0  ;;  %v1241_v18 = vld [vmem:[%s2049_s6] ss:$0 sm:$0xff] }
 0x147   : > { %v593_v29 = vadd.f32 %v592_v27, %v379_v13  ;;  %v636_v30 = vadd.f32 %v635_v28, %v387_v14  ;;  %v639_v37 = vmax.f32 %v589_v21, 0.0  ;;  %v641_v38 = vmax.f32 %v632_v22, 0.0 }
 0x148   : > { %v642_v35 = vmax.f32 %v591_v25, 0.0  ;;  %v644_v36 = vmax.f32 %v634_v26, 0.0 }
 0x149   : > { %v643_v39 = vmax.f32 %v593_v29, 0.0  ;;  %v645_v40 = vmax.f32 %v636_v30, 0.0 }
 0x14a   : > { %v646_v41 = vpack.c.bf16 %v642_v35, %v638_v31  ;;  %v648_v42 = vpack.c.bf16 %v644_v36, %v640_v32 }
 0x14b   : > { %v647_v43 = vpack.c.bf16 %v643_v39, %v639_v37  ;;  %v649_v44 = vpack.c.bf16 %v645_v40, %v641_v38 }
 0x14d   : > { %938 = vmatprep.mubr.bf16.mxu0 %v647_v43  ;;  %979 = vmatprep.mubr.bf16.mxu1 %v649_v44 }
 0x14e   : > { %939 = vmatmul.mubr.bf16.vlgmr.msra.gmra.mrb[4].mxu0 %v646_v41  ;;  %980 = vmatmul.mubr.bf16.vlgmr.msra.gmra.mrb[4].mxu1 %v648_v42 }
 0x221   : > { %v1265_v45 = vpop.f32.mrb[4].mxu0  ;;  %v1287_v46 = vpop.f32.mrb[4].mxu1 }
 0x222   : > { %v1266_v47 = vpop.f32.mrb[5].mxu0  ;;  %v1288_v48 = vpop.f32.mrb[5].mxu1 }
 0x223   : > { %v1267_v49 = vadd.f32 %v1266_v47, %v1265_v45  ;;  %v1289_v50 = vadd.f32 %v1288_v48, %v1287_v46  ;;  %v1268_v51 = vpop.f32.mrb[6].mxu0  ;;  %v1290_v52 = vpop.f32.mrb[6].mxu1 }
 0x224   : > { %v1269_v53 = vpop.f32.mrb[7].mxu0  ;;  %v1291_v54 = vpop.f32.mrb[7].mxu1 }
 0x225   : > { %v982_v55 = vadd.f32 %v1289_v50, %v1267_v49  ;;  %v1270_v56 = vadd.f32 %v1269_v53, %v1268_v51  ;;  %v1292_v57 = vadd.f32 %v1291_v54, %v1290_v52 }
 0x227   : > { %v988_v59 = vadd.f32 %v982_v55, %v1878_v33  ;;  %v985_v60 = vadd.f32 %v1292_v57, %v1270_v56 }
 0x229   : > { %v989_v61 = vadd.f32 %v985_v60, %v1880_v34  ;;  %v997_v62 = vadd.f32 %v1239_v58, %v988_v59 }
 0x22b   : > { %999 = vadd.xlane.f32.xlu0 %v997_v62  ;;  %v1006_v63 = vmul.f32 %v997_v62, %v997_v62  ;;  %v998_v0 = vadd.f32 %v1239_v58, %v989_v61 }
 0x22d   : > { %1008 = vadd.xlane.f32.xlu1 %v1006_v63  ;;  %v1007_v1 = vmul.f32 %v998_v0, %v998_v0 }
 0x22f   : > { %1001 = vadd.xlane.f32.xlu0 %v998_v0 }
 0x231   : > { %1010 = vadd.xlane.f32.xlu1 %v1007_v1 }
 0x2b8   : > { %v1000_v2 = vpop.xlane.xlu0 %999 }
 0x2b9   : > { %v1004_v3 = vmul.f32 0.0078125, %v1000_v2 }
 0x2ba   : > { %v1009_v4 = vpop.xlane.xlu1 %1008 }
 0x2bb   : > { %v1014_v5 = vmul.f32 %v1004_v3, %v1004_v3  ;;  %v1012_v6 = vmul.f32 0.0078125, %v1009_v4  ;;  %v1022_v14 = vsub.f32 %v997_v62, %v1004_v3 }
 0x2bc   : > { %v1002_v7 = vpop.xlane.xlu0 %1001 }
 0x2bd   : > { %v1016_v8 = vsub.f32 %v1012_v6, %v1014_v5  ;;  %v1005_v33 = vmul.f32 0.0078125, %v1002_v7 }
 0x2be   : > { %v1011_v9 = vpop.xlane.xlu1 %1010 }
 0x2bf   : > { %v1018_v10 = vadd.f32 1e-05, %v1016_v8  ;;  %v1015_v34 = vmul.f32 %v1005_v33, %v1005_v33  ;;  %v1013_v11 = vmul.f32 0.0078125, %v1011_v9  ;;  %v1023_v20 = vsub.f32 %v998_v0, %v1005_v33 }
 0x2c1   : > { %1452 = vrsqrt.f32 %v1018_v10  ;;  %v1017_v12 = vsub.f32 %v1013_v11, %v1015_v34 }
 0x2c3   : > { %v1019_v13 = vadd.f32 1e-05, %v1017_v12 }
 0x2c5   : > { %1454 = vrsqrt.f32 %v1019_v13 }
 0x2cb   : > { %v1453_v15 = vpop.eup %1452 }
 0x2cc   : > { %v1024_v17 = vmul.f32 %v1453_v15, %v1022_v14 }
 0x2ce   : > { %v1033_v19 = vmul.f32 %v1240_v16, %v1024_v17 }
 0x2cf   : > { %v1455_v21 = vpop.eup %1454 }
 0x2d0   : > { %v1042_v22 = vadd.f32 %v1241_v18, %v1033_v19  ;;  %v1025_v23 = vmul.f32 %v1455_v21, %v1023_v20 }
 0x2d2   : > { %v1034_v24 = vmul.f32 %v1240_v16, %v1025_v23  ;;  %1044 = vst [vmem:[%s322_s20] sm:$0xff] %v1042_v22 }
 0x2d4   : > { %v1043_v25 = vadd.f32 %v1241_v18, %v1034_v24 }
 0x2d6   : > { %1045 = vst [vmem:[%s322_s20 + $0x8] sm:$0xff] %v1043_v25 }
 0x2d7   : > { %1525 = shalt.err (!%p1522_p6)
}
 0x2d8   : > { %s1526_s16 = scalar_lea.hbm %s1993_s10, 256  ;;  %s1530_s23 = scalar_lea.hbm %s2050_s7, 512 }
 0x2d9   : > { %p1527_p7 = scmp.ne.s32.totalorder %s1993_s10, %s1526_s16  ;;  %p1531_p0 = scmp.lt.u32.totalorder %s1993_s10, %s2050_s7 }
 0x2da   : > { %p1532_p1 = scmp.lt.u32.totalorder %s1530_s23, %s1526_s16  ;;  %p1534_p4 = scmp.lt.u32.totalorder %s1526_s16, %s1993_s10 }
 0x2db   : > { %p1528_p9 = pnand %p1527_p7, %p2064_p8 }
 0x2dc   : > { %p1533_p13 = por %p1532_p1, %p1531_p0 }
 0x2dd   : > { %p1529_p12 = pneg %p1528_p9 }
 0x2de   : > { %p1535_p10 = por %p1534_p4, %p1533_p13 }
 0x2e0   : > { %p1536_p11 = pnand %p1535_p10, %p1529_p12 }
 0x2e2   : > { %1539 = shalt.err (!%p1536_p11)
}
 0x2e3   : > { %s1604_s30 = smov 128   ;;  %s1605_s21 = smov 8  }
 0x2e4   : > { %1301 = dma.vmem_to_hbm [thread:$0]  (%p2064_p8), %s1995_s15, 256, %s1993_s10, %s1997_s8, %s1604_s30, %s1604_s30, %s1605_s21  }
 0x2e5 PF: > { %p1318_p2 = scmp.ge.s32.totalorder %s1598_s29, 2  ;;  %s1077_s12 = sand.u32 1, %s1578_s24  }
 0x2e6   : > { %p2065_p3 = scmp.ne.s32.totalorder %s2058_s13, 0  ;;  %s1078_s27 = scalar_lea.sflag [#allocation4], %s1077_s12 }
 0x2e8   : > { %p1311_p5 = pnand %p1318_p2, %p2065_p3 }
 0x2ea   : > { %1573 = dma.done.wait (!%p1311_p5), %s1078_s27, 256  }
 0x2eb   : > { %1575 = vsyncadd (!%p1311_p5), %s1078_s27, 4294967040  ;;  %s22_s29 = sadd.s32 1, %s1598_s29   ;;  %s2066_s11 = sld [smem:[#allocation11_spill]] }
 0x2ec   : > { %p19_p6 = scmp.ge.s32.totalorder %s22_s29, 4   ;;  %s2067_s24 = smov %s1582_s25 }
 0x2ed   : > { %s2068_s25 = smov %s1586_s26  ;;  %s2069_s26 = smov %s1699_s14 }
 0x2ee   : > { %s2070_s27 = smov %s1594_s28  ;;  %21 = sbr.rel (!%p19_p6) target bundleno = 6 (0x6), region = 92 }
 0x2f1   : > { %s2071_s28 = smov %s2066_s11 }
 0x2f5   :  { %1083 = vsyncpa [#allocation3], 1 }
 0x2f6   :  { %1085 = vsyncpa [#allocation3 + $0x1], 1 }
 0x2f7   :  { %1086 = vsyncpa [#allocation6], 1 }
 0x2f8   :  { %1087 = vsyncpa [#allocation4], 1 }
 0x2f9   :  { %1089 = vsyncpa [#allocation4 + $0x1], 1 }

// kernel: decoder_layer.3
= control target key start
LH: loop header
LB: loop body
LE: loop exit
PB: predicated region body
PF: predicated region fallthrough
CT: control target
= control target key end

     0   :  { %s2715_s0 = inlined_call_operand.hbm [shape: f32[2,16,128], index: 0, kind: input, shape index: {}, may-alias: {0,1}]   ;;  %s2716_s1 = inlined_call_operand.hbm [shape: f32[2,16,128], index: 1, kind: input, shape index: {}, may-alias: {0,1}]   ;;  %s2717_s2 = inlined_call_operand.hbm [shape: bf16[128,128], index: 2, kind: input, shape index: {}]   ;;  %s2718_s3 = inlined_call_operand.vmem [shape: f32[1,128], index: 3, kind: input, shape index: {}]   ;;  %s2719_s4 = inlined_call_operand.hbm [shape: bf16[128,256], index: 4, kind: input, shape index: {}]   ;;  %s2720_s5 = inlined_call_operand.vmem [shape: f32[1,256], index: 5, kind: input, shape index: {}]   ;;  %s2721_s6 = inlined_call_operand.hbm [shape: bf16[128,128], index: 6, kind: input, shape index: {}]   ;;  %s2722_s7 = inlined_call_operand.vmem [shape: f32[1,128], index: 7, kind: input, shape index: {}]   ;;  %s2723_s8 = inlined_call_operand.vmem [shape: f32[1,128], index: 8, kind: input, shape index: {}]   ;;  %s2724_s9 = inlined_call_operand.vmem [shape: f32[1,128], index: 9, kind: input, shape index: {}]   ;;  %s2725_s10 = inlined_call_operand.vmem [shape: f32[2,16,128], index: 10, kind: output, shape index: {}]  }
   0x1   :  { %2738 = sst [smem:[#allocation15_spill]] %s2715_s0 }
   0x2   :  { %2739 = sst [smem:[#allocation16_spill]] %s2717_s2 }
   0x3   :  { %2740 = sst [smem:[#allocation17_spill]] %s2719_s4 }
   0x4   :  { %2741 = sst [smem:[#allocation18_spill]] %s2721_s6 }
   0x5   :  { %2742 = sst [smem:[#allocation19_spill]] %s2723_s8 }
   0x6   :  { %2743 = sst [smem:[#allocation20_spill]] %s2724_s9 }
   0x7   :  { %2744 = sst [smem:[#allocation21_spill]] %s2725_s10 }
   0x8   :  { %15 = vsyncpa [#allocation3], 0 }
   0x9   :  { %17 = vsyncpa [#allocation3 + $0x1], 0 }
   0xa   :  { %18 = vsyncpa [#allocation5], 0 }
   0xb   :  { %20 = vsyncpa [#allocation5 + $0x1], 0 }
   0xc   :  { %21 = vsyncpa [#allocation8], 0  ;;  %s2271_s13 = smov 0   ;;  %s2273_s14 = smov 0  }
   0xd   :  { %s2275_s15 = smov 0   ;;  %s2277_s16 = smov 0  }
   0xe   :  { %s2279_s17 = smov 0   ;;  %s2281_s18 = smov 0  }
   0xf LB: > { %s2730_s19 = sadd.s32 4294967295, %s2199_s18   ;;  %p61_p0 = scmp.ne.s32.totalorder %s2183_s14, %s2179_s13  ;;  %s2199_s18 = sphi %s2281_s18, %s27_s18   ;;  %s2195_s17 = sphi %s2279_s17, %s2772_s17   ;;  %s2191_s16 = sphi %s2277_s16, %s2771_s16   ;;  %s2187_s15 = sphi %s2275_s15, %s2770_s15   ;;  %s2183_s14 = sphi %s2273_s14, %s2769_s14   ;;  %s2179_s13 = sphi %s2271_s13, %s2768_s13  }
  0x10   : > { %p2303_p1 = scmp.eq.s32.totalorder %s2730_s19, 0  ;;  %p1611_p2 = scmp.ge.s32.totalorder %s2199_s18, 1 }
  0x11   : > { %p294_p3 = scmp.lt.s32.totalorder %s2199_s18, 3  ;;  %s2201_s23 = smov [#allocation6]  }
  0x12   : > { %s2745_s20 = scalar_select %p2303_p1, 1, 0 }
  0x13   : > { %p2311_p4 = por %p2303_p1, %p61_p0  ;;  %p2315_p5 = pnand %p1611_p2, %p294_p3 }
  0x14   : > { %s306_s24 = sshll.u32 %s2201_s23, 4  ;;  %s2202_s26 = smov [#allocation7]   ;;  %s307_s24 = int_to_ptr.vmem [resolvable:$true] %s306_s24 }
  0x15   : > { %s2746_s21 = scalar_select %p2311_p4, 1, 0 }
  0x16   : > { %s2747_s22 = scalar_select %p2315_p5, 1, 0 }
  0x17   : > { %p1817_p6 = pneg %p2315_p5  ;;  %s322_s27 = sshll.u32 %s2202_s26, 4  ;;  %s2327_s27 = int_to_ptr.vmem [resolvable:$true] %s322_s27 }
  0x18   : > { %s2749_s2 = sld [smem:[#allocation16_spill]] }
  0x19   : > { %p2323_p7 = pnand %p1817_p6, %p2303_p1 }
  0x1b   : > { %p2337_p9 = pneg %p2323_p7 }
  0x1e   : > { %s1993_s30 = scalar_lea.hbm %s2749_s2, 1024 }
  0x1f   : > { %p1994_p8 = scmp.ne.s32.totalorder %s2749_s2, %s1993_s30  ;;  %p2000_p12 = scmp.lt.u32.totalorder %s1993_s30, %s2749_s2 }
  0x21   : > { %p1996_p10 = pnand %p2337_p9, %p1994_p8 }
  0x23   : > { %p1997_p11 = pneg %p1996_p10 }
  0x25   : > { %p2002_p13 = pnand %p2000_p12, %p1997_p11 }
  0x27   : > { %2005 = shalt.err (!%p2002_p13)
}
  0x28   : > { %s2006_s28 = scalar_lea.vmem %s307_s24, 1024  ;;  %p2014_p6 = scmp.lt.s32.totalorder %s307_s24, %s307_s24 }
  0x29   : > { %p2007_p0 = scmp.ne.s32.totalorder %s307_s24, %s2006_s28  ;;  %p2015_p1 = scmp.lt.s32.totalorder %s2006_s28, %s2006_s28 }
  0x2b   : > { %p2009_p2 = pnand %p2007_p0, %p2337_p9  ;;  %p2016_p4 = por %p2015_p1, %p2014_p6 }
  0x2d   : > { %p2010_p3 = pneg %p2009_p2 }
  0x2f   : > { %p2017_p5 = pnand %p2016_p4, %p2010_p3 }
  0x31   : > { %2020 = shalt.err (!%p2017_p5)
}
  0x32   : > { %s2731_s29 = smov 64   ;;  %s2732_s11 = smov 4  }
  0x33   : > { %1820 = dma.hbm_to_vmem [thread:$0]  (!%p2323_p7), %s2749_s2, 1024, %s307_s24, [#allocation5], %s2731_s29, %s2731_s29, %s2732_s11  }
  0x34   : > { %s2751_s4 = sld [smem:[#allocation17_spill]] }
  0x3a   : > { %s2021_s19 = scalar_lea.hbm %s2751_s4, 2048 }
  0x3b   : > { %p2022_p1 = scmp.ne.s32.totalorder %s2751_s4, %s2021_s19  ;;  %p2028_p8 = scmp.lt.u32.totalorder %s2021_s19, %s2751_s4 }
  0x3d   : > { %p2024_p4 = pnand %p2022_p1, %p2337_p9 }
  0x3f   : > { %p2025_p5 = pneg %p2024_p4 }
  0x41   : > { %p2030_p10 = pnand %p2028_p8, %p2025_p5 }
  0x43   : > { %2033 = shalt.err (!%p2030_p10)
}
  0x44   : > { %s2034_s24 = scalar_lea.vmem %s2327_s27, 2048  ;;  %p2042_p0 = scmp.lt.s32.totalorder %s2327_s27, %s2327_s27 }
  0x45   : > { %p2035_p11 = scmp.ne.s32.totalorder %s2327_s27, %s2034_s24  ;;  %p2043_p2 = scmp.lt.s32.totalorder %s2034_s24, %s2034_s24 }
  0x47   : > { %p2037_p12 = pnand %p2035_p11, %p2337_p9  ;;  %p2044_p3 = por %p2043_p2, %p2042_p0 }
  0x49   : > { %p2038_p13 = pneg %p2037_p12 }
  0x4b   : > { %p2045_p6 = pnand %p2044_p3, %p2038_p13 }
  0x4d   : > { %2048 = shalt.err (!%p2045_p6)
}
  0x4e   : > { %s2733_s10 = smov 128   ;;  %s2735_s8 = smov 8  }
  0x4f   : > { %1823 = dma.hbm_to_vmem [thread:$0]  (!%p2323_p7), %s2751_s4, 2048, %s2327_s27, [#allocation8], %s2733_s10, %s2733_s10, %s2735_s8  }
  0x50   : > { %s2207_s30 = smov [#allocation9]   ;;  %s2752_s6 = sld [smem:[#allocation18_spill]] }
  0x51   : > { %s338_s12 = sshll.u32 %s2207_s30, 4  ;;  %s339_s12 = int_to_ptr.vmem [resolvable:$true] %s338_s12 }
  0x56   : > { %s2049_s28 = scalar_lea.hbm %s2752_s6, 1024 }
  0x57   : > { %p2050_p1 = scmp.ne.s32.totalorder %s2752_s6, %s2049_s28  ;;  %p2056_p8 = scmp.lt.u32.totalorder %s2049_s28, %s2752_s6 }
  0x59   : > { %p2052_p4 = pnand %p2050_p1, %p2337_p9 }
  0x5b   : > { %p2053_p5 = pneg %p2052_p4 }
  0x5d   : > { %p2058_p10 = pnand %p2056_p8, %p2053_p5 }
  0x5f   : > { %2061 = shalt.err (!%p2058_p10)
}
  0x60   : > { %s2062_s27 = scalar_lea.vmem %s339_s12, 1024  ;;  %p2070_p0 = scmp.lt.s32.totalorder %s339_s12, %s339_s12 }
  0x61   : > { %p2063_p11 = scmp.ne.s32.totalorder %s339_s12, %s2062_s27  ;;  %p2071_p2 = scmp.lt.s32.totalorder %s2062_s27, %s2062_s27 }
  0x63   : > { %p2065_p12 = pnand %p2063_p11, %p2337_p9  ;;  %p2072_p3 = por %p2071_p2, %p2070_p0 }
  0x65   : > { %p2066_p13 = pneg %p2065_p12 }
  0x67   : > { %p2073_p6 = pnand %p2072_p3, %p2066_p13 }
  0x69   : > { %2076 = shalt.err (!%p2073_p6)
}
  0x6a   : > { %s2753_s29 = smov 4   ;;  %s2754_s9 = smov 64  }
  0x6b   : > { %1826 = dma.hbm_to_vmem [thread:$0]  (!%p2323_p7), %s2752_s6, 1024, %s339_s12, [#allocation8], %s2754_s9, %s2754_s9, %s2753_s29  }
  0x6c   : > { %s39_s13 = sadd.s32 1, %s2195_s17  ;;  %s48_s25 = sadd.s32 1, %s2187_s15 }
  0x6d   : > { %p41_p9 = scmp.ge.s32.totalorder %s39_s13, 2  ;;  %p55_p1 = scmp.ne.s32.totalorder %s2187_s15, %s2183_s14 }
  0x6e   : > { %p56_p4 = scmp.eq.s32.totalorder %s2199_s18, 0  ;;  %p1837_p8 = scmp.lt.s32.totalorder %s2199_s18, 2 }
  0x6f   : > { %s2774_s13 = smov (%p41_p9, %s39_s13), 0  ;;  %s361_s30 = sand.u32 1, %s2187_s15  }
  0x70   : > { %2755 = sst [smem:[#allocation14_spill]] %s2774_s13  ;;  %p57_p5 = por %p56_p4, %p55_p1 }
  0x71   : > { %s43_s19 = ssub.s32 %s2195_s17, %s2774_s13  ;;  %s2414_s23 = sshll.u32 %s361_s30, 4 }
  0x72   : > { %p46_p10 = scmp.eq.s32.totalorder %s43_s19, 0  ;;  %s1676_s26 = sshll.u32 %s2195_s17, 8 }
  0x73   : > { %s2756_s0 = sld [smem:[#allocation15_spill]]  ;;  %s365_s29 = scalar_lea.vmem [#allocation2], %s2414_s23 }
  0x74   : > { %s2418_s28 = scalar_select %p46_p10, %s2187_s15, %s48_s25  }
  0x75   : > { %s374_s9 = sshll.u32 %s365_s29, 4  ;;  %p2426_p7 = pnand %p1837_p8, %p57_p5  ;;  %s2430_s9 = int_to_ptr.vmem [resolvable:$true] %s374_s9 }
  0x76   : > { %s2435_s19 = scalar_lea.hbm %s2716_s1, %s1676_s26  ;;  %s2437_s12 = scalar_lea.sflag [#allocation3], %s361_s30 }
  0x77   : > { %p2079_p12 = pneg %p2426_p7 }
  0x79   : > { %s2423_s27 = scalar_lea.hbm %s2756_s0, %s1676_s26  ;;  %s2082_s8 = scalar_lea.hbm %s2756_s0, 512 }
  0x7a   : > { %s2077_s24 = scalar_lea.hbm %s2423_s27, 256  ;;  %p2083_p2 = scmp.lt.u32.totalorder %s2423_s27, %s2756_s0 }
  0x7b   : > { %p2078_p11 = scmp.ne.s32.totalorder %s2423_s27, %s2077_s24  ;;  %p2084_p3 = scmp.lt.u32.totalorder %s2082_s8, %s2077_s24 }
  0x7c   : > { %p2086_p9 = scmp.lt.u32.totalorder %s2077_s24, %s2423_s27 }
  0x7d   : > { %p2080_p13 = pnand %p2079_p12, %p2078_p11  ;;  %p2085_p6 = por %p2084_p3, %p2083_p2 }
  0x7f   : > { %p2081_p0 = pneg %p2080_p13  ;;  %p2087_p1 = por %p2086_p9, %p2085_p6 }
  0x81   : > { %p2088_p4 = pnand %p2087_p1, %p2081_p0 }
  0x83   : > { %2091 = shalt.err (!%p2088_p4)
}
  0x84   : > { %s2092_s30 = scalar_lea.vmem %s2430_s9, 256  ;;  %s2208_s10 = smov [#allocation2]  }
  0x85   : > { %p2093_p5 = scmp.ne.s32.totalorder %s2430_s9, %s2092_s30  ;;  %s2097_s26 = sshll.u32 %s2208_s10, 4  ;;  %s2098_s26 = int_to_ptr.vmem [resolvable:$false] %s2097_s26 }
  0x86   : > { %s2099_s4 = scalar_lea.vmem %s2098_s26, 512  ;;  %p2100_p11 = scmp.lt.s32.totalorder %s2430_s9, %s2098_s26 }
  0x87   : > { %p2095_p8 = pnand %p2093_p5, %p2079_p12  ;;  %p2101_p13 = scmp.lt.s32.totalorder %s2099_s4, %s2092_s30 }
  0x89   : > { %p2096_p10 = pneg %p2095_p8  ;;  %p2102_p2 = por %p2101_p13, %p2100_p11 }
  0x8b   : > { %p2103_p3 = pnand %p2102_p2, %p2096_p10 }
  0x8d   : > { %2106 = shalt.err (!%p2103_p3)
}
  0x8e   : > { %s2758_s6 = smov 8   ;;  %s2759_s8 = smov 128  }
  0x8f   : > { %1830 = dma.hbm_to_vmem [thread:$0]  (!%p2426_p7), %s2423_s27, 256, %s2430_s9, %s2437_s12, %s2759_s8, %s2759_s8, %s2758_s6  }
  0x90   : > { %s388_s11 = scalar_lea.vmem [#allocation4], %s2414_s23  ;;  %s384_s24 = sand.u32 1, %s2199_s18  }
  0x91   : > { %s395_s25 = sshll.u32 %s388_s11, 4  ;;  %s2472_s29 = scalar_lea.sflag [#allocation5], %s384_s24  ;;  %s2470_s25 = int_to_ptr.vmem [resolvable:$true] %s395_s25 }
  0x92   : > { %s2107_s30 = scalar_lea.hbm %s2435_s19, 256  ;;  %s2112_s4 = scalar_lea.hbm %s2716_s1, 512 }
  0x93   : > { %p2108_p0 = scmp.ne.s32.totalorder %s2435_s19, %s2107_s30  ;;  %p2113_p1 = scmp.lt.u32.totalorder %s2435_s19, %s2716_s1 }
  0x94   : > { %p2114_p4 = scmp.lt.u32.totalorder %s2112_s4, %s2107_s30  ;;  %p2116_p8 = scmp.lt.u32.totalorder %s2107_s30, %s2435_s19 }
  0x95   : > { %p2110_p6 = pnand %p2108_p0, %p2079_p12 }
  0x96   : > { %p2115_p5 = por %p2114_p4, %p2113_p1 }
  0x97   : > { %p2111_p9 = pneg %p2110_p6 }
  0x98   : > { %p2117_p10 = por %p2116_p8, %p2115_p5 }
  0x9a   : > { %p2118_p11 = pnand %p2117_p10, %p2111_p9 }
  0x9c   : > { %2121 = shalt.err (!%p2118_p11)
}
  0x9d   : > { %s2122_s23 = scalar_lea.vmem %s2470_s25, 256  ;;  %s2209_s27 = smov [#allocation4]  }
  0x9e   : > { %p2123_p13 = scmp.ne.s32.totalorder %s2470_s25, %s2122_s23  ;;  %s2127_s9 = sshll.u32 %s2209_s27, 4  ;;  %s2128_s9 = int_to_ptr.vmem [resolvable:$false] %s2127_s9 }
  0x9f   : > { %s2129_s0 = scalar_lea.vmem %s2128_s9, 512  ;;  %p2130_p0 = scmp.lt.s32.totalorder %s2470_s25, %s2128_s9 }
  0xa0   : > { %p2125_p2 = pnand %p2123_p13, %p2079_p12  ;;  %p2131_p6 = scmp.lt.s32.totalorder %s2129_s0, %s2122_s23 }
  0xa2   : > { %p2126_p3 = pneg %p2125_p2  ;;  %p2132_p1 = por %p2131_p6, %p2130_p0 }
  0xa4   : > { %p2133_p4 = pnand %p2132_p1, %p2126_p3 }
  0xa6   : > { %2136 = shalt.err (!%p2133_p4)
}
  0xa7   : > { %1833 = dma.hbm_to_vmem [thread:$0]  (!%p2426_p7), %s2435_s19, 256, %s2470_s25, %s2472_s29, %s2759_s8, %s2759_s8, %s2758_s6  }
  0xa8   : > { %p2760_p12 = scmp.ne.s32.totalorder %s2747_s22, 0 }
  0xa9   : > { %s409_s13 = sand.u32 (!%p2760_p12), 1, %s2183_s14   ;;  %p2761_p9 = scmp.ne.s32.totalorder (!%p2760_p12), %s2746_s21, 0 }
  0xaa   : > { %407 = sbr.rel (%p2760_p12) target bundleno = 2276 (0x8e4), region = 60  ;;  %s2504_s12 = sshll.u32 (!%p2760_p12), %s409_s13, 4 }
  0xab   : > { %s410_s11 = scalar_lea.sflag (!%p2760_p12), [#allocation3], %s409_s13  ;;  %s413_s24 = scalar_lea.vmem (!%p2760_p12), [#allocation2], %s2504_s12 }
  0xb1   : > { %2162 = dma.done.wait (%p2761_p9), %s410_s11, 256  }
  0xb2   : > { %2164 = vsyncadd (%p2761_p9), %s410_s11, 4294967040  ;;  %s2762_s2 = sadd.s32 4294967295, %s2199_s18   ;;  %s422_s6 = scalar_lea.vmem [#allocation4], %s2504_s12 }
  0xb3   : > { %s418_s19 = sand.u32 1, %s2762_s2  }
  0xb4   : > { %s419_s22 = scalar_lea.sflag [#allocation5], %s418_s19 }
  0xb5   : > { %2166 = dma.done.wait (%p2761_p9), %s419_s22, 256  }
  0xb6   : > { %2168 = vsyncadd (%p2761_p9), %s419_s22, 4294967040  ;;  %p2763_p7 = scmp.ne.s32.totalorder %s2745_s20, 0 }
  0xb8   : > { %2170 = dma.done.wait (%p2763_p7), [#allocation5], 1024  }
  0xb9   : > { %2172 = vsyncadd (%p2763_p7), [#allocation5], 4294966272 }
  0xba   : > { %2174 = dma.done.wait (%p2763_p7), [#allocation8], 3072  }
  0xbb   : > { %2176 = vsyncadd (%p2763_p7), [#allocation8], 4294964224  ;;  %v2210_v0 = vmov 0.0   ;;  %v2211_v1 = vmov 0   ;;  %vm2212_vm0 = vmmov 0   ;;  %v1922_v5 = vld [vmem:[#allocation6] sm:$0xff]   ;;  %v630_v32 = vlaneseq }
  0xbc   : > { %1713 = vmatprep.subr.bf16.mxu0 %v2210_v0  ;;  %752 = vmatprep.mubr.bf16.mxu1 %v2211_v1  ;;  %v1917_v2 = vld [vmem:[#allocation7 + $0x4] ss:$8 sps:$4 sm:$0xff]   ;;  %v1919_v3 = vld [vmem:[#allocation7] ss:$8 sps:$4 sm:$0xff]   ;;  %v1920_v4 = vld [vmem:[#allocation7 + $0x14] ss:$8 sps:$4 sm:$0xff]  }
  0xbd   : > { %1729 = vmatprep.mubr.msk.bf16.mxu0 %vm2212_vm0, %v2210_v0  ;;  %720 = vmatprep.subr.bf16.mxu1 %v1917_v2  ;;  %v1923_v6 = vld [vmem:[#allocation7 + $0x10] ss:$8 sps:$4 sm:$0xff]   ;;  %v1924_v7 = vld [vmem:[#allocation7 + $0x24] ss:$8 sps:$4 sm:$0xff]   ;;  %v1927_v9 = vld [vmem:[#allocation7 + $0x20] ss:$8 sps:$4 sm:$0xff]  }
  0xbe   : > { %721 = vmatpush1.bf16.msra.mxu1 %v1919_v3  ;;  %1714 = vmatpush3.bf16.msra.mxu0 %v1922_v5  ;;  %v1926_v8 = vld [vmem:[#allocation6 + $0x8] sm:$0xff]   ;;  %v1928_v10 = vld [vmem:[#allocation7 + $0x34] ss:$8 sps:$4 sm:$0xff]   ;;  %v1931_v12 = vld [vmem:[#allocation7 + $0x30] ss:$8 sps:$4 sm:$0xff]   ;;  %v2556_v33 = vshrl.u32 %v630_v32, 7 }
  0xbf   : > { %722 = vmatprep.subr.bf16.mxu1 %v1920_v4  ;;  %1715 = vmatprep.subr.bf16.mxu0 %v2210_v0  ;;  %v1930_v11 = vld [vmem:[#allocation6 + $0x10] sm:$0xff]   ;;  %v1932_v13 = vld [vmem:[#allocation7 + $0x44] ss:$8 sps:$4 sm:$0xff]   ;;  %v1934_v14 = vld [vmem:[#allocation6 + $0x18] sm:$0xff]   ;;  %vm777_vm1 = vcmask 261120   ;;  %v2575_v60 = vand.u32 127, %v630_v32 }
  0xc0   : > { %v1935_v15 = vld [vmem:[#allocation7 + $0x40] ss:$8 sps:$4 sm:$0xff]   ;;  %v1936_v16 = vld [vmem:[#allocation7 + $0x54] ss:$8 sps:$4 sm:$0xff]   ;;  %v1939_v18 = vld [vmem:[#allocation7 + $0x50] ss:$8 sps:$4 sm:$0xff]  }
  0xc1   : > { %v1938_v17 = vld [vmem:[#allocation6 + $0x20] sm:$0xff]   ;;  %v1942_v20 = vld [vmem:[#allocation6 + $0x28] sm:$0xff]   ;;  %v1944_v22 = vld [vmem:[#allocation7 + $0x74] ss:$8 sps:$4 sm:$0xff]   ;;  %v632_v34 = vsub.s32 0, %v2556_v33  ;;  %v636_v36 = vsub.s32 1, %v2556_v33  ;;  %vm775_vm2 = vcmp.le.s32.totalorder %v2575_v60, %v2556_v33 }
  0xc2   : > { %723 = vmatpush1.bf16.msra.mxu1 %v1923_v6  ;;  %1716 = vmatpush3.bf16.msra.mxu0 %v1926_v8  ;;  %v1940_v19 = vld [vmem:[#allocation7 + $0x64] ss:$8 sps:$4 sm:$0xff]   ;;  %v1943_v21 = vld [vmem:[#allocation7 + $0x60] ss:$8 sps:$4 sm:$0xff]   ;;  %v1946_v23 = vld [vmem:[#allocation6 + $0x30] sm:$0xff]   ;;  %v2578_v61 = vadd.s32 8, %v2556_v33 }
  0xc3   : > { %724 = vmatprep.subr.bf16.mxu1 %v1924_v7  ;;  %1717 = vmatprep.subr.bf16.mxu0 %v2210_v0  ;;  %v1947_v24 = vld [vmem:[#allocation7 + $0x70] ss:$8 sps:$4 sm:$0xff]   ;;  %v628_v35 = vld [vmem:[%s2720_s5] sm:$0x3]  ;;  %vm827_vm3 = vcmask 130048   ;;  %s2213_s29 = smov 96  }
  0xc4   : > { %v494_v25 = vld [vmem:[%s422_s6] sm:$0xff]  ;;  %v495_v26 = vld [vmem:[%s422_s6 + $0x8] sm:$0xff]  ;;  %v633_v37 = vrot.slane %v628_v35, %v632_v34  ;;  %v637_v39 = vrot.slane %v628_v35, %v636_v36  ;;  %vm776_vm4 = vcmp.le.s32.totalorder %v2575_v60, %v2578_v61  ;;  %s2214_s30 = smov 32   ;;  %s2215_s10 = smov 64   ;;  %vm1293_vm5 = vcmask 523264  }
  0xc5   : > { %v1948_v27 = vld [vmem:[#allocation6 + $0x38] sm:$0xff]   ;;  %v2541_v28 = vld [vmem:[%s413_s24] sm:$0xff]  ;;  %v611_v30 = vpack.c.bf16 %v495_v26, %v494_v25  ;;  %vm1296_vm6 = vcmask 785408   ;;  %p482_p5 = scmp.lt.s32.totalorder %s2191_s16, 1  ;;  %s2764_s9 = sld [smem:[#allocation19_spill]] }
  0xc6   : > { %725 = vmatpush1.bf16.msra.mxu1 %v1927_v9  ;;  %1718 = vmatpush3.bf16.msra.mxu0 %v1930_v11  ;;  %v2545_v29 = vld [vmem:[%s413_s24 + $0x8] sm:$0xff]  ;;  %v1630_v40 = vld [vmem:[%s2718_s3] ss:$0 sm:$0xff]  ;;  %s2765_s11 = sld [smem:[#allocation20_spill]]  ;;  %s2766_s19 = sld [smem:[#allocation21_spill]] }
  0xc7   : > { %726 = vmatprep.subr.bf16.mxu1 %v1928_v10  ;;  %1719 = vmatprep.subr.bf16.mxu0 %v2210_v0  ;;  %v496_v31 = vpack.c.bf16 %v2545_v29, %v2541_v28  ;;  %s2776_s16 = smov (!%p482_p5, %s2191_s16), 1 }
  0xc8   : > { %s1678_s0 = sshll.u32 %s2776_s16, 4 }
  0xca   : > { %727 = vmatpush1.bf16.msra.mxu1 %v1931_v12  ;;  %1720 = vmatpush3.bf16.msra.mxu0 %v1934_v14 }
  0xcb   : > { %728 = vmatprep.subr.bf16.mxu1 %v1932_v13  ;;  %1721 = vmatprep.subr.bf16.mxu0 %v2210_v0 }
  0xcc   : > { %s489_s22 = scalar_lea.vmem %s2766_s19, %s1678_s0 }
  0xce   : > { %729 = vmatpush1.bf16.msra.mxu1 %v1935_v15  ;;  %1722 = vmatpush3.bf16.msra.mxu0 %v1938_v17 }
  0xcf   : > { %730 = vmatprep.subr.bf16.mxu1 %v1936_v16  ;;  %1723 = vmatprep.subr.bf16.mxu0 %v2210_v0 }
  0xd2   : > { %731 = vmatpush1.bf16.msra.mxu1 %v1939_v18  ;;  %1724 = vmatpush3.bf16.msra.mxu0 %v1942_v20 }
  0xd3   : > { %732 = vmatprep.subr.bf16.mxu1 %v1940_v19  ;;  %1725 = vmatprep.subr.bf16.mxu0 %v2210_v0 }
  0xd6   : > { %733 = vmatpush1.bf16.msra.mxu1 %v1943_v21  ;;  %1726 = vmatpush3.bf16.msra.mxu0 %v1946_v23 }
  0xd7   : > { %734 = vmatprep.subr.bf16.mxu1 %v1944_v22  ;;  %1727 = vmatprep.subr.bf16.mxu0 %v2210_v0 }
  0xda   : > { %735 = vmatpush1.bf16.msra.mxu1 %v1947_v24  ;;  %1728 = vmatpush3.bf16.msra.mxu0 %v1948_v27 }
  0xdb   : > { %1733 = vmatprep.subr.bf16.mxu1 %v2210_v0  ;;  %1757 = vmatprep.subr.bf16.mxu0 %v2210_v0 }
  0xdd   : > { %753 = vmatmul.mubr.bf16.vlgmr.msra.gmra.mrb[0].mxu1 %v611_v30  ;;  %1730 = vmatmul.mubr.bf16.vlgmr.msra.gmra.mrb[0].mxu0 %v496_v31 }
  0xde   : > { %1735 = vmatprep.mubr.msk.bf16.mxu1 %vm2212_vm0, %v2210_v0  ;;  %1759 = vmatprep.mubr.msk.bf16.mxu0 %vm2212_vm0, %v2210_v0 }
 0x1b0   : > { %v754_v38 = vpop.f32.mrb[0].mxu1  ;;  %v602_v43 = vpop.f32.mrb[0].mxu0 }
 0x1b1   : > { %v756_v41 = vpop.f32.mrb[1].mxu1  ;;  %v755_v44 = vadd.f32 %v754_v38, %v633_v37  ;;  %v603_v47 = vadd.f32 %v1630_v40, %v602_v43  ;;  %v1731_v48 = vpop.f32.mrb[1].mxu0 }
 0x1b2   : > { %v758_v42 = vpop.f32.mrb[2].mxu1  ;;  %v757_v49 = vadd.f32 %v756_v41, %v637_v39  ;;  %v605_v51 = vpop.f32.mrb[2].mxu0 }
 0x1b3   : > { %v759_v45 = vadd.f32 %v758_v42, %v633_v37  ;;  %v760_v46 = vpop.f32.mrb[3].mxu1  ;;  %v609_v53 = vmul.f32 0.17677669, %v603_v47  ;;  %v606_v54 = vadd.f32 %v1630_v40, %v605_v51  ;;  %v1732_v55 = vpop.f32.mrb[3].mxu0 }
 0x1b4   : > { %v761_v50 = vadd.f32 %v760_v46, %v637_v39 }
 0x1b5   : > { %v764_v52 = vpack.c.bf16 %v759_v45, %v755_v44  ;;  %v610_v57 = vmul.f32 0.17677669, %v606_v54 }
 0x1b6   : > { %v2566_v56 = vpack.c.bf16 %v761_v50, %v757_v49 }
 0x1b7   : > { %v782_v58 = vsel %vm777_vm1, %v764_v52, 0  ;;  %v763_v59 = vpack.c.bf16 %v610_v57, %v609_v53 }
 0x1b8   : > { %1734 = vmatpush3.bf16.xpose.msra.mxu1 %v782_v58 }
 0x1b9   : > { %1739 = vmatprep.subr.bf16.mxu1 %v2210_v0 }
 0x1bf   : > { %1736 = vmatmul.mubr.msk.bf16.vlgmr.msra.gmra.mrb[4].mxu1 %vm777_vm1, %v763_v59 }
 0x1c0   : > { %1740 = vmatpush3.bf16.msra.mxu1 %v2566_v56  ;;  %1741 = vmatprep.mubr.msk.bf16.mxu1 %vm2212_vm0, %v2210_v0 }
 0x1c1   : > { %1745 = vmatprep.subr.bf16.mxu1 %v2210_v0 }
 0x292   : > { %v818_v62 = vpop.f32.mrb[4].mxu1 }
 0x293   : > { %v825_v63 = vsel %vm775_vm2, %v818_v62, -1e+30  ;;  %v1737_v1 = vpop.f32.mrb[5].mxu1 }
 0x294   : > { %v821_v2 = vpop.f32.mrb[6].mxu1  ;;  %v828_v3 = vsel %vm827_vm3, %v825_v63, -inf }
 0x295   : > { %v826_v4 = vsel %vm776_vm4, %v821_v2, -1e+30  ;;  %829 = vmax.xlane.f32.xlu0 %v828_v3  ;;  %v1738_v5 = vpop.f32.mrb[7].mxu1 }
 0x296   : > { %v831_v6 = vsel %vm827_vm3, %v826_v4, -inf }
 0x299   : > { %832 = vmax.xlane.f32.xlu0 %v831_v6 }
 0x2af   : > { %899 = vrot.lane.b32.xlu0 %v764_v52, %s2213_s29 }
 0x2b3   : > { %1146 = vrot.lane.b32.xlu0 %v764_v52, %s2214_s30 }
 0x322   : > { %v830_v7 = vpop.xlane.xlu0 %829 }
 0x323   : > { %v834_v8 = vsub.f32 %v825_v63, %v830_v7 }
 0x325   : > { %v836_v9 = vmul.f32 1.442695, %v834_v8 }
 0x326   : > { %v833_v10 = vpop.xlane.xlu0 %832 }
 0x327   : > { %1957 = vpow2.f32 %v836_v9  ;;  %v835_v11 = vsub.f32 %v826_v4, %v833_v10 }
 0x329   : > { %v838_v12 = vmul.f32 1.442695, %v835_v11 }
 0x32a   : > { %v900_v20 = vpop.permute.xlu0 %899 }
 0x32b   : > { %1959 = vpow2.f32 %v838_v12  ;;  %v905_v31 = vsel %vm777_vm1, %v900_v20, 0 }
 0x32e   : > { %v1147_v27 = vpop.permute.xlu0 %1146 }
 0x32f   : > { %v1152_v34 = vsel %vm777_vm1, %v1147_v27, 0 }
 0x331   : > { %v1958_v13 = vpop.eup %1957 }
 0x332   : > { %v840_v14 = vsel %vm827_vm3, %v1958_v13, 0.0 }
 0x333   : > { %841 = vadd.xlane.f32.xlu1 %v840_v14 }
 0x335   : > { %v1960_v15 = vpop.eup %1959 }
 0x336   : > { %v843_v16 = vsel %vm827_vm3, %v1960_v15, 0.0 }
 0x337   : > { %844 = vadd.xlane.f32.xlu1 %v843_v16 }
 0x348   : > { %896 = vrot.lane.b32.xlu1 %v763_v59, %s2213_s29 }
 0x34c   : > { %1023 = vrot.lane.b32.xlu1 %v764_v52, %s2215_s10 }
 0x350   : > { %1021 = vrot.lane.b32.xlu1 %v763_v59, %s2215_s10 }
 0x354   : > { %1144 = vrot.lane.b32.xlu1 %v763_v59, %s2214_s30 }
 0x3c0   : > { %v842_v17 = vpop.xlane.xlu1 %841 }
 0x3c1   : > { %1961 = vrcp.f32 %v842_v17 }
 0x3c4   : > { %v845_v18 = vpop.xlane.xlu1 %844 }
 0x3c5   : > { %1963 = vrcp.f32 %v845_v18 }
 0x3c8   : > { %v897_v19 = vpop.permute.xlu1 %896 }
 0x3cb   : > { %v1962_v22 = vpop.eup %1961 }
 0x3cc   : > { %v1024_v21 = vpop.permute.xlu1 %1023  ;;  %v847_v25 = vmul.f32 %v1962_v22, %v1958_v13 }
 0x3cd   : > { %v1029_v23 = vsel %vm777_vm1, %v1024_v21, 0 }
 0x3ce   : > { %1758 = vmatpush3.bf16.xpose.msra.mxu0 %v1029_v23 }
 0x3cf   : > { %v1964_v24 = vpop.eup %1963  ;;  %1769 = vmatprep.subr.bf16.mxu0 %v2210_v0 }
 0x3d0   : > { %v849_v26 = vmul.f32 %v1964_v24, %v1960_v15  ;;  %v1022_v32 = vpop.permute.xlu1 %1021 }
 0x3d2   : > { %v850_v30 = vpack.c.bf16 %v849_v26, %v847_v25 }
 0x3d4   : > { %1742 = vmatmul.mubr.msk.bf16.vlgmr.msra.gmra.mrb[8].mxu1 %vm827_vm3, %v850_v30  ;;  %v1145_v35 = vpop.permute.xlu1 %1144 }
 0x3d5   : > { %1746 = vmatpush3.bf16.xpose.msra.mxu1 %v905_v31  ;;  %1760 = vmatmul.mubr.msk.bf16.vlgmr.msra.gmra.mrb[4].mxu0 %vm777_vm1, %v1022_v32 }
 0x3d6   : > { %1770 = vmatpush3.bf16.xpose.msra.mxu0 %v1152_v34  ;;  %1747 = vmatprep.mubr.msk.bf16.mxu1 %vm2212_vm0, %v2210_v0 }
 0x3d7   : > { %1771 = vmatprep.mubr.msk.bf16.mxu0 %vm2212_vm0, %v2210_v0  ;;  %1751 = vmatprep.subr.bf16.mxu1 %v2210_v0 }
 0x3d8   : > { %1781 = vmatprep.subr.bf16.mxu0 %v2210_v0 }
 0x3dc   : > { %1748 = vmatmul.mubr.msk.bf16.vlgmr.msra.gmra.mrb[12].mxu1 %vm777_vm1, %v897_v19 }
 0x3dd   : > { %1772 = vmatmul.mubr.msk.bf16.vlgmr.msra.gmra.mrb[8].mxu0 %vm777_vm1, %v1145_v35  ;;  %1753 = vmatprep.mubr.msk.bf16.mxu1 %vm2212_vm0, %v2210_v0 }
 0x3de   : > { %1797 = vmatprep.mubr.msk.bf16.mxu0 %vm2212_vm0, %v2210_v0 }
 0x4a7   : > { %v2618_v36 = vpop.f32.mrb[8].mxu1 }
 0x4a8   : > { %v1743_v37 = vpop.f32.mrb[9].mxu1  ;;  %v1065_v38 = vpop.f32.mrb[4].mxu0 }
 0x4a9   : > { %v2620_v39 = vpop.f32.mrb[10].mxu1  ;;  %v1761_v40 = vpop.f32.mrb[5].mxu0  ;;  %v1072_v51 = vsel %vm775_vm2, %v1065_v38, -1e+30 }
 0x4aa   : > { %v1744_v41 = vpop.f32.mrb[11].mxu1  ;;  %v1068_v42 = vpop.f32.mrb[6].mxu0  ;;  %v1074_v59 = vsel %vm827_vm3, %v1072_v51, -inf }
 0x4ab   : > { %v1762_v43 = vpop.f32.mrb[7].mxu0  ;;  %v1073_v62 = vsel %vm776_vm4, %v1068_v42, -1e+30 }
 0x4ac   : > { %v1077_v1 = vsel %vm827_vm3, %v1073_v62, -inf }
 0x4af   : > { %v941_v44 = vpop.f32.mrb[12].mxu1 }
 0x4b0   : > { %v948_v45 = vsel %vm775_vm2, %v941_v44, -1e+30  ;;  %v1749_v46 = vpop.f32.mrb[13].mxu1  ;;  %v1188_v47 = vpop.f32.mrb[8].mxu0 }
 0x4b1   : > { %v944_v48 = vpop.f32.mrb[14].mxu1  ;;  %v1773_v49 = vpop.f32.mrb[9].mxu0  ;;  %v950_v50 = vsel %vm827_vm3, %v948_v45, -inf  ;;  %v1195_v2 = vsel %vm775_vm2, %v1188_v47, -1e+30 }
 0x4b2   : > { %v949_v52 = vsel %vm776_vm4, %v944_v48, -1e+30  ;;  %951 = vmax.xlane.f32.xlu0 %v950_v50  ;;  %v1750_v53 = vpop.f32.mrb[15].mxu1  ;;  %v1191_v54 = vpop.f32.mrb[10].mxu0  ;;  %v1197_v3 = vsel %vm827_vm3, %v1195_v2, -inf }
 0x4b3   : > { %v1774_v55 = vpop.f32.mrb[11].mxu0  ;;  %v953_v57 = vsel %vm827_vm3, %v949_v52, -inf  ;;  %v1196_v58 = vsel %vm776_vm4, %v1191_v54, -1e+30 }
 0x4b4   : > { %954 = vmax.xlane.f32.xlu1 %v953_v57  ;;  %v1200_v63 = vsel %vm827_vm3, %v1196_v58, -inf }
 0x4b6   : > { %1075 = vmax.xlane.f32.xlu0 %v1074_v59 }
 0x4b8   : > { %1201 = vmax.xlane.f32.xlu1 %v1200_v63  ;;  %v1950_v63 = vld [vmem:[#allocation9 + $0x8] sm:$0xff]  }
 0x4ba   : > { %1078 = vmax.xlane.f32.xlu0 %v1077_v1  ;;  %v1951_v1 = vld [vmem:[#allocation9 + $0x10] sm:$0xff]  }
 0x4be   : > { %1198 = vmax.xlane.f32.xlu0 %v1197_v3  ;;  %v1953_v3 = vld [vmem:[#allocation9 + $0x20] sm:$0xff]  }
 0x53f   : > { %v952_v4 = vpop.xlane.xlu0 %951 }
 0x540   : > { %v956_v12 = vsub.f32 %v948_v45, %v952_v4 }
 0x541   : > { %v955_v5 = vpop.xlane.xlu1 %954 }
 0x542   : > { %v957_v13 = vsub.f32 %v949_v52, %v955_v5  ;;  %v958_v16 = vmul.f32 1.442695, %v956_v12  ;;  %v1956_v12 = vld [vmem:[#allocation9 + $0x38] sm:$0xff]  }
 0x543   : > { %v1076_v6 = vpop.xlane.xlu0 %1075 }
 0x544   : > { %v1080_v7 = vsub.f32 %v1072_v51, %v1076_v6  ;;  %v960_v17 = vmul.f32 1.442695, %v957_v13  ;;  %v1954_v6 = vld [vmem:[#allocation9 + $0x28] sm:$0xff]  }
 0x545   : > { %v1202_v61 = vpop.xlane.xlu1 %1201 }
 0x546   : > { %v1082_v8 = vmul.f32 1.442695, %v1080_v7  ;;  %v1204_v9 = vsub.f32 %v1196_v58, %v1202_v61 }
 0x547   : > { %v1079_v10 = vpop.xlane.xlu0 %1078 }
 0x548   : > { %1965 = vpow2.f32 %v1082_v8  ;;  %v1081_v11 = vsub.f32 %v1073_v62, %v1079_v10  ;;  %v1207_v14 = vmul.f32 1.442695, %v1204_v9  ;;  %v1949_v62 = vld [vmem:[#allocation9] sm:$0xff]   ;;  %v1955_v9 = vld [vmem:[#allocation9 + $0x30] sm:$0xff]  }
 0x549   : > { %1782 = vmatpush3.bf16.msra.mxu0 %v1949_v62 }
 0x54a   : > { %v1084_v15 = vmul.f32 1.442695, %v1081_v11  ;;  %1783 = vmatprep.subr.bf16.mxu0 %v2210_v0 }
 0x54b   : > { %v1199_v33 = vpop.xlane.xlu0 %1198 }
 0x54c   : > { %1967 = vpow2.f32 %v1084_v15  ;;  %v1203_v60 = vsub.f32 %v1195_v2, %v1199_v33  ;;  %v1952_v2 = vld [vmem:[#allocation9 + $0x18] sm:$0xff]  }
 0x54d   : > { %1969 = vpow2.f32 %v1207_v14  ;;  %1784 = vmatpush3.bf16.msra.mxu0 %v1950_v63 }
 0x54e   : > { %v1205_v18 = vmul.f32 1.442695, %v1203_v60  ;;  %1785 = vmatprep.subr.bf16.mxu0 %v2210_v0 }
 0x550   : > { %1971 = vpow2.f32 %v1205_v18 }
 0x551   : > { %1973 = vpow2.f32 %v958_v16  ;;  %1786 = vmatpush3.bf16.msra.mxu0 %v1951_v1  ;;  %v1672_v1 = vld [vmem:[%s2764_s9] ss:$0 sm:$0xff] }
 0x552   : > { %v1966_v19 = vpop.eup %1965  ;;  %1975 = vpow2.f32 %v960_v17  ;;  %1787 = vmatprep.subr.bf16.mxu0 %v2210_v0 }
 0x553   : > { %v1086_v20 = vsel %vm827_vm3, %v1966_v19, 0.0 }
 0x554   : > { %1087 = vadd.xlane.f32.xlu0 %v1086_v20 }
 0x555   : > { %1788 = vmatpush3.bf16.msra.mxu0 %v1952_v2 }
 0x556   : > { %v1968_v21 = vpop.eup %1967  ;;  %1789 = vmatprep.subr.bf16.mxu0 %v2210_v0 }
 0x557   : > { %v1089_v22 = vsel %vm827_vm3, %v1968_v21, 0.0  ;;  %v1970_v23 = vpop.eup %1969 }
 0x558   : > { %1090 = vadd.xlane.f32.xlu1 %v1089_v22  ;;  %v1212_v27 = vsel %vm827_vm3, %v1970_v23, 0.0 }
 0x559   : > { %1790 = vmatpush3.bf16.msra.mxu0 %v1953_v3  ;;  %v1673_v3 = vld [vmem:[%s2765_s11] ss:$0 sm:$0xff] }
 0x55a   : > { %v1972_v24 = vpop.eup %1971  ;;  %1791 = vmatprep.subr.bf16.mxu0 %v2210_v0 }
 0x55b   : > { %v1974_v25 = vpop.eup %1973  ;;  %v1209_v26 = vsel %vm827_vm3, %v1972_v24, 0.0 }
 0x55c   : > { %v1976_v30 = vpop.eup %1975  ;;  %1210 = vadd.xlane.f32.xlu0 %v1209_v26  ;;  %1213 = vadd.xlane.f32.xlu1 %v1212_v27  ;;  %v962_v31 = vsel %vm827_vm3, %v1974_v25, 0.0 }
 0x55d   : > { %v965_v32 = vsel %vm827_vm3, %v1976_v30, 0.0  ;;  %1792 = vmatpush3.bf16.msra.mxu0 %v1954_v6 }
 0x55e   : > { %1793 = vmatprep.subr.bf16.mxu0 %v2210_v0 }
 0x560   : > { %963 = vadd.xlane.f32.xlu0 %v962_v31  ;;  %966 = vadd.xlane.f32.xlu1 %v965_v32 }
 0x561   : > { %1794 = vmatpush3.bf16.msra.mxu0 %v1955_v9 }
 0x562   : > { %1795 = vmatprep.subr.bf16.mxu0 %v2210_v0 }
 0x565   : > { %1796 = vmatpush3.bf16.msra.mxu0 %v1956_v12 }
 0x571   : > { %1097 = vrot.lane.b32.xlu1 %v2566_v56, %s2215_s10 }
 0x575   : > { %1220 = vrot.lane.b32.xlu1 %v2566_v56, %s2214_s30 }
 0x576   : > { %974 = vrot.lane.b32.xlu0 %v2566_v56, %s2213_s29 }
 0x5e1   : > { %v1088_v34 = vpop.xlane.xlu0 %1087 }
 0x5e5   : > { %v1091_v35 = vpop.xlane.xlu1 %1090 }
 0x5e9   : > { %v1211_v37 = vpop.xlane.xlu0 %1210  ;;  %v1214_v38 = vpop.xlane.xlu1 %1213 }
 0x5ed   : > { %v964_v40 = vpop.xlane.xlu0 %963  ;;  %v967_v41 = vpop.xlane.xlu1 %966 }
 0x5ee   : > { %1977 = vrcp.f32 %v964_v40  ;;  %v1671_v40 = vld [vmem:[%s2722_s7] ss:$0 sm:$0xff] }
 0x5ef   : > { %1979 = vrcp.f32 %v967_v41 }
 0x5f0   : > { %1981 = vrcp.f32 %v1091_v35 }
 0x5f1   : > { %v975_v42 = vpop.permute.xlu0 %974  ;;  %1983 = vrcp.f32 %v1088_v34  ;;  %v1098_v48 = vpop.permute.xlu1 %1097 }
 0x5f2   : > { %1752 = vmatpush3.bf16.msra.mxu1 %v975_v42  ;;  %1985 = vrcp.f32 %v1211_v37 }
 0x5f3   : > { %1763 = vmatprep.subr.bf16.mxu1 %v2210_v0  ;;  %1987 = vrcp.f32 %v1214_v38 }
 0x5f5   : > { %v1221_v55 = vpop.permute.xlu1 %1220 }
 0x5f8   : > { %v1978_v43 = vpop.eup %1977 }
 0x5f9   : > { %v1980_v44 = vpop.eup %1979  ;;  %v969_v45 = vmul.f32 %v1978_v43, %v1974_v25 }
 0x5fa   : > { %v971_v46 = vmul.f32 %v1980_v44, %v1976_v30  ;;  %v1982_v47 = vpop.eup %1981 }
 0x5fb   : > { %v1984_v49 = vpop.eup %1983  ;;  %v1095_v50 = vmul.f32 %v1982_v47, %v1968_v21 }
 0x5fc   : > { %v972_v56 = vpack.c.bf16 %v971_v46, %v969_v45  ;;  %v1093_v51 = vmul.f32 %v1984_v49, %v1966_v19  ;;  %v1986_v52 = vpop.eup %1985 }
 0x5fd   : > { %v1988_v54 = vpop.eup %1987  ;;  %v1216_v57 = vmul.f32 %v1986_v52, %v1972_v24 }
 0x5fe   : > { %1754 = vmatmul.mubr.msk.bf16.vlgmr.msra.gmra.mrb[16].mxu1 %vm827_vm3, %v972_v56  ;;  %v1096_v53 = vpack.c.bf16 %v1095_v50, %v1093_v51  ;;  %v1218_v58 = vmul.f32 %v1988_v54, %v1970_v23 }
 0x5ff   : > { %1764 = vmatpush3.bf16.msra.mxu1 %v1098_v48  ;;  %1765 = vmatprep.mubr.msk.bf16.mxu1 %vm2212_vm0, %v2210_v0 }
 0x600   : > { %1775 = vmatprep.subr.bf16.mxu1 %v2210_v0  ;;  %v1219_v59 = vpack.c.bf16 %v1218_v58, %v1216_v57 }
 0x606   : > { %1766 = vmatmul.mubr.msk.bf16.vlgmr.msra.gmra.mrb[20].mxu1 %vm827_vm3, %v1096_v53 }
 0x607   : > { %1776 = vmatpush3.bf16.msra.mxu1 %v1221_v55  ;;  %1777 = vmatprep.mubr.msk.bf16.mxu1 %vm2212_vm0, %v2210_v0 }
 0x60e   : > { %1778 = vmatmul.mubr.msk.bf16.vlgmr.msra.gmra.mrb[24].mxu1 %vm827_vm3, %v1219_v59 }
 0x6d1   : > { %v1014_v4 = vpop.f32.mrb[16].mxu1 }
 0x6d2   : > { %v1755_v5 = vpop.f32.mrb[17].mxu1 }
 0x6d3   : > { %v1017_v7 = vpop.f32.mrb[18].mxu1 }
 0x6d4   : > { %v1902_v61 = vpack.i.bf16 %v1017_v7, %v1014_v4  ;;  %v1756_v8 = vpop.f32.mrb[19].mxu1 }
 0x6d6   : > { %1903 = vrot.lane.b32.xlu1 %v1902_v61, %s2214_s30 }
 0x6d9   : > { %v1137_v10 = vpop.f32.mrb[20].mxu1 }
 0x6da   : > { %v1767_v11 = vpop.f32.mrb[21].mxu1 }
 0x6db   : > { %v1140_v13 = vpop.f32.mrb[22].mxu1 }
 0x6dc   : > { %v1907_v14 = vpack.i.bf16 %v1140_v13, %v1137_v10  ;;  %v1768_v15 = vpop.f32.mrb[23].mxu1 }
 0x6de   : > { %1908 = vrot.lane.b32.xlu0 %v1907_v14, %s2215_s10 }
 0x6e1   : > { %v1260_v33 = vpop.f32.mrb[24].mxu1 }
 0x6e2   : > { %v1779_v60 = vpop.f32.mrb[25].mxu1 }
 0x6e3   : > { %v1263_v16 = vpop.f32.mrb[26].mxu1 }
 0x6e4   : > { %v1912_v17 = vpack.i.bf16 %v1263_v16, %v1260_v33  ;;  %v1780_v18 = vpop.f32.mrb[27].mxu1 }
 0x6e6   : > { %1913 = vrot.lane.b32.xlu1 %v1912_v17, %s2213_s29 }
 0x748   : > { %v1904_v19 = vpop.permute.xlu1 %1903 }
 0x749   : > { %v1906_v21 = vunpack.i.h.bf16 %v1904_v19  ;;  %v1905_v22 = vunpack.i.l.bf16 %v1904_v19 }
 0x74b   : > { %v1292_v25 = vsel %vm777_vm1, %v2620_v39, %v1906_v21  ;;  %v1291_v26 = vsel %vm777_vm1, %v2618_v36, %v1905_v22 }
 0x750   : > { %v1909_v20 = vpop.permute.xlu0 %1908 }
 0x751   : > { %v1911_v0 = vunpack.i.h.bf16 %v1909_v20  ;;  %v1910_v23 = vunpack.i.l.bf16 %v1909_v20 }
 0x753   : > { %v1294_v31 = vsel %vm1293_vm5, %v1291_v26, %v1910_v23  ;;  %v1295_v32 = vsel %vm1293_vm5, %v1292_v25, %v1911_v0 }
 0x758   : > { %v1914_v24 = vpop.permute.xlu1 %1913 }
 0x759   : > { %v1916_v27 = vunpack.i.h.bf16 %v1914_v24  ;;  %v1915_v30 = vunpack.i.l.bf16 %v1914_v24 }
 0x75b   : > { %v1297_v34 = vsel %vm1296_vm6, %v1294_v31, %v1915_v30  ;;  %v1298_v35 = vsel %vm1296_vm6, %v1295_v32, %v1916_v27 }
 0x75c   : > { %v1299_v37 = vpack.c.bf16 %v1298_v35, %v1297_v34 }
 0x75e   : > { %1798 = vmatmul.mubr.bf16.vlgmr.msra.gmra.mrb[12].mxu0 %v1299_v37 }
 0x831   : > { %v1398_v38 = vpop.f32.mrb[12].mxu0 }
 0x832   : > { %v1405_v41 = vadd.f32 %v1398_v38, %v2541_v28  ;;  %v1799_v42 = vpop.f32.mrb[13].mxu0 }
 0x833   : > { %v1401_v39 = vpop.f32.mrb[14].mxu0 }
 0x834   : > { %v1414_v43 = vadd.f32 %v1671_v40, %v1405_v41  ;;  %v1406_v36 = vadd.f32 %v1401_v39, %v2545_v29  ;;  %v1800_v44 = vpop.f32.mrb[15].mxu0 }
 0x836   : > { %v1415_v45 = vadd.f32 %v1671_v40, %v1406_v36  ;;  %1416 = vadd.xlane.f32.xlu0 %v1414_v43  ;;  %v1423_v46 = vmul.f32 %v1414_v43, %v1414_v43 }
 0x838   : > { %1418 = vadd.xlane.f32.xlu1 %v1415_v45  ;;  %v1424_v56 = vmul.f32 %v1415_v45, %v1415_v45 }
 0x83a   : > { %1425 = vadd.xlane.f32.xlu0 %v1423_v46 }
 0x83e   : > { %1427 = vadd.xlane.f32.xlu0 %v1424_v56 }
 0x8c3   : > { %v1417_v47 = vpop.xlane.xlu0 %1416 }
 0x8c4   : > { %v1421_v48 = vmul.f32 0.0078125, %v1417_v47 }
 0x8c5   : > { %v1419_v49 = vpop.xlane.xlu1 %1418 }
 0x8c6   : > { %v1431_v28 = vmul.f32 %v1421_v48, %v1421_v48  ;;  %v1422_v51 = vmul.f32 0.0078125, %v1419_v49  ;;  %v1439_v62 = vsub.f32 %v1414_v43, %v1421_v48 }
 0x8c7   : > { %v1426_v50 = vpop.xlane.xlu0 %1425 }
 0x8c8   : > { %v1429_v52 = vmul.f32 0.0078125, %v1426_v50  ;;  %v1432_v29 = vmul.f32 %v1422_v51, %v1422_v51  ;;  %v1440_v4 = vsub.f32 %v1415_v45, %v1422_v51 }
 0x8ca   : > { %v1433_v53 = vsub.f32 %v1429_v52, %v1431_v28 }
 0x8cb   : > { %v1428_v54 = vpop.xlane.xlu0 %1427 }
 0x8cc   : > { %v1435_v55 = vadd.f32 1e-05, %v1433_v53  ;;  %v1430_v57 = vmul.f32 0.0078125, %v1428_v54 }
 0x8ce   : > { %1989 = vrsqrt.f32 %v1435_v55  ;;  %v1434_v58 = vsub.f32 %v1430_v57, %v1432_v29 }
 0x8d0   : > { %v1436_v59 = vadd.f32 1e-05, %v1434_v58 }
 0x8d2   : > { %1991 = vrsqrt.f32 %v1436_v59 }
 0x8d8   : > { %v1990_v63 = vpop.eup %1989 }
 0x8d9   : > { %v1441_v2 = vmul.f32 %v1990_v63, %v1439_v62 }
 0x8db   : > { %v1450_v5 = vmul.f32 %v1672_v1, %v1441_v2 }
 0x8dc   : > { %v1992_v6 = vpop.eup %1991 }
 0x8dd   : > { %v1459_v7 = vadd.f32 %v1673_v3, %v1450_v5  ;;  %v1442_v61 = vmul.f32 %v1992_v6, %v1440_v4 }
 0x8df   : > { %1461 = vst [vmem:[%s489_s22] sm:$0xff] %v1459_v7  ;;  %v1451_v8 = vmul.f32 %v1672_v1, %v1442_v61 }
 0x8e1   : > { %v1460_v9 = vadd.f32 %v1673_v3, %v1451_v8 }
 0x8e3   : > { %1462 = vst [vmem:[%s489_s22 + $0x8] sm:$0xff] %v1460_v9 }
 0x8e4 PF: > { %s27_s18 = sadd.s32 1, %s2199_s18   ;;  %s2767_s6 = sld [smem:[#allocation14_spill]] }
 0x8e5   : > { %p24_p8 = scmp.ge.s32.totalorder %s27_s18, 4   ;;  %s2768_s13 = smov %s2183_s14 }
 0x8e6   : > { %s2769_s14 = smov %s2187_s15  ;;  %s2770_s15 = smov %s2418_s28 }
 0x8e7   : > { %s2771_s16 = smov %s2195_s17  ;;  %26 = sbr.rel (!%p24_p8) target bundleno = 15 (0xf), region = 125 }
 0x8ea   : > { %s2772_s17 = smov %s2767_s6 }
 0x8ee   :  { %1493 = vsyncpa [#allocation3], 1 }
 0x8ef   :  { %1495 = vsyncpa [#allocation3 + $0x1], 1 }
 0x8f0   :  { %1496 = vsyncpa [#allocation5], 1 }
 0x8f1   :  { %1498 = vsyncpa [#allocation5 + $0x1], 1 }
 0x8f2   :  { %1499 = vsyncpa [#allocation8], 1 }

</bundles_post_ra>
